<compile_context>
chip_gen: v7x
topology: tpu7x:2x2x1
jax: 0.10.0
libtpu: 0.0.40
codegen_flags: <defaults>
</compile_context>

<pallas_src>
import numpy as np
import jax
import jax.numpy as jnp
from jax.experimental import pallas as pl
from jax.experimental.pallas import tpu as pltpu

# ----------------------- configuration (small, consistent with the module) ----------
DIM = 32                 # channels
H = W = 8                # input_resolution
WINDOW = 4               # window size
NUM_HEADS = 4
DEPTH = 2                # two blocks: shift = 0 (W-MSA) and shift = WINDOW//2 (SW-MSA)
MLP_RATIO = 4.0
BATCH = 2

N_TOK = WINDOW * WINDOW
HEAD_DIM = DIM // NUM_HEADS
N_WIN = (H // WINDOW) * (W // WINDOW)
SCALE = HEAD_DIM ** (-0.5)
HIDDEN = int(DIM * MLP_RATIO)
SEQ = H * W
M_TOK = BATCH * SEQ
LN_EPS = 1e-5
NEG_INF = -1e9           # cross-window / cross-image sentinel: exp underflows to 0.0

assert HIDDEN <= 128 and 3 * DIM <= 128, "parameter slab layout assumes rows fit 128 lanes"


# ------------------------------ fused depth-stack kernel -----------------------------
def _swin_stack_kernel(x_ref, fb_ref, slab_ref, wqkv_ref, wp_ref, w1_ref, w2_ref, o_ref):
    d = pl.program_id(0)

    # At the first depth step, seed the resident activation (the output block) with x.
    @pl.when(d == 0)
    def _():
        o_ref[...] = x_ref[...]

    x = o_ref[...].astype(jnp.float32)                                   # (M, C)

    # ---- small parameter slab (one DMA) ----
    slab = slab_ref[0]                                                   # (8, 128) f32
    g1 = slab[0:1, :DIM]
    b1 = slab[1:2, :DIM]
    bqkv = slab[2:3, :3 * DIM]
    bp = slab[3:4, :DIM]
    g2 = slab[4:5, :DIM]
    b2 = slab[5:6, :DIM]
    bm1 = slab[6:7, :HIDDEN]
    bm2 = slab[7:8, :DIM]

    # ---- norm1 (f32) ----
    mean = jnp.mean(x, axis=-1, keepdims=True)
    var = jnp.mean((x - mean) ** 2, axis=-1, keepdims=True)
    xn = (x - mean) * jax.lax.rsqrt(var + LN_EPS) * g1 + b1

    # ---- fused QKV projection: one (M,C)x(C,3C) bf16 matmul, f32 accumulate ----
    qkv = jnp.dot(xn.astype(jnp.bfloat16), wqkv_ref[0],
                  preferred_element_type=jnp.float32) + bqkv             # (M, 3C) f32
    qkv_bf = qkv.astype(jnp.bfloat16)

    # ---- multi-head attention over all windows / both images at once (M = 128) ----
    attn_acc = jnp.zeros((x.shape[0], DIM), jnp.float32)
    for h in range(NUM_HEADS):
        q = qkv_bf[:, h * HEAD_DIM:(h + 1) * HEAD_DIM]                   # scale folded in
        k = qkv_bf[:, DIM + h * HEAD_DIM: DIM + (h + 1) * HEAD_DIM]
        v = qkv_bf[:, 2 * DIM + h * HEAD_DIM: 2 * DIM + (h + 1) * HEAD_DIM]
        s = jax.lax.dot_general(q, k, (((1,), (1,)), ((), ())),
                                preferred_element_type=jnp.float32)      # (M, M) f32
        # rel-pos bias + shift mask + window/image block-diagonal locality, add in f32
        s = s + fb_ref[0, h].astype(jnp.float32)
        s = s - jnp.max(s, axis=-1, keepdims=True)
        p = jnp.exp(s)                                                   # f32
        rinv = pl.reciprocal(jnp.sum(p, axis=-1, keepdims=True), approx=True)
        # Output projection folded into P@V:  (P @ V_h) @ Wp_h == P @ (V_h @ Wp_h)
        vp = jnp.dot(v, wp_ref[0, h], preferred_element_type=jnp.float32)  # (M, C)
        attn_acc = attn_acc + jnp.dot(p.astype(jnp.bfloat16), vp.astype(jnp.bfloat16),
                                      preferred_element_type=jnp.float32) * rinv
    x = x + attn_acc + bp                                                # residual 1

    # ---- norm2 + MLP (fc1 -> GELU(tanh) -> fc2) + residual ----
    mean2 = jnp.mean(x, axis=-1, keepdims=True)
    var2 = jnp.mean((x - mean2) ** 2, axis=-1, keepdims=True)
    xn2 = (x - mean2) * jax.lax.rsqrt(var2 + LN_EPS) * g2 + b2
    hdn = jnp.dot(xn2.astype(jnp.bfloat16), w1_ref[0],
                  preferred_element_type=jnp.float32) + bm1              # (M, HIDDEN)
    c0 = np.float32(0.7978845608028654)   # sqrt(2/pi)
    c1 = np.float32(0.044715)
    hdn = 0.5 * hdn * (1.0 + jnp.tanh(c0 * (hdn + c1 * hdn * hdn * hdn)))
    y = jnp.dot(hdn.astype(jnp.bfloat16), w2_ref[0],
                preferred_element_type=jnp.float32) + bm2
    o_ref[...] = (x + y).astype(o_ref.dtype)


def swin_depth_stack(x, packed):
    """All DEPTH SwinTransformerBlocks = ONE pallas_call with grid=(DEPTH,)."""
    B, L, C = x.shape
    M = B * L
    depth = packed["wqkv"].shape[0]
    out = pl.pallas_call(
        _swin_stack_kernel,
        out_shape=jax.ShapeDtypeStruct((M, C), x.dtype),
        grid=(depth,),
        in_specs=[
            pl.BlockSpec((M, C), lambda d: (0, 0)),                           # x (read @ d==0)
            pl.BlockSpec((1, NUM_HEADS, M, M), lambda d: (d, 0, 0, 0)),       # fused bias (bf16)
            pl.BlockSpec((1, 8, 128), lambda d: (d, 0, 0)),                   # param slab (f32)
            pl.BlockSpec((1, DIM, 3 * DIM), lambda d: (d, 0, 0)),             # wqkv (bf16)
            pl.BlockSpec((1, NUM_HEADS, HEAD_DIM, DIM), lambda d: (d, 0, 0, 0)),  # wp (bf16)
            pl.BlockSpec((1, DIM, HIDDEN), lambda d: (d, 0, 0)),              # w1 (bf16)
            pl.BlockSpec((1, HIDDEN, DIM), lambda d: (d, 0, 0)),              # w2 (bf16)
        ],
        out_specs=pl.BlockSpec((M, C), lambda d: (0, 0)),   # resident accumulator/carry
        compiler_params=pltpu.CompilerParams(dimension_semantics=("arbitrary",)),
    )(x.reshape(M, C), packed["fb"], packed["slab"], packed["wqkv"],
      packed["wp"], packed["w1"], packed["w2"])
    return out.reshape(B, L, C)


# ------------------- host-side precomputation of the fused attention bias ------------
def build_rel_index():
    coords = np.stack(np.meshgrid(np.arange(WINDOW), np.arange(WINDOW), indexing="ij"))
    cf = coords.reshape(2, -1)
    rel = (cf[:, :, None] - cf[:, None, :]).transpose(1, 2, 0)
    rel[:, :, 0] += WINDOW - 1
    rel[:, :, 1] += WINDOW - 1
    rel[:, :, 0] *= 2 * WINDOW - 1
    return rel.sum(-1)                                     # (N_TOK, N_TOK) ints


REL_INDEX = build_rel_index()


def build_ref_attn_mask(shift):
    """Per-window additive mask, built exactly as in the PyTorch reference."""
    if shift == 0:
        return np.zeros((N_WIN, N_TOK, N_TOK), np.float32)
    img = np.zeros((H, W), np.float32)
    cnt = 0
    for hs in (slice(0, -WINDOW), slice(-WINDOW, -shift), slice(-shift, None)):
        for ws in (slice(0, -WINDOW), slice(-WINDOW, -shift), slice(-shift, None)):
            img[hs, ws] = cnt
            cnt += 1
    mw = img.reshape(H // WINDOW, WINDOW, W // WINDOW, WINDOW)
    mw = mw.transpose(0, 2, 1, 3).reshape(-1, N_TOK)
    diff = mw[:, None, :] - mw[:, :, None]
    return np.where(diff != 0, -100.0, 0.0).astype(np.float32)


def build_fused_bias_np(table, shift, batch):
    """(NUM_HEADS, B*L, B*L) additive bias folding relative-position bias, shifted-
    window mask, cyclic shift, window partition/reverse and per-image block masking."""
    tab = np.asarray(table, np.float32)                            # ((2W-1)^2, nH)
    rel_bias = tab[REL_INDEX].transpose(2, 0, 1)                   # (nH, N, N)
    attn_mask = build_ref_attn_mask(shift)                         # (nW, N, N)

    L = H * W
    fb_img = np.full((NUM_HEADS, L, L), NEG_INF, np.float32)
    for p_ in range(L):
        i1, j1 = divmod(p_, W)
        ri1, rj1 = (i1 - shift) % H, (j1 - shift) % W              # rolled coords
        for q_ in range(L):
            i2, j2 = divmod(q_, W)
            ri2, rj2 = (i2 - shift) % H, (j2 - shift) % W
            if (ri1 // WINDOW == ri2 // WINDOW) and (rj1 // WINDOW == rj2 // WINDOW):
                w = (ri1 // WINDOW) * (W // WINDOW) + (rj1 // WINDOW)
                a = (ri1 % WINDOW) * WINDOW + (rj1 % WINDOW)
                b = (ri2 % WINDOW) * WINDOW + (rj2 % WINDOW)
                fb_img[:, p_, q_] = rel_bias[:, a, b] + attn_mask[w, a, b]
    M = batch * L
    fb = np.full((NUM_HEADS, M, M), NEG_INF, np.float32)
    for b in range(batch):                                         # block-diag per image
        fb[:, b * L:(b + 1) * L, b * L:(b + 1) * L] = fb_img
    return fb


# ----------------------------------- parameters --------------------------------------
def init_params(key):
    blocks = []
    for i in range(DEPTH):
        ks = jax.random.split(jax.random.fold_in(key, i), 8)
        nrm = lambda k, shp, s=0.2: s * jax.random.normal(k, shp, jnp.float32)
        blocks.append(dict(
            g1=jnp.ones((1, DIM), jnp.float32), b1=jnp.zeros((1, DIM), jnp.float32),
            wqkv=nrm(ks[0], (DIM, 3 * DIM)),          # columns: [Q heads | K heads | V heads]
            bqkv=nrm(ks[1], (1, 3 * DIM), 0.1),
            wp=nrm(ks[2], (DIM, DIM)), bp=nrm(ks[3], (1, DIM), 0.1),
            table=nrm(ks[4], ((2 * WINDOW - 1) ** 2, NUM_HEADS), 1.0),
            g2=jnp.ones((1, DIM), jnp.float32), b2=jnp.zeros((1, DIM), jnp.float32),
            w1=nrm(ks[5], (DIM, HIDDEN)), bm1=nrm(ks[6], (1, HIDDEN), 0.1),
            w2=nrm(ks[7], (HIDDEN, DIM)), bm2=jnp.zeros((1, DIM), jnp.float32),
        ))
    return blocks


def pack_block_params(blocks, shifts, batch):
    """Stack per-block weights along a leading depth axis; fold Q-scale into wqkv/bqkv,
    pack all tiny vectors into one (8,128) slab per block, cast MXU weights + fused
    bias to bf16 (LayerNorm/bias vectors stay f32)."""
    wqkv_l, wp_l, w1_l, w2_l, slab_l, fb_l = [], [], [], [], [], []
    for p, shift in zip(blocks, shifts):
        wqkv = np.asarray(p["wqkv"], np.float32).copy()
        bqkv = np.asarray(p["bqkv"], np.float32).copy()
        wqkv[:, :DIM] *= SCALE                     # fold q * scale into the projection
        bqkv[:, :DIM] *= SCALE
        wqkv_l.append(wqkv)
        wp_l.append(np.asarray(p["wp"], np.float32).reshape(NUM_HEADS, HEAD_DIM, DIM))
        w1_l.append(np.asarray(p["w1"], np.float32))
        w2_l.append(np.asarray(p["w2"], np.float32))

        slab = np.zeros((8, 128), np.float32)
        slab[0, :DIM] = np.asarray(p["g1"]).reshape(-1)
        slab[1, :DIM] = np.asarray(p["b1"]).reshape(-1)
        slab[2, :3 * DIM] = bqkv.reshape(-1)
        slab[3, :DIM] = np.asarray(p["bp"]).reshape(-1)
        slab[4, :DIM] = np.asarray(p["g2"]).reshape(-1)
        slab[5, :DIM] = np.asarray(p["b2"]).reshape(-1)
        slab[6, :HIDDEN] = np.asarray(p["bm1"]).reshape(-1)
        slab[7, :DIM] = np.asarray(p["bm2"]).reshape(-1)
        slab_l.append(slab)

        fb_l.append(build_fused_bias_np(p["table"], shift, batch))
    return dict(
        wqkv=jnp.asarray(np.stack(wqkv_l), jnp.bfloat16),
        wp=jnp.asarray(np.stack(wp_l), jnp.bfloat16),
        w1=jnp.asarray(np.stack(w1_l), jnp.bfloat16),
        w2=jnp.asarray(np.stack(w2_l), jnp.bfloat16),
        slab=jnp.asarray(np.stack(slab_l), jnp.float32),
        fb=jnp.asarray(np.stack(fb_l), jnp.bfloat16),
    )


# ----------------------- pure-JAX reference (standard windowed Swin path) ------------
def _ln_ref(x, g, b):
    mean = jnp.mean(x, axis=-1, keepdims=True)
    var = jnp.mean((x - mean) ** 2, axis=-1, keepdims=True)
    return (x - mean) * jax.lax.rsqrt(var + LN_EPS) * g + b


def reference_block(x, p, shift):
    B, L, C = x.shape
    shortcut = x
    xn = _ln_ref(x, p["g1"], p["b1"]).reshape(B, H, W, C)
    if shift > 0:
        xn = jnp.roll(xn, (-shift, -shift), axis=(1, 2))
    xw = xn.reshape(B, H // WINDOW, WINDOW, W // WINDOW, WINDOW, C)
    xw = xw.transpose(0, 1, 3, 2, 4, 5).reshape(-1, N_TOK, C)          # (B*nW, N, C)
    B_ = xw.shape[0]
    qkv = xw @ p["wqkv"] + p["bqkv"]
    qkv = qkv.reshape(B_, N_TOK, 3, NUM_HEADS, HEAD_DIM).transpose(2, 0, 3, 1, 4)
    q, k, v = qkv[0] * SCALE, qkv[1], qkv[2]                           # (B_, nH, N, hd)
    attn = q @ jnp.swapaxes(k, -2, -1)
    rel = p["table"][jnp.asarray(REL_INDEX)].transpose(2, 0, 1)        # (nH, N, N)
    attn = attn + rel[None]
    if shift > 0:
        mask = jnp.asarray(build_ref_attn_mask(shift))
        attn = attn.reshape(B, N_WIN, NUM_HEADS, N_TOK, N_TOK) + mask[None, :, None]
        attn = attn.reshape(B_, NUM_HEADS, N_TOK, N_TOK)
    attn = jax.nn.softmax(attn, axis=-1)
    out = (attn @ v).transpose(0, 2, 1, 3).reshape(B_, N_TOK, C)
    out = out @ p["wp"] + p["bp"]
    out = out.reshape(B, H // WINDOW, W // WINDOW, WINDOW, WINDOW, C)
    out = out.transpose(0, 1, 3, 2, 4, 5).reshape(B, H, W, C)
    if shift > 0:
        out = jnp.roll(out, (shift, shift), axis=(1, 2))
    x = shortcut + out.reshape(B, L, C)
    xn2 = _ln_ref(x, p["g2"], p["b2"])
    hid = jax.nn.gelu(xn2 @ p["w1"] + p["bm1"], approximate=False)
    return x + (hid @ p["w2"] + p["bm2"])


# ----------------------------------- main ---------------------------------------------
if __name__ == "__main__":
    key = jax.random.PRNGKey(0)
    blocks = init_params(key)
    shifts = [0 if i % 2 == 0 else WINDOW // 2 for i in range(DEPTH)]
    # Hoisted once per parameter set: rel-bias gather, shift mask, cyclic shift,
    # window structure, batch block-diag, Q-scale folding, bf16 weight casts.
    packed = pack_block_params(blocks, shifts, BATCH)

    x = jax.random.normal(jax.random.fold_in(key, 12345), (BATCH, SEQ, DIM), jnp.float32)

    fwd = jax.jit(swin_depth_stack)
    out = jax.block_until_ready(fwd(x, packed))
    assert out.shape == (BATCH, SEQ, DIM), out.shape
    assert bool(jnp.all(jnp.isfinite(out)))

    # Validate the fused formulation against the standard windowed path (f32, exact erf).
    ref = x
    for i in range(DEPTH):
        ref = reference_block(ref, blocks[i], shifts[i])
    ref = jax.block_until_ready(ref)
    err = float(jnp.max(jnp.abs(out - ref)))
    scale = float(jnp.max(jnp.abs(ref))) + 1.0
    # bf16 MXU operands + bf16-stored bias + tanh-GELU vs an f32/exact-erf reference.
    assert err <= 4e-2 * scale, (err, scale)

    print("KERNEL_OK")
</pallas_src>

<mosaic_0001>
module attributes {stable_mosaic.version = 11 : i64} {
  func.func @_swin_stack_kernel(%arg0: i32, %arg1: memref<128x32xf32, #tpu.memory_space<vmem>>, %arg2: memref<1x4x128x128xbf16, #tpu.memory_space<vmem>>, %arg3: memref<1x8x128xf32, #tpu.memory_space<vmem>>, %arg4: memref<1x32x96xbf16, #tpu.memory_space<vmem>>, %arg5: memref<1x4x8x32xbf16, #tpu.memory_space<vmem>>, %arg6: memref<1x32x128xbf16, #tpu.memory_space<vmem>>, %arg7: memref<1x128x32xbf16, #tpu.memory_space<vmem>>, %arg8: memref<128x32xf32, #tpu.memory_space<vmem>>) attributes {dimension_semantics = [#tpu.dimension_semantics<arbitrary>], iteration_bounds = array<i64: 2>, scalar_prefetch = 0 : i64, scratch_operands = 0 : i64, tpu.core_type = #tpu.core_type<tc>, window_params = [{pipeline_mode = #tpu.pipeline_mode<synchronous>, transform_indices = @transform_0, window_bounds = array<i64: 128, 32>}, {transform_indices = @transform_1, window_bounds = array<i64: 1, 4, 128, 128>}, {transform_indices = @transform_2, window_bounds = array<i64: 1, 8, 128>}, {transform_indices = @transform_3, window_bounds = array<i64: 1, 32, 96>}, {transform_indices = @transform_4, window_bounds = array<i64: 1, 4, 8, 32>}, {transform_indices = @transform_5, window_bounds = array<i64: 1, 32, 128>}, {transform_indices = @transform_6, window_bounds = array<i64: 1, 128, 32>}, {pipeline_mode = #tpu.pipeline_mode<synchronous>, transform_indices = @transform_7, window_bounds = array<i64: 128, 32>}]} {
    %c0_i32 = arith.constant 0 : i32
    %0 = arith.cmpi eq, %arg0, %c0_i32 : i32
    %1 = arith.extui %0 : i1 to i32
    %c0_i32_0 = arith.constant 0 : i32
    %2 = arith.cmpi ne, %1, %c0_i32_0 : i32
    scf.if %2 {
      %c0_82 = arith.constant 0 : index
      %c0_83 = arith.constant 0 : index
      %196 = vector.load %arg1[%c0_82, %c0_83] : memref<128x32xf32, #tpu.memory_space<vmem>>, vector<128x32xf32>
      %c0_84 = arith.constant 0 : index
      %c0_85 = arith.constant 0 : index
      %197 = vector.load %arg8[%c0_84, %c0_85] : memref<128x32xf32, #tpu.memory_space<vmem>>, vector<128x32xf32>
      tpu.vector_store %arg8[%c0_84, %c0_85], %196 {strides = array<i32>} : memref<128x32xf32, #tpu.memory_space<vmem>>, vector<128x32xf32>,
    } else {
    }
    %c0 = arith.constant 0 : index
    %c0_1 = arith.constant 0 : index
    %3 = vector.load %arg8[%c0, %c0_1] : memref<128x32xf32, #tpu.memory_space<vmem>>, vector<128x32xf32>
    %c0_2 = arith.constant 0 : index
    %c0_3 = arith.constant 0 : index
    %c0_4 = arith.constant 0 : index
    %4 = vector.load %arg3[%c0_2, %c0_3, %c0_4] : memref<1x8x128xf32, #tpu.memory_space<vmem>>, vector<1x8x128xf32>
    %5 = vector.shape_cast %4 : vector<1x8x128xf32> to vector<8x128xf32>
    %6 = vector.extract_strided_slice %5 {offsets = [0, 0], sizes = [1, 32], strides = [1, 1]} : vector<8x128xf32> to vector<1x32xf32>
    %7 = vector.extract_strided_slice %5 {offsets = [1, 0], sizes = [1, 32], strides = [1, 1]} : vector<8x128xf32> to vector<1x32xf32>
    %8 = vector.extract_strided_slice %5 {offsets = [2, 0], sizes = [1, 96], strides = [1, 1]} : vector<8x128xf32> to vector<1x96xf32>
    %9 = vector.extract_strided_slice %5 {offsets = [3, 0], sizes = [1, 32], strides = [1, 1]} : vector<8x128xf32> to vector<1x32xf32>
    %10 = vector.extract_strided_slice %5 {offsets = [4, 0], sizes = [1, 32], strides = [1, 1]} : vector<8x128xf32> to vector<1x32xf32>
    %11 = vector.extract_strided_slice %5 {offsets = [5, 0], sizes = [1, 32], strides = [1, 1]} : vector<8x128xf32> to vector<1x32xf32>
    %12 = vector.extract_strided_slice %5 {offsets = [6, 0], sizes = [1, 128], strides = [1, 1]} : vector<8x128xf32> to vector<1x128xf32>
    %13 = vector.extract_strided_slice %5 {offsets = [7, 0], sizes = [1, 32], strides = [1, 1]} : vector<8x128xf32> to vector<1x32xf32>
    %cst = arith.constant dense<0.000000e+00> : vector<128xf32>
    %14 = vector.multi_reduction <add>, %3, %cst [1] : vector<128x32xf32> to vector<128xf32>
    %15 = vector.shape_cast %14 : vector<128xf32> to vector<128x1xf32>
    %cst_5 = arith.constant 3.200000e+01 : f32
    %16 = vector.broadcast %cst_5 : f32 to vector<128x1xf32>
    %17 = arith.divf %15, %16 : vector<128x1xf32>
    %18 = vector.broadcast %17 : vector<128x1xf32> to vector<128x32xf32>
    %19 = arith.subf %3, %18 : vector<128x32xf32>
    %20 = arith.mulf %19, %19 : vector<128x32xf32>
    %cst_6 = arith.constant dense<0.000000e+00> : vector<128xf32>
    %21 = vector.multi_reduction <add>, %20, %cst_6 [1] : vector<128x32xf32> to vector<128xf32>
    %22 = vector.shape_cast %21 : vector<128xf32> to vector<128x1xf32>
    %cst_7 = arith.constant 3.200000e+01 : f32
    %23 = vector.broadcast %cst_7 : f32 to vector<128x1xf32>
    %24 = arith.divf %22, %23 : vector<128x1xf32>
    %25 = vector.broadcast %17 : vector<128x1xf32> to vector<128x32xf32>
    %26 = arith.subf %3, %25 : vector<128x32xf32>
    %cst_8 = arith.constant 9.99999974E-6 : f32
    %27 = vector.broadcast %cst_8 : f32 to vector<128x1xf32>
    %28 = arith.addf %24, %27 : vector<128x1xf32>
    %29 = math.rsqrt %28 : vector<128x1xf32>
    %30 = vector.broadcast %29 : vector<128x1xf32> to vector<128x32xf32>
    %31 = arith.mulf %26, %30 : vector<128x32xf32>
    %32 = vector.broadcast %6 : vector<1x32xf32> to vector<128x32xf32>
    %33 = arith.mulf %31, %32 : vector<128x32xf32>
    %34 = vector.broadcast %7 : vector<1x32xf32> to vector<128x32xf32>
    %35 = arith.addf %33, %34 : vector<128x32xf32>
    %36 = arith.truncf %35 : vector<128x32xf32> to vector<128x32xbf16>
    %c0_9 = arith.constant 0 : index
    %c0_10 = arith.constant 0 : index
    %c0_11 = arith.constant 0 : index
    %37 = vector.load %arg4[%c0_9, %c0_10, %c0_11] : memref<1x32x96xbf16, #tpu.memory_space<vmem>>, vector<1x32x96xbf16>
    %38 = vector.shape_cast %37 : vector<1x32x96xbf16> to vector<32x96xbf16>
    %cst_12 = arith.constant dense<0.000000e+00> : vector<128x96xf32>
    %39 = tpu.matmul %36, %38, %cst_12 {dimension_numbers = #tpu.dot_dimension_numbers<[1], [0], [0], [1], [0, 0, 1, 1], [], []>} : vector<128x32xbf16>, vector<32x96xbf16>, vector<128x96xf32> -> vector<128x96xf32>
    %40 = vector.broadcast %8 : vector<1x96xf32> to vector<128x96xf32>
    %41 = arith.addf %39, %40 : vector<128x96xf32>
    %42 = arith.truncf %41 : vector<128x96xf32> to vector<128x96xbf16>
    %cst_13 = arith.constant 0.000000e+00 : f32
    %43 = vector.broadcast %cst_13 : f32 to vector<128x32xf32>
    %44 = vector.extract_strided_slice %42 {offsets = [0, 0], sizes = [128, 8], strides = [1, 1]} : vector<128x96xbf16> to vector<128x8xbf16>
    %45 = vector.extract_strided_slice %42 {offsets = [0, 32], sizes = [128, 8], strides = [1, 1]} : vector<128x96xbf16> to vector<128x8xbf16>
    %46 = vector.extract_strided_slice %42 {offsets = [0, 64], sizes = [128, 8], strides = [1, 1]} : vector<128x96xbf16> to vector<128x8xbf16>
    %cst_14 = arith.constant dense<0.000000e+00> : vector<128x128xf32>
    %47 = tpu.matmul %44, %45, %cst_14 {dimension_numbers = #tpu.dot_dimension_numbers<[1], [1], [0], [0], [0, 0, 1, 0], [], []>} : vector<128x8xbf16>, vector<128x8xbf16>, vector<128x128xf32> -> vector<128x128xf32>
    %c0_15 = arith.constant 0 : index
    %c0_16 = arith.constant 0 : index
    %c0_17 = arith.constant 0 : index
    %c0_18 = arith.constant 0 : index
    %48 = vector.load %arg2[%c0_15, %c0_16, %c0_17, %c0_18] : memref<1x4x128x128xbf16, #tpu.memory_space<vmem>>, vector<1x1x128x128xbf16>
    %49 = vector.shape_cast %48 : vector<1x1x128x128xbf16> to vector<128x128xbf16>
    %50 = arith.extf %49 : vector<128x128xbf16> to vector<128x128xf32>
    %51 = arith.addf %47, %50 : vector<128x128xf32>
    %cst_19 = arith.constant dense<0xFF800000> : vector<128xf32>
    %52 = vector.multi_reduction <maximumf>, %51, %cst_19 [1] : vector<128x128xf32> to vector<128xf32>
    %53 = vector.shape_cast %52 : vector<128xf32> to vector<128x1xf32>
    %54 = vector.broadcast %53 : vector<128x1xf32> to vector<128x128xf32>
    %55 = arith.subf %51, %54 : vector<128x128xf32>
    %56 = math.exp %55 : vector<128x128xf32>
    %cst_20 = arith.constant dense<0.000000e+00> : vector<128xf32>
    %57 = vector.multi_reduction <add>, %56, %cst_20 [1] : vector<128x128xf32> to vector<128xf32>
    %58 = vector.shape_cast %57 : vector<128xf32> to vector<128x1xf32>
    %59 = tpu.reciprocal %58 {approx = true} : vector<128x1xf32> -> vector<128x1xf32>
    %c0_21 = arith.constant 0 : index
    %c0_22 = arith.constant 0 : index
    %c0_23 = arith.constant 0 : index
    %c0_24 = arith.constant 0 : index
    %60 = vector.load %arg5[%c0_21, %c0_22, %c0_23, %c0_24] : memref<1x4x8x32xbf16, #tpu.memory_space<vmem>>, vector<1x1x8x32xbf16>
    %61 = vector.shape_cast %60 : vector<1x1x8x32xbf16> to vector<8x32xbf16>
    %cst_25 = arith.constant dense<0.000000e+00> : vector<128x32xf32>
    %62 = tpu.matmul %46, %61, %cst_25 {dimension_numbers = #tpu.dot_dimension_numbers<[1], [0], [0], [1], [0, 0, 1, 1], [], []>} : vector<128x8xbf16>, vector<8x32xbf16>, vector<128x32xf32> -> vector<128x32xf32>
    %63 = arith.truncf %56 : vector<128x128xf32> to vector<128x128xbf16>
    %64 = arith.truncf %62 : vector<128x32xf32> to vector<128x32xbf16>
    %cst_26 = arith.constant dense<0.000000e+00> : vector<128x32xf32>
    %65 = tpu.matmul %63, %64, %cst_26 {dimension_numbers = #tpu.dot_dimension_numbers<[1], [0], [0], [1], [0, 0, 1, 1], [], []>} : vector<128x128xbf16>, vector<128x32xbf16>, vector<128x32xf32> -> vector<128x32xf32>
    %66 = vector.broadcast %59 : vector<128x1xf32> to vector<128x32xf32>
    %67 = arith.mulf %65, %66 : vector<128x32xf32>
    %68 = arith.addf %43, %67 : vector<128x32xf32>
    %69 = vector.extract_strided_slice %42 {offsets = [0, 8], sizes = [128, 8], strides = [1, 1]} : vector<128x96xbf16> to vector<128x8xbf16>
    %70 = vector.extract_strided_slice %42 {offsets = [0, 40], sizes = [128, 8], strides = [1, 1]} : vector<128x96xbf16> to vector<128x8xbf16>
    %71 = vector.extract_strided_slice %42 {offsets = [0, 72], sizes = [128, 8], strides = [1, 1]} : vector<128x96xbf16> to vector<128x8xbf16>
    %cst_27 = arith.constant dense<0.000000e+00> : vector<128x128xf32>
    %72 = tpu.matmul %69, %70, %cst_27 {dimension_numbers = #tpu.dot_dimension_numbers<[1], [1], [0], [0], [0, 0, 1, 0], [], []>} : vector<128x8xbf16>, vector<128x8xbf16>, vector<128x128xf32> -> vector<128x128xf32>
    %c0_28 = arith.constant 0 : index
    %c1 = arith.constant 1 : index
    %c0_29 = arith.constant 0 : index
    %c0_30 = arith.constant 0 : index
    %73 = vector.load %arg2[%c0_28, %c1, %c0_29, %c0_30] : memref<1x4x128x128xbf16, #tpu.memory_space<vmem>>, vector<1x1x128x128xbf16>
    %74 = vector.shape_cast %73 : vector<1x1x128x128xbf16> to vector<128x128xbf16>
    %75 = arith.extf %74 : vector<128x128xbf16> to vector<128x128xf32>
    %76 = arith.addf %72, %75 : vector<128x128xf32>
    %cst_31 = arith.constant dense<0xFF800000> : vector<128xf32>
    %77 = vector.multi_reduction <maximumf>, %76, %cst_31 [1] : vector<128x128xf32> to vector<128xf32>
    %78 = vector.shape_cast %77 : vector<128xf32> to vector<128x1xf32>
    %79 = vector.broadcast %78 : vector<128x1xf32> to vector<128x128xf32>
    %80 = arith.subf %76, %79 : vector<128x128xf32>
    %81 = math.exp %80 : vector<128x128xf32>
    %cst_32 = arith.constant dense<0.000000e+00> : vector<128xf32>
    %82 = vector.multi_reduction <add>, %81, %cst_32 [1] : vector<128x128xf32> to vector<128xf32>
    %83 = vector.shape_cast %82 : vector<128xf32> to vector<128x1xf32>
    %84 = tpu.reciprocal %83 {approx = true} : vector<128x1xf32> -> vector<128x1xf32>
    %c0_33 = arith.constant 0 : index
    %c1_34 = arith.constant 1 : index
    %c0_35 = arith.constant 0 : index
    %c0_36 = arith.constant 0 : index
    %85 = vector.load %arg5[%c0_33, %c1_34, %c0_35, %c0_36] : memref<1x4x8x32xbf16, #tpu.memory_space<vmem>>, vector<1x1x8x32xbf16>
    %86 = vector.shape_cast %85 : vector<1x1x8x32xbf16> to vector<8x32xbf16>
    %cst_37 = arith.constant dense<0.000000e+00> : vector<128x32xf32>
    %87 = tpu.matmul %71, %86, %cst_37 {dimension_numbers = #tpu.dot_dimension_numbers<[1], [0], [0], [1], [0, 0, 1, 1], [], []>} : vector<128x8xbf16>, vector<8x32xbf16>, vector<128x32xf32> -> vector<128x32xf32>
    %88 = arith.truncf %81 : vector<128x128xf32> to vector<128x128xbf16>
    %89 = arith.truncf %87 : vector<128x32xf32> to vector<128x32xbf16>
    %cst_38 = arith.constant dense<0.000000e+00> : vector<128x32xf32>
    %90 = tpu.matmul %88, %89, %cst_38 {dimension_numbers = #tpu.dot_dimension_numbers<[1], [0], [0], [1], [0, 0, 1, 1], [], []>} : vector<128x128xbf16>, vector<128x32xbf16>, vector<128x32xf32> -> vector<128x32xf32>
    %91 = vector.broadcast %84 : vector<128x1xf32> to vector<128x32xf32>
    %92 = arith.mulf %90, %91 : vector<128x32xf32>
    %93 = arith.addf %68, %92 : vector<128x32xf32>
    %94 = vector.extract_strided_slice %42 {offsets = [0, 16], sizes = [128, 8], strides = [1, 1]} : vector<128x96xbf16> to vector<128x8xbf16>
    %95 = vector.extract_strided_slice %42 {offsets = [0, 48], sizes = [128, 8], strides = [1, 1]} : vector<128x96xbf16> to vector<128x8xbf16>
    %96 = vector.extract_strided_slice %42 {offsets = [0, 80], sizes = [128, 8], strides = [1, 1]} : vector<128x96xbf16> to vector<128x8xbf16>
    %cst_39 = arith.constant dense<0.000000e+00> : vector<128x128xf32>
    %97 = tpu.matmul %94, %95, %cst_39 {dimension_numbers = #tpu.dot_dimension_numbers<[1], [1], [0], [0], [0, 0, 1, 0], [], []>} : vector<128x8xbf16>, vector<128x8xbf16>, vector<128x128xf32> -> vector<128x128xf32>
    %c0_40 = arith.constant 0 : index
    %c2 = arith.constant 2 : index
    %c0_41 = arith.constant 0 : index
    %c0_42 = arith.constant 0 : index
    %98 = vector.load %arg2[%c0_40, %c2, %c0_41, %c0_42] : memref<1x4x128x128xbf16, #tpu.memory_space<vmem>>, vector<1x1x128x128xbf16>
    %99 = vector.shape_cast %98 : vector<1x1x128x128xbf16> to vector<128x128xbf16>
    %100 = arith.extf %99 : vector<128x128xbf16> to vector<128x128xf32>
    %101 = arith.addf %97, %100 : vector<128x128xf32>
    %cst_43 = arith.constant dense<0xFF800000> : vector<128xf32>
    %102 = vector.multi_reduction <maximumf>, %101, %cst_43 [1] : vector<128x128xf32> to vector<128xf32>
    %103 = vector.shape_cast %102 : vector<128xf32> to vector<128x1xf32>
    %104 = vector.broadcast %103 : vector<128x1xf32> to vector<128x128xf32>
    %105 = arith.subf %101, %104 : vector<128x128xf32>
    %106 = math.exp %105 : vector<128x128xf32>
    %cst_44 = arith.constant dense<0.000000e+00> : vector<128xf32>
    %107 = vector.multi_reduction <add>, %106, %cst_44 [1] : vector<128x128xf32> to vector<128xf32>
    %108 = vector.shape_cast %107 : vector<128xf32> to vector<128x1xf32>
    %109 = tpu.reciprocal %108 {approx = true} : vector<128x1xf32> -> vector<128x1xf32>
    %c0_45 = arith.constant 0 : index
    %c2_46 = arith.constant 2 : index
    %c0_47 = arith.constant 0 : index
    %c0_48 = arith.constant 0 : index
    %110 = vector.load %arg5[%c0_45, %c2_46, %c0_47, %c0_48] : memref<1x4x8x32xbf16, #tpu.memory_space<vmem>>, vector<1x1x8x32xbf16>
    %111 = vector.shape_cast %110 : vector<1x1x8x32xbf16> to vector<8x32xbf16>
    %cst_49 = arith.constant dense<0.000000e+00> : vector<128x32xf32>
    %112 = tpu.matmul %96, %111, %cst_49 {dimension_numbers = #tpu.dot_dimension_numbers<[1], [0], [0], [1], [0, 0, 1, 1], [], []>} : vector<128x8xbf16>, vector<8x32xbf16>, vector<128x32xf32> -> vector<128x32xf32>
    %113 = arith.truncf %106 : vector<128x128xf32> to vector<128x128xbf16>
    %114 = arith.truncf %112 : vector<128x32xf32> to vector<128x32xbf16>
    %cst_50 = arith.constant dense<0.000000e+00> : vector<128x32xf32>
    %115 = tpu.matmul %113, %114, %cst_50 {dimension_numbers = #tpu.dot_dimension_numbers<[1], [0], [0], [1], [0, 0, 1, 1], [], []>} : vector<128x128xbf16>, vector<128x32xbf16>, vector<128x32xf32> -> vector<128x32xf32>
    %116 = vector.broadcast %109 : vector<128x1xf32> to vector<128x32xf32>
    %117 = arith.mulf %115, %116 : vector<128x32xf32>
    %118 = arith.addf %93, %117 : vector<128x32xf32>
    %119 = vector.extract_strided_slice %42 {offsets = [0, 24], sizes = [128, 8], strides = [1, 1]} : vector<128x96xbf16> to vector<128x8xbf16>
    %120 = vector.extract_strided_slice %42 {offsets = [0, 56], sizes = [128, 8], strides = [1, 1]} : vector<128x96xbf16> to vector<128x8xbf16>
    %121 = vector.extract_strided_slice %42 {offsets = [0, 88], sizes = [128, 8], strides = [1, 1]} : vector<128x96xbf16> to vector<128x8xbf16>
    %cst_51 = arith.constant dense<0.000000e+00> : vector<128x128xf32>
    %122 = tpu.matmul %119, %120, %cst_51 {dimension_numbers = #tpu.dot_dimension_numbers<[1], [1], [0], [0], [0, 0, 1, 0], [], []>} : vector<128x8xbf16>, vector<128x8xbf16>, vector<128x128xf32> -> vector<128x128xf32>
    %c0_52 = arith.constant 0 : index
    %c3 = arith.constant 3 : index
    %c0_53 = arith.constant 0 : index
    %c0_54 = arith.constant 0 : index
    %123 = vector.load %arg2[%c0_52, %c3, %c0_53, %c0_54] : memref<1x4x128x128xbf16, #tpu.memory_space<vmem>>, vector<1x1x128x128xbf16>
    %124 = vector.shape_cast %123 : vector<1x1x128x128xbf16> to vector<128x128xbf16>
    %125 = arith.extf %124 : vector<128x128xbf16> to vector<128x128xf32>
    %126 = arith.addf %122, %125 : vector<128x128xf32>
    %cst_55 = arith.constant dense<0xFF800000> : vector<128xf32>
    %127 = vector.multi_reduction <maximumf>, %126, %cst_55 [1] : vector<128x128xf32> to vector<128xf32>
    %128 = vector.shape_cast %127 : vector<128xf32> to vector<128x1xf32>
    %129 = vector.broadcast %128 : vector<128x1xf32> to vector<128x128xf32>
    %130 = arith.subf %126, %129 : vector<128x128xf32>
    %131 = math.exp %130 : vector<128x128xf32>
    %cst_56 = arith.constant dense<0.000000e+00> : vector<128xf32>
    %132 = vector.multi_reduction <add>, %131, %cst_56 [1] : vector<128x128xf32> to vector<128xf32>
    %133 = vector.shape_cast %132 : vector<128xf32> to vector<128x1xf32>
    %134 = tpu.reciprocal %133 {approx = true} : vector<128x1xf32> -> vector<128x1xf32>
    %c0_57 = arith.constant 0 : index
    %c3_58 = arith.constant 3 : index
    %c0_59 = arith.constant 0 : index
    %c0_60 = arith.constant 0 : index
    %135 = vector.load %arg5[%c0_57, %c3_58, %c0_59, %c0_60] : memref<1x4x8x32xbf16, #tpu.memory_space<vmem>>, vector<1x1x8x32xbf16>
    %136 = vector.shape_cast %135 : vector<1x1x8x32xbf16> to vector<8x32xbf16>
    %cst_61 = arith.constant dense<0.000000e+00> : vector<128x32xf32>
    %137 = tpu.matmul %121, %136, %cst_61 {dimension_numbers = #tpu.dot_dimension_numbers<[1], [0], [0], [1], [0, 0, 1, 1], [], []>} : vector<128x8xbf16>, vector<8x32xbf16>, vector<128x32xf32> -> vector<128x32xf32>
    %138 = arith.truncf %131 : vector<128x128xf32> to vector<128x128xbf16>
    %139 = arith.truncf %137 : vector<128x32xf32> to vector<128x32xbf16>
    %cst_62 = arith.constant dense<0.000000e+00> : vector<128x32xf32>
    %140 = tpu.matmul %138, %139, %cst_62 {dimension_numbers = #tpu.dot_dimension_numbers<[1], [0], [0], [1], [0, 0, 1, 1], [], []>} : vector<128x128xbf16>, vector<128x32xbf16>, vector<128x32xf32> -> vector<128x32xf32>
    %141 = vector.broadcast %134 : vector<128x1xf32> to vector<128x32xf32>
    %142 = arith.mulf %140, %141 : vector<128x32xf32>
    %143 = arith.addf %118, %142 : vector<128x32xf32>
    %144 = arith.addf %3, %143 : vector<128x32xf32>
    %145 = vector.broadcast %9 : vector<1x32xf32> to vector<128x32xf32>
    %146 = arith.addf %144, %145 : vector<128x32xf32>
    %cst_63 = arith.constant dense<0.000000e+00> : vector<128xf32>
    %147 = vector.multi_reduction <add>, %146, %cst_63 [1] : vector<128x32xf32> to vector<128xf32>
    %148 = vector.shape_cast %147 : vector<128xf32> to vector<128x1xf32>
    %cst_64 = arith.constant 3.200000e+01 : f32
    %149 = vector.broadcast %cst_64 : f32 to vector<128x1xf32>
    %150 = arith.divf %148, %149 : vector<128x1xf32>
    %151 = vector.broadcast %150 : vector<128x1xf32> to vector<128x32xf32>
    %152 = arith.subf %146, %151 : vector<128x32xf32>
    %153 = arith.mulf %152, %152 : vector<128x32xf32>
    %cst_65 = arith.constant dense<0.000000e+00> : vector<128xf32>
    %154 = vector.multi_reduction <add>, %153, %cst_65 [1] : vector<128x32xf32> to vector<128xf32>
    %155 = vector.shape_cast %154 : vector<128xf32> to vector<128x1xf32>
    %cst_66 = arith.constant 3.200000e+01 : f32
    %156 = vector.broadcast %cst_66 : f32 to vector<128x1xf32>
    %157 = arith.divf %155, %156 : vector<128x1xf32>
    %158 = vector.broadcast %150 : vector<128x1xf32> to vector<128x32xf32>
    %159 = arith.subf %146, %158 : vector<128x32xf32>
    %cst_67 = arith.constant 9.99999974E-6 : f32
    %160 = vector.broadcast %cst_67 : f32 to vector<128x1xf32>
    %161 = arith.addf %157, %160 : vector<128x1xf32>
    %162 = math.rsqrt %161 : vector<128x1xf32>
    %163 = vector.broadcast %162 : vector<128x1xf32> to vector<128x32xf32>
    %164 = arith.mulf %159, %163 : vector<128x32xf32>
    %165 = vector.broadcast %10 : vector<1x32xf32> to vector<128x32xf32>
    %166 = arith.mulf %164, %165 : vector<128x32xf32>
    %167 = vector.broadcast %11 : vector<1x32xf32> to vector<128x32xf32>
    %168 = arith.addf %166, %167 : vector<128x32xf32>
    %169 = arith.truncf %168 : vector<128x32xf32> to vector<128x32xbf16>
    %c0_68 = arith.constant 0 : index
    %c0_69 = arith.constant 0 : index
    %c0_70 = arith.constant 0 : index
    %170 = vector.load %arg6[%c0_68, %c0_69, %c0_70] : memref<1x32x128xbf16, #tpu.memory_space<vmem>>, vector<1x32x128xbf16>
    %171 = vector.shape_cast %170 : vector<1x32x128xbf16> to vector<32x128xbf16>
    %cst_71 = arith.constant dense<0.000000e+00> : vector<128x128xf32>
    %172 = tpu.matmul %169, %171, %cst_71 {dimension_numbers = #tpu.dot_dimension_numbers<[1], [0], [0], [1], [0, 0, 1, 1], [], []>} : vector<128x32xbf16>, vector<32x128xbf16>, vector<128x128xf32> -> vector<128x128xf32>
    %173 = vector.broadcast %12 : vector<1x128xf32> to vector<128x128xf32>
    %174 = arith.addf %172, %173 : vector<128x128xf32>
    %cst_72 = arith.constant 5.000000e-01 : f32
    %175 = vector.broadcast %cst_72 : f32 to vector<128x128xf32>
    %176 = arith.mulf %175, %174 : vector<128x128xf32>
    %cst_73 = arith.constant 4.471500e-02 : f32
    %177 = vector.broadcast %cst_73 : f32 to vector<128x128xf32>
    %178 = arith.mulf %177, %174 : vector<128x128xf32>
    %179 = arith.mulf %178, %174 : vector<128x128xf32>
    %180 = arith.mulf %179, %174 : vector<128x128xf32>
    %181 = arith.addf %174, %180 : vector<128x128xf32>
    %cst_74 = arith.constant 0.797884583 : f32
    %182 = vector.broadcast %cst_74 : f32 to vector<128x128xf32>
    %183 = arith.mulf %182, %181 : vector<128x128xf32>
    %184 = math.tanh %183 : vector<128x128xf32>
    %cst_75 = arith.constant 1.000000e+00 : f32
    %185 = vector.broadcast %cst_75 : f32 to vector<128x128xf32>
    %186 = arith.addf %185, %184 : vector<128x128xf32>
    %187 = arith.mulf %176, %186 : vector<128x128xf32>
    %188 = arith.truncf %187 : vector<128x128xf32> to vector<128x128xbf16>
    %c0_76 = arith.constant 0 : index
    %c0_77 = arith.constant 0 : index
    %c0_78 = arith.constant 0 : index
    %189 = vector.load %arg7[%c0_76, %c0_77, %c0_78] : memref<1x128x32xbf16, #tpu.memory_space<vmem>>, vector<1x128x32xbf16>
    %190 = vector.shape_cast %189 : vector<1x128x32xbf16> to vector<128x32xbf16>
    %cst_79 = arith.constant dense<0.000000e+00> : vector<128x32xf32>
    %191 = tpu.matmul %188, %190, %cst_79 {dimension_numbers = #tpu.dot_dimension_numbers<[1], [0], [0], [1], [0, 0, 1, 1], [], []>} : vector<128x128xbf16>, vector<128x32xbf16>, vector<128x32xf32> -> vector<128x32xf32>
    %192 = vector.broadcast %13 : vector<1x32xf32> to vector<128x32xf32>
    %193 = arith.addf %191, %192 : vector<128x32xf32>
    %194 = arith.addf %146, %193 : vector<128x32xf32>
    %c0_80 = arith.constant 0 : index
    %c0_81 = arith.constant 0 : index
    %195 = vector.load %arg8[%c0_80, %c0_81] : memref<128x32xf32, #tpu.memory_space<vmem>>, vector<128x32xf32>
    tpu.vector_store %arg8[%c0_80, %c0_81], %194 {strides = array<i32>} : memref<128x32xf32, #tpu.memory_space<vmem>>, vector<128x32xf32>,
    return
  }
  func.func @transform_0(%arg0: i32) -> (i32, i32) {
    %c0_i32 = arith.constant 0 : i32
    %c0_i32_0 = arith.constant 0 : i32
    %c0_i32_1 = arith.constant 0 : i32
    return %c0_i32, %c0_i32_0 : i32, i32
  }
  func.func @transform_1(%arg0: i32) -> (i32, i32, i32, i32) {
    %c0_i32 = arith.constant 0 : i32
    %c0_i32_0 = arith.constant 0 : i32
    %c0_i32_1 = arith.constant 0 : i32
    %c0_i32_2 = arith.constant 0 : i32
    return %arg0, %c0_i32, %c0_i32_0, %c0_i32_1 : i32, i32, i32, i32
  }
  func.func @transform_2(%arg0: i32) -> (i32, i32, i32) {
    %c0_i32 = arith.constant 0 : i32
    %c0_i32_0 = arith.constant 0 : i32
    %c0_i32_1 = arith.constant 0 : i32
    return %arg0, %c0_i32, %c0_i32_0 : i32, i32, i32
  }
  func.func @transform_3(%arg0: i32) -> (i32, i32, i32) {
    %c0_i32 = arith.constant 0 : i32
    %c0_i32_0 = arith.constant 0 : i32
    %c0_i32_1 = arith.constant 0 : i32
    return %arg0, %c0_i32, %c0_i32_0 : i32, i32, i32
  }
  func.func @transform_4(%arg0: i32) -> (i32, i32, i32, i32) {
    %c0_i32 = arith.constant 0 : i32
    %c0_i32_0 = arith.constant 0 : i32
    %c0_i32_1 = arith.constant 0 : i32
    %c0_i32_2 = arith.constant 0 : i32
    return %arg0, %c0_i32, %c0_i32_0, %c0_i32_1 : i32, i32, i32, i32
  }
  func.func @transform_5(%arg0: i32) -> (i32, i32, i32) {
    %c0_i32 = arith.constant 0 : i32
    %c0_i32_0 = arith.constant 0 : i32
    %c0_i32_1 = arith.constant 0 : i32
    return %arg0, %c0_i32, %c0_i32_0 : i32, i32, i32
  }
  func.func @transform_6(%arg0: i32) -> (i32, i32, i32) {
    %c0_i32 = arith.constant 0 : i32
    %c0_i32_0 = arith.constant 0 : i32
    %c0_i32_1 = arith.constant 0 : i32
    return %arg0, %c0_i32, %c0_i32_0 : i32, i32, i32
  }
  func.func @transform_7(%arg0: i32) -> (i32, i32) {
    %c0_i32 = arith.constant 0 : i32
    %c0_i32_0 = arith.constant 0 : i32
    %c0_i32_1 = arith.constant 0 : i32
    return %c0_i32, %c0_i32_0 : i32, i32
  }
}

</mosaic_0001>

<bundles_post_ra>
// kernel: swin_depth_stack.1
= control target key start
LH: loop header
LB: loop body
LE: loop exit
PB: predicated region body
PF: predicated region fallthrough
CT: control target
= control target key end

     0   :  { %12 = vsyncpa [#allocation3], 0  ;;  %s7831_s0 = inlined_call_operand.vmem [shape: f32[128,32], index: 0, kind: input, shape index: {}]   ;;  %s7832_s1 = inlined_call_operand.hbm [shape: bf16[2,4,128,128], index: 1, kind: input, shape index: {}]   ;;  %s7833_s2 = inlined_call_operand.vmem [shape: f32[2,8,128], index: 2, kind: input, shape index: {}]   ;;  %s7834_s3 = inlined_call_operand.vmem [shape: bf16[2,32,96], index: 3, kind: input, shape index: {}]   ;;  %s7835_s4 = inlined_call_operand.vmem [shape: bf16[2,4,8,32], index: 4, kind: input, shape index: {}]   ;;  %s7836_s5 = inlined_call_operand.vmem [shape: bf16[2,32,128], index: 5, kind: input, shape index: {}]   ;;  %s7837_s6 = inlined_call_operand.vmem [shape: bf16[2,128,32], index: 6, kind: input, shape index: {}]   ;;  %s7838_s7 = inlined_call_operand.vmem [shape: f32[128,32], index: 7, kind: output, shape index: {}]  }
   0x1   :  { %14 = vsyncpa [#allocation3 + $0x1], 0  ;;  %s5733_s24 = smov 0   ;;  %s5735_s25 = smov 0  }
   0x2   :  { %s5737_s26 = smov 0   ;;  %s5739_s27 = smov 0  }
   0x3 LB: > { %s5752_s28 = sadd.s32 4294967295, %s5677_s27   ;;  %s5755_s29 = sadd.s32 1, %s5677_s27   ;;  %s5677_s27 = sphi %s5739_s27, %s7973_s27   ;;  %s5673_s26 = sphi %s5737_s26, %s7972_s26   ;;  %s5669_s25 = sphi %s5735_s25, %s7971_s25   ;;  %s5665_s24 = sphi %s5733_s24, %s7970_s24  }
   0x4   : > { %s45_s30 = ssub.s32 %s5677_s27, %s5755_s29  ;;  %s48_s8 = sadd.s32 1, %s5673_s26 }
   0x5   : > { %p46_p0 = scmp.eq.s32.totalorder %s45_s30, 0  ;;  %p55_p1 = scmp.ne.s32.totalorder %s5673_s26, %s5669_s25 }
   0x6   : > { %p56_p2 = scmp.eq.s32.totalorder %s5677_s27, 0  ;;  %p61_p3 = scmp.ne.s32.totalorder %s5669_s25, %s5665_s24 }
   0x7   : > { %s5765_s9 = scalar_select %p46_p0, %s5673_s26, %s48_s8  }
   0x8   : > { %p57_p4 = por %p56_p2, %p55_p1  ;;  %p62_p5 = scmp.eq.s32.totalorder %s5752_s28, 0 }
   0x9   : > { %p5185_p6 = scmp.lt.s32.totalorder %s5677_s27, 2  ;;  %s239_s11 = sand.u32 1, %s5673_s26  }
   0xa   : > { %p5769_p7 = por %p62_p5, %p61_p3  ;;  %s4219_s12 = sshll.u32 %s239_s11, 8 }
   0xb   : > { %s4379_s13 = sshll.u32 %s5677_s27, 12  ;;  %s243_s17 = scalar_lea.vmem [#allocation2], %s4219_s12 }
   0xc   : > { %s5778_s16 = scalar_lea.hbm %s7832_s1, %s4379_s13  ;;  %s250_s18 = sshll.u32 %s243_s17, 4  ;;  %s5780_s18 = int_to_ptr.vmem [resolvable:$true] %s250_s18 }
   0xd   : > { %p5782_p8 = pnand %p5185_p6, %p57_p4  ;;  %s5787_s20 = scalar_lea.sflag [#allocation3], %s239_s11 }
   0xe   : > { %s5613_s21 = scalar_lea.hbm %s5778_s16, 4096  ;;  %s5618_s24 = scalar_lea.hbm %s7832_s1, 8192 }
   0xf   : > { %p5614_p10 = scmp.ne.s32.totalorder %s5778_s16, %s5613_s21  ;;  %p5615_p11 = pneg %p5782_p8 }
  0x10   : > { %p5619_p0 = scmp.lt.u32.totalorder %s5778_s16, %s7832_s1  ;;  %p5620_p1 = scmp.lt.u32.totalorder %s5618_s24, %s5613_s21 }
  0x11   : > { %p5616_p12 = pnand %p5615_p11, %p5614_p10  ;;  %p5622_p3 = scmp.lt.u32.totalorder %s5613_s21, %s5778_s16 }
  0x12   : > { %p5621_p2 = por %p5620_p1, %p5619_p0 }
  0x13   : > { %p5617_p13 = pneg %p5616_p12 }
  0x14   : > { %p5623_p4 = por %p5622_p3, %p5621_p2 }
  0x16   : > { %p5624_p5 = pnand %p5623_p4, %p5617_p13 }
  0x18   : > { %5627 = shalt.err (!%p5624_p5)
}
  0x19   : > { %s5628_s11 = scalar_lea.vmem %s5780_s18, 4096  ;;  %s5679_s12 = smov [#allocation2]  }
  0x1a   : > { %p5629_p6 = scmp.ne.s32.totalorder %s5780_s18, %s5628_s11  ;;  %s5633_s13 = sshll.u32 %s5679_s12, 4  ;;  %s5634_s13 = int_to_ptr.vmem [resolvable:$false] %s5633_s13 }
  0x1b   : > { %s5635_s14 = scalar_lea.vmem %s5634_s13, 8192  ;;  %p5636_p9 = scmp.lt.s32.totalorder %s5780_s18, %s5634_s13 }
  0x1c   : > { %p5631_p10 = pnand %p5629_p6, %p5615_p11  ;;  %p5637_p0 = scmp.lt.s32.totalorder %s5635_s14, %s5628_s11 }
  0x1e   : > { %p5632_p12 = pneg %p5631_p10  ;;  %p5638_p1 = por %p5637_p0, %p5636_p9 }
  0x20   : > { %p5639_p2 = pnand %p5638_p1, %p5632_p12 }
  0x22   : > { %5642 = shalt.err (!%p5639_p2)
}
  0x23   : > { %s5680_s15 = smov 64   ;;  %s5681_s17 = smov 4  }
  0x24   : > { %5184 = dma.hbm_to_vmem [thread:$0]  (!%p5782_p8), %s5778_s16, 4096, %s5780_s18, %s5787_s20, %s5680_s15, %s5680_s15, %s5681_s17  }
  0x25   : > { %p297_p11 = scmp.lt.s32.totalorder %s5677_s27, 3  ;;  %p7855_p13 = scmp.ge.s32.totalorder %s5677_s27, 1 }
  0x27   : > { %p298_p3 = pnand %p7855_p13, %p297_p11 }
  0x29   : > { %301 = sbr.rel (%p298_p3) target bundleno = 3295 (0xcdf), region = 48 }
  0x30   : > { %s303_s21 = sand.u32 1, %s5669_s25  }
  0x31   : > { %s4223_s22 = sshll.u32 %s303_s21, 8  ;;  %s304_s23 = scalar_lea.sflag [#allocation3], %s303_s21 }
  0x32   : > { %s5819_s24 = scalar_lea.vmem [#allocation2], %s4223_s22 }
  0x33   : > { %5660 = dma.done.wait (%p5769_p7), %s304_s23, 4096  }
  0x34   : > { %5662 = vsyncadd (%p5769_p7), %s304_s23, 4294963200  ;;  %p357_p9 = scmp.lt.s32.totalorder %s5752_s28, 1  ;;  %p4233_p7 = scmp.ne.s32.totalorder %s5752_s28, 0 }
  0x35   : > { %v386_v0 = vld [vmem:[%s7831_s0] sm:$0xff] (!%p4233_p7)  ;;  %vm402_vm0 = vcmask (!%p4233_p7), 261120   ;;  %v387_v1 = vld [vmem:[%s7831_s0 + $0x8] sm:$0xff] (!%p4233_p7)  ;;  %v388_v2 = vld [vmem:[%s7831_s0 + $0x10] sm:$0xff] (!%p4233_p7) }
  0x36   : > { %s358_s16 = scalar_select %p357_p9, %s5752_s28, 1 }
  0x37   : > { %385 = sbr.rel (%p4233_p7) target bundleno = 63 (0x3f), region = 56  ;;  %403 = vst.msk [vmem:[%s7838_s7] sm:$0xff] (!%p4233_p7), %vm402_vm0, %v386_v0  ;;  %404 = vst.msk [vmem:[%s7838_s7 + $0x8] sm:$0xff] (!%p4233_p7), %vm402_vm0, %v387_v1  ;;  %v389_v3 = vld [vmem:[%s7831_s0 + $0x18] sm:$0xff] (!%p4233_p7)  ;;  %v390_v4 = vld [vmem:[%s7831_s0 + $0x20] sm:$0xff] (!%p4233_p7) }
  0x38   : > { %s4224_s18 = sshll.u32 %s358_s16, 3  ;;  %s4380_s27 = sshll.u32 %s358_s16, 4  ;;  %405 = vst.msk [vmem:[%s7838_s7 + $0x10] sm:$0xff] (!%p4233_p7), %vm402_vm0, %v388_v2  ;;  %v391_v5 = vld [vmem:[%s7831_s0 + $0x28] sm:$0xff] (!%p4233_p7)  ;;  %406 = vst.msk [vmem:[%s7838_s7 + $0x18] sm:$0xff] (!%p4233_p7), %vm402_vm0, %v389_v3  ;;  %v392_v6 = vld [vmem:[%s7831_s0 + $0x30] sm:$0xff] (!%p4233_p7) }
  0x39   : > { %s5830_s30 = scalar_lea.vmem %s7833_s2, %s4224_s18  ;;  %s5835_s12 = scalar_lea.vmem %s7834_s3, %s4380_s27  ;;  %407 = vst.msk [vmem:[%s7838_s7 + $0x20] sm:$0xff] (!%p4233_p7), %vm402_vm0, %v390_v4  ;;  %408 = vst.msk [vmem:[%s7838_s7 + $0x28] sm:$0xff] (!%p4233_p7), %vm402_vm0, %v391_v5  ;;  %v393_v7 = vld [vmem:[%s7831_s0 + $0x38] sm:$0xff] (!%p4233_p7)  ;;  %v394_v8 = vld [vmem:[%s7831_s0 + $0x40] sm:$0xff] (!%p4233_p7) }
  0x3a   : > { %s5840_s10 = scalar_lea.vmem %s7835_s4, %s4380_s27  ;;  %s5845_s21 = scalar_lea.vmem %s7836_s5, %s4380_s27  ;;  %409 = vst.msk [vmem:[%s7838_s7 + $0x30] sm:$0xff] (!%p4233_p7), %vm402_vm0, %v392_v6  ;;  %410 = vst.msk [vmem:[%s7838_s7 + $0x38] sm:$0xff] (!%p4233_p7), %vm402_vm0, %v393_v7  ;;  %v395_v9 = vld [vmem:[%s7831_s0 + $0x48] sm:$0xff] (!%p4233_p7)  ;;  %v396_v10 = vld [vmem:[%s7831_s0 + $0x50] sm:$0xff] (!%p4233_p7) }
  0x3b   : > { %s4383_s22 = sshll.u32 %s358_s16, 6  ;;  %411 = vst.msk [vmem:[%s7838_s7 + $0x40] sm:$0xff] (!%p4233_p7), %vm402_vm0, %v394_v8  ;;  %v397_v11 = vld [vmem:[%s7831_s0 + $0x58] sm:$0xff] (!%p4233_p7)  ;;  %412 = vst.msk [vmem:[%s7838_s7 + $0x48] sm:$0xff] (!%p4233_p7), %vm402_vm0, %v395_v9  ;;  %v398_v12 = vld [vmem:[%s7831_s0 + $0x60] sm:$0xff] (!%p4233_p7) }
  0x3c   : > { %s5850_s18 = scalar_lea.vmem %s7837_s6, %s4383_s22  ;;  %413 = vst.msk [vmem:[%s7838_s7 + $0x50] sm:$0xff] (!%p4233_p7), %vm402_vm0, %v396_v10  ;;  %414 = vst.msk [vmem:[%s7838_s7 + $0x58] sm:$0xff] (!%p4233_p7), %vm402_vm0, %v397_v11  ;;  %v399_v13 = vld [vmem:[%s7831_s0 + $0x68] sm:$0xff] (!%p4233_p7)  ;;  %v400_v14 = vld [vmem:[%s7831_s0 + $0x70] sm:$0xff] (!%p4233_p7) }
  0x3d   : > { %415 = vst.msk [vmem:[%s7838_s7 + $0x60] sm:$0xff] (!%p4233_p7), %vm402_vm0, %v398_v12  ;;  %416 = vst.msk [vmem:[%s7838_s7 + $0x68] sm:$0xff] (!%p4233_p7), %vm402_vm0, %v399_v13  ;;  %v401_v15 = vld [vmem:[%s7831_s0 + $0x78] sm:$0xff] (!%p4233_p7) }
  0x3e   : > { %417 = vst.msk [vmem:[%s7838_s7 + $0x70] sm:$0xff] %vm402_vm0, %v400_v14  ;;  %418 = vst.msk [vmem:[%s7838_s7 + $0x78] sm:$0xff] %vm402_vm0, %v401_v15 }
  0x3f PF: > { %v419_v16 = vld [vmem:[%s7838_s7] sm:$0xff]  ;;  %vm436_vm1 = vcmask 261120   ;;  %v420_v18 = vld [vmem:[%s7838_s7 + $0x8] sm:$0xff]  ;;  %vm899_vm2 = vcmask 64512   ;;  %vm1214_vm3 = vcmask 1043456   ;;  %s5683_s14 = smov 64  }
  0x40   : > { %v421_v17 = vld [vmem:[%s7838_s7 + $0x10] sm:$0xff]  ;;  %v437_v19 = vsel %vm436_vm1, %v419_v16, 0.0  ;;  %v422_v21 = vld [vmem:[%s7838_s7 + $0x18] sm:$0xff]  ;;  %v440_v24 = vsel %vm436_vm1, %v420_v18, 0.0  ;;  %s5684_s16 = smov 88   ;;  %s5685_s15 = smov 120  }
  0x41   : > { %v443_v20 = vsel %vm436_vm1, %v421_v17, 0.0  ;;  %438 = vadd.xlane.f32.xlu0 %v437_v19  ;;  %v5982_v22 = vld [vmem:[%s7838_s7 + $0x20] sm:$0xff]  ;;  %v5987_v23 = vld [vmem:[%s7838_s7 + $0x28] sm:$0xff]  ;;  %v446_v25 = vsel %vm436_vm1, %v422_v21, 0.0  ;;  %s5686_s28 = smov 56   ;;  %s5687_s17 = smov 80  }
  0x42   : > { %444 = vadd.xlane.f32.xlu1 %v443_v20  ;;  %v5994_v26 = vld [vmem:[%s7838_s7 + $0x30] sm:$0xff]  ;;  %v5999_v27 = vld [vmem:[%s7838_s7 + $0x38] sm:$0xff]  ;;  %v449_v28 = vsel %vm436_vm1, %v5982_v22, 0.0  ;;  %v452_v29 = vsel %vm436_vm1, %v5987_v23, 0.0  ;;  %s5688_s22 = smov 112   ;;  %s5689_s23 = smov 48  }
  0x43   : > { %v455_v30 = vsel %vm436_vm1, %v5994_v26, 0.0  ;;  %v458_v31 = vsel %vm436_vm1, %v5999_v27, 0.0  ;;  %v6012_v32 = vld [vmem:[%s7838_s7 + $0x40] sm:$0xff]  ;;  %v6017_v33 = vld [vmem:[%s7838_s7 + $0x48] sm:$0xff]  ;;  %s5690_s19 = smov 72   ;;  %s5691_s20 = smov 104  }
  0x44   : > { %v461_v34 = vsel %vm436_vm1, %v6012_v32, 0.0  ;;  %v464_v35 = vsel %vm436_vm1, %v6017_v33, 0.0  ;;  %v6026_v36 = vld [vmem:[%s7838_s7 + $0x50] sm:$0xff]  ;;  %v6031_v37 = vld [vmem:[%s7838_s7 + $0x58] sm:$0xff]  ;;  %s5692_s8 = smov 40  }
  0x45   : > { %441 = vadd.xlane.f32.xlu0 %v440_v24  ;;  %v467_v38 = vsel %vm436_vm1, %v6026_v36, 0.0  ;;  %v470_v39 = vsel %vm436_vm1, %v6031_v37, 0.0  ;;  %v6040_v40 = vld [vmem:[%s7838_s7 + $0x60] sm:$0xff]  ;;  %v6045_v41 = vld [vmem:[%s7838_s7 + $0x68] sm:$0xff]  ;;  %v6054_v44 = vld [vmem:[%s7838_s7 + $0x70] sm:$0xff] }
  0x46   : > { %447 = vadd.xlane.f32.xlu1 %v446_v25  ;;  %v473_v42 = vsel %vm436_vm1, %v6040_v40, 0.0  ;;  %v476_v43 = vsel %vm436_vm1, %v6045_v41, 0.0  ;;  %v6059_v45 = vld [vmem:[%s7838_s7 + $0x78] sm:$0xff]  ;;  %v479_v46 = vsel %vm436_vm1, %v6054_v44, 0.0 }
  0x47   : > { %v482_v47 = vsel %vm436_vm1, %v6059_v45, 0.0 }
  0x49   : > { %450 = vadd.xlane.f32.xlu0 %v449_v28 }
  0x4a   : > { %453 = vadd.xlane.f32.xlu1 %v452_v29 }
  0x4d   : > { %456 = vadd.xlane.f32.xlu0 %v455_v30 }
  0x4e   : > { %459 = vadd.xlane.f32.xlu1 %v458_v31 }
  0x51   : > { %462 = vadd.xlane.f32.xlu0 %v461_v34 }
  0x52   : > { %465 = vadd.xlane.f32.xlu1 %v464_v35 }
  0x55   : > { %468 = vadd.xlane.f32.xlu0 %v467_v38 }
  0x56   : > { %471 = vadd.xlane.f32.xlu1 %v470_v39 }
  0x59   : > { %474 = vadd.xlane.f32.xlu0 %v473_v42 }
  0x5a   : > { %477 = vadd.xlane.f32.xlu1 %v476_v43 }
  0x5d   : > { %480 = vadd.xlane.f32.xlu0 %v479_v46 }
  0x5e   : > { %483 = vadd.xlane.f32.xlu1 %v482_v47 }
  0xce   : > { %v439_v48 = vpop.xlane.xlu0 %438 }
  0xcf   : > { %v445_v49 = vpop.xlane.xlu1 %444  ;;  %v486_v50 = vmul.f32 0.03125, %v439_v48 }
  0xd0   : > { %v488_v51 = vmul.f32 0.03125, %v445_v49 }
  0xd1   : > { %v6065_v52 = vsub.f32 %v419_v16, %v486_v50 }
  0xd2   : > { %v6067_v53 = vsub.f32 %v421_v17, %v488_v51  ;;  %v442_v54 = vpop.xlane.xlu0 %441 }
  0xd3   : > { %v448_v55 = vpop.xlane.xlu1 %447  ;;  %v487_v56 = vmul.f32 0.03125, %v442_v54  ;;  %v518_v58 = vmul.f32 %v6065_v52, %v6065_v52 }
  0xd4   : > { %v489_v57 = vmul.f32 0.03125, %v448_v55  ;;  %v520_v59 = vmul.f32 %v6067_v53, %v6067_v53 }
  0xd5   : > { %v6073_v60 = vsub.f32 %v420_v18, %v487_v56  ;;  %v534_v62 = vsel %vm436_vm1, %v518_v58, 0.0 }
  0xd6   : > { %v6075_v61 = vsub.f32 %v422_v21, %v489_v57  ;;  %535 = vadd.xlane.f32.xlu0 %v534_v62  ;;  %v451_v63 = vpop.xlane.xlu0 %450  ;;  %v540_v1 = vsel %vm436_vm1, %v520_v59, 0.0 }
  0xd7   : > { %v454_v0 = vpop.xlane.xlu1 %453  ;;  %v490_v2 = vmul.f32 0.03125, %v451_v63  ;;  %v519_v4 = vmul.f32 %v6073_v60, %v6073_v60 }
  0xd8   : > { %v491_v3 = vmul.f32 0.03125, %v454_v0  ;;  %v521_v5 = vmul.f32 %v6075_v61, %v6075_v61 }
  0xd9   : > { %v6084_v6 = vsub.f32 %v5982_v22, %v490_v2  ;;  %v537_v8 = vsel %vm436_vm1, %v519_v4, 0.0 }
  0xda   : > { %v6087_v7 = vsub.f32 %v5987_v23, %v491_v3  ;;  %541 = vadd.xlane.f32.xlu0 %v540_v1  ;;  %538 = vadd.xlane.f32.xlu1 %v537_v8  ;;  %v457_v9 = vpop.xlane.xlu0 %456  ;;  %v543_v11 = vsel %vm436_vm1, %v521_v5, 0.0  ;;  %v5232_v5 = vld [vmem:[%s5835_s12 + $0x8] sm:$0xff]  }
  0xdb   : > { %v460_v10 = vpop.xlane.xlu1 %459  ;;  %v492_v12 = vmul.f32 0.03125, %v457_v9  ;;  %v522_v14 = vmul.f32 %v6084_v6, %v6084_v6 }
  0xdc   : > { %v493_v13 = vmul.f32 0.03125, %v460_v10  ;;  %v523_v15 = vmul.f32 %v6087_v7, %v6087_v7 }
  0xdd   : > { %v6096_v16 = vsub.f32 %v5994_v26, %v492_v12  ;;  %v546_v18 = vsel %vm436_vm1, %v522_v14, 0.0 }
  0xde   : > { %v6099_v17 = vsub.f32 %v5999_v27, %v493_v13  ;;  %544 = vadd.xlane.f32.xlu1 %v543_v11  ;;  %547 = vadd.xlane.f32.xlu0 %v546_v18  ;;  %v463_v19 = vpop.xlane.xlu0 %462  ;;  %v549_v21 = vsel %vm436_vm1, %v523_v15, 0.0  ;;  %v646_v13 = vlaneseq }
  0xdf   : > { %v466_v20 = vpop.xlane.xlu1 %465  ;;  %v494_v22 = vmul.f32 0.03125, %v463_v19  ;;  %v524_v24 = vmul.f32 %v6096_v16, %v6096_v16 }
  0xe0   : > { %v495_v23 = vmul.f32 0.03125, %v466_v20  ;;  %v525_v25 = vmul.f32 %v6099_v17, %v6099_v17 }
  0xe1   : > { %v6108_v26 = vsub.f32 %v6012_v32, %v494_v22  ;;  %v552_v28 = vsel %vm436_vm1, %v524_v24, 0.0  ;;  %v6159_v22 = vshrl.u32 %v646_v13, 7 }
  0xe2   : > { %v6111_v27 = vsub.f32 %v6017_v33, %v495_v23  ;;  %550 = vadd.xlane.f32.xlu1 %v549_v21  ;;  %553 = vadd.xlane.f32.xlu0 %v552_v28  ;;  %v469_v29 = vpop.xlane.xlu0 %468  ;;  %v555_v31 = vsel %vm436_vm1, %v525_v25, 0.0 }
  0xe3   : > { %v472_v30 = vpop.xlane.xlu1 %471  ;;  %v496_v34 = vmul.f32 0.03125, %v469_v29  ;;  %v526_v38 = vmul.f32 %v6108_v26, %v6108_v26  ;;  %7856 = vst [vmem:[#allocation5_spill] sm:$0xff] %v6159_v22 }
  0xe4   : > { %v497_v35 = vmul.f32 0.03125, %v472_v30  ;;  %v527_v32 = vmul.f32 %v6111_v27, %v6111_v27 }
  0xe5   : > { %v6120_v39 = vsub.f32 %v6026_v36, %v496_v34  ;;  %v558_v42 = vsel %vm436_vm1, %v526_v38, 0.0  ;;  %v6163_v38 = vld [vmem:[%s5830_s30] sm:$0xff] }
  0xe6   : > { %v6123_v33 = vsub.f32 %v6031_v37, %v497_v35  ;;  %556 = vadd.xlane.f32.xlu1 %v555_v31  ;;  %559 = vadd.xlane.f32.xlu0 %v558_v42  ;;  %v475_v43 = vpop.xlane.xlu0 %474  ;;  %v561_v47 = vsel %vm436_vm1, %v527_v32, 0.0  ;;  %v648_v31 = vsub.s32 0, %v6159_v22 }
  0xe7   : > { %v478_v46 = vpop.xlane.xlu1 %477  ;;  %v498_v48 = vmul.f32 0.03125, %v475_v43  ;;  %v528_v50 = vmul.f32 %v6120_v39, %v6120_v39 }
  0xe8   : > { %v499_v49 = vmul.f32 0.03125, %v478_v46  ;;  %v529_v36 = vmul.f32 %v6123_v33, %v6123_v33 }
  0xe9   : > { %v6132_v51 = vsub.f32 %v6040_v40, %v498_v48  ;;  %v564_v54 = vsel %vm436_vm1, %v528_v50, 0.0  ;;  %v668_v50 = vsub.s32 1, %v6159_v22 }
  0xea   : > { %v6135_v37 = vsub.f32 %v6045_v41, %v499_v49  ;;  %562 = vadd.xlane.f32.xlu1 %v561_v47  ;;  %565 = vadd.xlane.f32.xlu0 %v564_v54  ;;  %v481_v55 = vpop.xlane.xlu0 %480  ;;  %v567_v57 = vsel %vm436_vm1, %v529_v36, 0.0  ;;  %v6167_v49 = vrot.slane %v6163_v38, %v648_v31 }
  0xeb   : > { %v484_v56 = vpop.xlane.xlu1 %483  ;;  %v500_v58 = vmul.f32 0.03125, %v481_v55  ;;  %v530_v62 = vmul.f32 %v6132_v51, %v6132_v51 }
  0xec   : > { %v501_v59 = vmul.f32 0.03125, %v484_v56  ;;  %v531_v40 = vmul.f32 %v6135_v37, %v6135_v37 }
  0xed   : > { %v6144_v41 = vsub.f32 %v6054_v44, %v500_v58  ;;  %v570_v0 = vsel %vm436_vm1, %v530_v62, 0.0 }
  0xee   : > { %v6147_v63 = vsub.f32 %v6059_v45, %v501_v59  ;;  %568 = vadd.xlane.f32.xlu1 %v567_v57  ;;  %571 = vadd.xlane.f32.xlu0 %v570_v0  ;;  %v573_v1 = vsel %vm436_vm1, %v531_v40, 0.0  ;;  %v5231_v45 = vld [vmem:[%s5835_s12] sm:$0xff]   ;;  %s5682_s12 = smov 96  }
  0xef   : > { %v532_v2 = vmul.f32 %v6144_v41, %v6144_v41  ;;  %4743 = vmatprep.subr.bf16.mxu0 %v5231_v45 }
  0xf0   : > { %v533_v3 = vmul.f32 %v6147_v63, %v6147_v63  ;;  %4744 = vmatpush3.bf16.msra.mxu0 %v5231_v45 }
  0xf1   : > { %v576_v4 = vsel %vm436_vm1, %v532_v2, 0.0  ;;  %4745 = vmatprep.subr.bf16.mxu0 %v5232_v5 }
  0xf2   : > { %574 = vadd.xlane.f32.xlu1 %v573_v1  ;;  %577 = vadd.xlane.f32.xlu0 %v576_v4  ;;  %v579_v44 = vsel %vm436_vm1, %v533_v3, 0.0 }
  0xf4   : > { %4746 = vmatpush3.bf16.msra.mxu0 %v5232_v5 }
  0xf6   : > { %580 = vadd.xlane.f32.xlu1 %v579_v44 }
 0x163   : > { %v536_v8 = vpop.xlane.xlu0 %535 }
 0x164   : > { %v582_v9 = vmul.f32 0.03125, %v536_v8 }
 0x166   : > { %v598_v10 = vadd.f32 1e-05, %v582_v9 }
 0x167   : > { %v539_v11 = vpop.xlane.xlu1 %538  ;;  %v542_v12 = vpop.xlane.xlu0 %541 }
 0x168   : > { %5243 = vrsqrt.f32 %v598_v10  ;;  %v583_v14 = vmul.f32 0.03125, %v539_v11  ;;  %v584_v15 = vmul.f32 0.03125, %v542_v12 }
 0x16a   : > { %v599_v18 = vadd.f32 1e-05, %v583_v14  ;;  %v600_v19 = vadd.f32 1e-05, %v584_v15 }
 0x16b   : > { %v545_v20 = vpop.xlane.xlu1 %544  ;;  %v548_v21 = vpop.xlane.xlu0 %547 }
 0x16c   : > { %5245 = vrsqrt.f32 %v599_v18  ;;  %v585_v23 = vmul.f32 0.03125, %v545_v20  ;;  %v586_v24 = vmul.f32 0.03125, %v548_v21 }
 0x16d   : > { %5247 = vrsqrt.f32 %v600_v19 }
 0x16e   : > { %v601_v25 = vadd.f32 1e-05, %v585_v23  ;;  %v602_v28 = vadd.f32 1e-05, %v586_v24 }
 0x16f   : > { %v551_v29 = vpop.xlane.xlu1 %550  ;;  %v554_v30 = vpop.xlane.xlu0 %553 }
 0x170   : > { %5249 = vrsqrt.f32 %v601_v25  ;;  %v587_v34 = vmul.f32 0.03125, %v551_v29  ;;  %v588_v35 = vmul.f32 0.03125, %v554_v30 }
 0x171   : > { %5251 = vrsqrt.f32 %v602_v28 }
 0x172   : > { %v5244_v32 = vpop.eup %5243  ;;  %v603_v42 = vadd.f32 1e-05, %v587_v34  ;;  %v604_v43 = vadd.f32 1e-05, %v588_v35 }
 0x173   : > { %v557_v46 = vpop.xlane.xlu1 %556  ;;  %v560_v47 = vpop.xlane.xlu0 %559  ;;  %v630_v48 = vmul.f32 %v5244_v32, %v6065_v52  ;;  %v6173_v52 = vrot.slane %v6163_v38, %v668_v50 }
 0x174   : > { %5253 = vrsqrt.f32 %v603_v42  ;;  %v589_v36 = vmul.f32 0.03125, %v557_v46  ;;  %v590_v54 = vmul.f32 0.03125, %v560_v47 }
 0x175   : > { %5255 = vrsqrt.f32 %v604_v43  ;;  %v650_v0 = vmul.f32 %v6167_v49, %v630_v48 }
 0x176   : > { %v5246_v55 = vpop.eup %5245  ;;  %v605_v56 = vadd.f32 1e-05, %v589_v36  ;;  %v606_v57 = vadd.f32 1e-05, %v590_v54 }
 0x177   : > { %v5248_v58 = vpop.eup %5247  ;;  %v563_v59 = vpop.xlane.xlu1 %562  ;;  %v631_v40 = vmul.f32 %v5246_v55, %v6073_v60  ;;  %v670_v60 = vadd.f32 %v6173_v52, %v650_v0 }
 0x178   : > { %v566_v62 = vpop.xlane.xlu0 %565  ;;  %5257 = vrsqrt.f32 %v605_v56  ;;  %v591_v1 = vmul.f32 0.03125, %v563_v59  ;;  %v632_v3 = vmul.f32 %v5248_v58, %v6067_v53 }
 0x179   : > { %v592_v2 = vmul.f32 0.03125, %v566_v62  ;;  %5259 = vrsqrt.f32 %v606_v57  ;;  %v651_v4 = vmul.f32 %v6167_v49, %v631_v40 }
 0x17a   : > { %v5250_v44 = vpop.eup %5249  ;;  %v607_v45 = vadd.f32 1e-05, %v591_v1  ;;  %v652_v13 = vmul.f32 %v6167_v49, %v632_v3 }
 0x17b   : > { %v608_v5 = vadd.f32 1e-05, %v592_v2  ;;  %v5252_v8 = vpop.eup %5251  ;;  %v569_v9 = vpop.xlane.xlu1 %568  ;;  %v671_v11 = vadd.f32 %v6173_v52, %v651_v4  ;;  %v633_v12 = vmul.f32 %v5250_v44, %v6075_v61 }
 0x17c   : > { %v572_v10 = vpop.xlane.xlu0 %571  ;;  %5261 = vrsqrt.f32 %v607_v45  ;;  %v593_v14 = vmul.f32 0.03125, %v569_v9  ;;  %v634_v19 = vmul.f32 %v5252_v8, %v6084_v6  ;;  %v672_v61 = vadd.f32 %v6173_v52, %v652_v13 }
 0x17d   : > { %v594_v53 = vmul.f32 0.03125, %v572_v10  ;;  %5263 = vrsqrt.f32 %v608_v5  ;;  %v686_v15 = vpack.c.bf16 %v671_v11, %v670_v60  ;;  %v653_v18 = vmul.f32 %v6167_v49, %v633_v12 }
 0x17e   : > { %v5254_v20 = vpop.eup %5253  ;;  %v609_v21 = vadd.f32 1e-05, %v593_v14  ;;  %v654_v31 = vmul.f32 %v6167_v49, %v634_v19 }
 0x17f   : > { %v610_v23 = vadd.f32 1e-05, %v594_v53  ;;  %v5256_v24 = vpop.eup %5255  ;;  %v575_v25 = vpop.xlane.xlu1 %574  ;;  %4747 = vmatprep.mubr.msk.bf16.mxu0 %vm436_vm1, %v686_v15  ;;  %v673_v29 = vadd.f32 %v6173_v52, %v653_v18  ;;  %v635_v30 = vmul.f32 %v5254_v20, %v6087_v7 }
 0x180   : > { %v578_v28 = vpop.xlane.xlu0 %577  ;;  %5265 = vrsqrt.f32 %v609_v21  ;;  %v595_v34 = vmul.f32 0.03125, %v575_v25  ;;  %v636_v6 = vmul.f32 %v5256_v24, %v6096_v16  ;;  %v674_v7 = vadd.f32 %v6173_v52, %v654_v31 }
 0x181   : > { %v596_v35 = vmul.f32 0.03125, %v578_v28  ;;  %5267 = vrsqrt.f32 %v610_v23  ;;  %v687_v32 = vpack.c.bf16 %v673_v29, %v672_v61  ;;  %v655_v42 = vmul.f32 %v6167_v49, %v635_v30 }
 0x182   : > { %v5258_v43 = vpop.eup %5257  ;;  %v611_v46 = vadd.f32 1e-05, %v595_v34  ;;  %v656_v55 = vmul.f32 %v6167_v49, %v636_v6  ;;  %v700_v29 = vsub.s32 2, %v6159_v22 }
 0x183   : > { %v612_v47 = vadd.f32 1e-05, %v596_v35  ;;  %v5260_v48 = vpop.eup %5259  ;;  %v581_v50 = vpop.xlane.xlu1 %580  ;;  %4748 = vmatmul.mubr.msk.bf16.vlgmr.msra.gmra.mrb[0].mxu0 %vm436_vm1, %v687_v32  ;;  %v675_v36 = vadd.f32 %v6173_v52, %v655_v42  ;;  %v637_v54 = vmul.f32 %v5258_v43, %v6099_v17 }
 0x184   : > { %5269 = vrsqrt.f32 %v611_v46  ;;  %v597_v16 = vmul.f32 0.03125, %v581_v50  ;;  %v638_v56 = vmul.f32 %v5260_v48, %v6108_v26  ;;  %v676_v0 = vadd.f32 %v6173_v52, %v656_v55 }
 0x185   : > { %5271 = vrsqrt.f32 %v612_v47  ;;  %v688_v57 = vpack.c.bf16 %v675_v36, %v674_v7  ;;  %v657_v58 = vmul.f32 %v6167_v49, %v637_v54  ;;  %v701_v30 = vrot.slane %v6163_v38, %v700_v29 }
 0x186   : > { %v5262_v59 = vpop.eup %5261  ;;  %v613_v62 = vadd.f32 1e-05, %v597_v16  ;;  %v658_v2 = vmul.f32 %v6167_v49, %v638_v56 }
 0x187   : > { %v5264_v40 = vpop.eup %5263  ;;  %4751 = vmatprep.mubr.msk.bf16.mxu0 %vm436_vm1, %v688_v57  ;;  %v677_v1 = vadd.f32 %v6173_v52, %v657_v58  ;;  %v639_v17 = vmul.f32 %v5262_v59, %v6111_v27 }
 0x188   : > { %5273 = vrsqrt.f32 %v613_v62  ;;  %v640_v26 = vmul.f32 %v5264_v40, %v6120_v39  ;;  %v678_v5 = vadd.f32 %v6173_v52, %v658_v2 }
 0x189   : > { %v689_v3 = vpack.c.bf16 %v677_v1, %v676_v0  ;;  %v659_v4 = vmul.f32 %v6167_v49, %v639_v17  ;;  %v1173_v17 = vld [vmem:[%s5840_s10] sm:$0xf] }
 0x18a   : > { %v5266_v44 = vpop.eup %5265  ;;  %v660_v27 = vmul.f32 %v6167_v49, %v640_v26  ;;  %5151 = vmatprep.subr.msk.bf16.mxu0 %vm1214_vm3, %v1173_v17  ;;  %v1216_v26 = vsel %vm1214_vm3, %v1173_v17, 0 }
 0x18b   : > { %v5268_v45 = vpop.eup %5267  ;;  %4752 = vmatmul.mubr.msk.bf16.gmra.mrb[4].mxu0 %vm436_vm1, %v689_v3  ;;  %v679_v8 = vadd.f32 %v6173_v52, %v659_v4  ;;  %v641_v9 = vmul.f32 %v5266_v44, %v6123_v33 }
 0x18c   : > { %v642_v10 = vmul.f32 %v5268_v45, %v6132_v51  ;;  %v680_v13 = vadd.f32 %v6173_v52, %v660_v27  ;;  %4796 = vmatpush3.bf16.msra.mxu0 %v1216_v26 }
 0x18d   : > { %v690_v60 = vpack.c.bf16 %v679_v8, %v678_v5  ;;  %v661_v39 = vmul.f32 %v6167_v49, %v641_v9 }
 0x18e   : > { %v5270_v11 = vpop.eup %5269  ;;  %v662_v15 = vmul.f32 %v6167_v49, %v642_v10 }
 0x18f   : > { %v5272_v12 = vpop.eup %5271  ;;  %4755 = vmatprep.mubr.msk.bf16.mxu0 %vm436_vm1, %v690_v60  ;;  %v681_v14 = vadd.f32 %v6173_v52, %v661_v39  ;;  %v643_v53 = vmul.f32 %v5270_v11, %v6135_v37 }
 0x190   : > { %v644_v33 = vmul.f32 %v5272_v12, %v6144_v41  ;;  %v682_v20 = vadd.f32 %v6173_v52, %v662_v15 }
 0x191   : > { %v691_v18 = vpack.c.bf16 %v681_v14, %v680_v13  ;;  %v663_v51 = vmul.f32 %v6167_v49, %v643_v53 }
 0x192   : > { %v5274_v19 = vpop.eup %5273  ;;  %v664_v24 = vmul.f32 %v6167_v49, %v644_v33 }
 0x193   : > { %4756 = vmatmul.mubr.msk.bf16.gmra.mrb[8].mxu0 %vm436_vm1, %v691_v18  ;;  %v683_v21 = vadd.f32 %v6173_v52, %v663_v51  ;;  %v645_v23 = vmul.f32 %v5274_v19, %v6147_v63 }
 0x194   : > { %v684_v41 = vadd.f32 %v6173_v52, %v664_v24 }
 0x195   : > { %v692_v25 = vpack.c.bf16 %v683_v21, %v682_v20  ;;  %v665_v37 = vmul.f32 %v6167_v49, %v645_v23 }
 0x197   : > { %4759 = vmatprep.mubr.msk.bf16.mxu0 %vm436_vm1, %v692_v25  ;;  %v685_v28 = vadd.f32 %v6173_v52, %v665_v37 }
 0x199   : > { %v693_v61 = vpack.c.bf16 %v685_v28, %v684_v41 }
 0x19b   : > { %4760 = vmatmul.mubr.msk.bf16.gmra.mrb[12].mxu0 %vm436_vm1, %v693_v61 }
 0x256   : > { %v4749_v31 = vpop.f32.mrb[0].mxu0 }
 0x257   : > { %v772_v63 = vpop.f32.mrb[1].mxu0  ;;  %v781_v35 = vadd.f32 %v4749_v31, %v701_v30 }
 0x258   : > { %v4750_v34 = vpop.f32.mrb[2].mxu0  ;;  %v773_v49 = vadd.f32 %v772_v63, %v701_v30 }
 0x259   : > { %v784_v6 = vadd.f32 %v4750_v34, %v701_v30  ;;  %v775_v32 = vpop.f32.mrb[3].mxu0 }
 0x25a   : > { %v776_v42 = vadd.f32 %v775_v32, %v701_v30 }
 0x25b   : > { %v6230_v43 = vpack.c.bf16 %v784_v6, %v781_v35 }
 0x25c   : > { %v6232_v46 = vpack.c.bf16 %v776_v42, %v773_v49 }
 0x25d   : > { %885 = vrot.lane.b32.xlu1 %v6230_v43, %s5682_s12 }
 0x25e   : > { %883 = vrot.lane.b32.xlu0 %v6232_v46, %s5682_s12  ;;  %v4753_v38 = vpop.f32.mrb[4].mxu0  ;;  %4779 = vmatprep.mubr.msk.bf16.mxu1 %vm899_vm2, %v6232_v46 }
 0x25f   : > { %v788_v52 = vpop.f32.mrb[5].mxu0  ;;  %v797_v48 = vadd.f32 %v4753_v38, %v701_v30 }
 0x260   : > { %v4754_v47 = vpop.f32.mrb[6].mxu0  ;;  %v789_v36 = vadd.f32 %v788_v52, %v701_v30 }
 0x261   : > { %v800_v50 = vadd.f32 %v4754_v47, %v701_v30  ;;  %v791_v7 = vpop.f32.mrb[7].mxu0 }
 0x262   : > { %v792_v54 = vadd.f32 %v791_v7, %v701_v30 }
 0x263   : > { %v6240_v55 = vpack.c.bf16 %v800_v50, %v797_v48 }
 0x264   : > { %v6242_v16 = vpack.c.bf16 %v792_v54, %v789_v36 }
 0x266   : > { %887 = vrot.lane.b32.xlu1 %v6242_v16, %s5682_s12  ;;  %v4757_v56 = vpop.f32.mrb[8].mxu0 }
 0x267   : > { %v804_v57 = vpop.f32.mrb[9].mxu0  ;;  %v813_v59 = vadd.f32 %v4757_v56, %v701_v30 }
 0x268   : > { %v4758_v58 = vpop.f32.mrb[10].mxu0  ;;  %v805_v0 = vadd.f32 %v804_v57, %v701_v30 }
 0x269   : > { %v816_v62 = vadd.f32 %v4758_v58, %v701_v30  ;;  %v807_v40 = vpop.f32.mrb[11].mxu0 }
 0x26a   : > { %v808_v1 = vadd.f32 %v807_v40, %v701_v30  ;;  %889 = vrot.lane.b32.xlu1 %v6240_v55, %s5682_s12 }
 0x26b   : > { %v6249_v2 = vpack.c.bf16 %v816_v62, %v813_v59 }
 0x26c   : > { %v6253_v3 = vpack.c.bf16 %v808_v1, %v805_v0 }
 0x26e   : > { %893 = vrot.lane.b32.xlu1 %v6249_v2, %s5682_s12  ;;  %891 = vrot.lane.b32.xlu0 %v6253_v3, %s5682_s12  ;;  %v4761_v4 = vpop.f32.mrb[12].mxu0 }
 0x26f   : > { %v820_v44 = vpop.f32.mrb[13].mxu0  ;;  %v829_v5 = vadd.f32 %v4761_v4, %v701_v30 }
 0x270   : > { %v4762_v45 = vpop.f32.mrb[14].mxu0  ;;  %v821_v27 = vadd.f32 %v820_v44, %v701_v30 }
 0x271   : > { %v832_v8 = vadd.f32 %v4762_v45, %v701_v30  ;;  %v823_v9 = vpop.f32.mrb[15].mxu0 }
 0x272   : > { %v824_v10 = vadd.f32 %v823_v9, %v701_v30 }
 0x273   : > { %v6259_v60 = vpack.c.bf16 %v832_v8, %v829_v5 }
 0x274   : > { %v6261_v39 = vpack.c.bf16 %v824_v10, %v821_v27 }
 0x275   : > { %897 = vrot.lane.b32.xlu1 %v6259_v60, %s5682_s12 }
 0x276   : > { %895 = vrot.lane.b32.xlu0 %v6261_v39, %s5682_s12 }
 0x279   : > { %1176 = vrot.lane.b32.xlu1 %v6230_v43, %s5683_s14 }
 0x27a   : > { %1174 = vrot.lane.b32.xlu0 %v6232_v46, %s5683_s14 }
 0x27d   : > { %1180 = vrot.lane.b32.xlu1 %v6240_v55, %s5683_s14 }
 0x27e   : > { %1178 = vrot.lane.b32.xlu0 %v6242_v16, %s5683_s14 }
 0x281   : > { %1184 = vrot.lane.b32.xlu1 %v6249_v2, %s5683_s14 }
 0x282   : > { %1182 = vrot.lane.b32.xlu0 %v6253_v3, %s5683_s14 }
 0x285   : > { %1188 = vrot.lane.b32.xlu1 %v6259_v60, %s5683_s14 }
 0x286   : > { %1186 = vrot.lane.b32.xlu0 %v6261_v39, %s5683_s14 }
 0x289   : > { %1511 = vrot.lane.b32.xlu1 %v6230_v43, %s5684_s16 }
 0x28a   : > { %1509 = vrot.lane.b32.xlu0 %v6232_v46, %s5684_s16 }
 0x28d   : > { %1515 = vrot.lane.b32.xlu1 %v6240_v55, %s5684_s16 }
 0x28e   : > { %1513 = vrot.lane.b32.xlu0 %v6242_v16, %s5684_s16 }
 0x291   : > { %1519 = vrot.lane.b32.xlu1 %v6249_v2, %s5684_s16 }
 0x292   : > { %1517 = vrot.lane.b32.xlu0 %v6253_v3, %s5684_s16 }
 0x295   : > { %1523 = vrot.lane.b32.xlu1 %v6259_v60, %s5684_s16 }
 0x296   : > { %1493 = vrot.lane.b32.xlu0 %v6232_v46, %s5685_s15 }
 0x299   : > { %1495 = vrot.lane.b32.xlu1 %v6230_v43, %s5685_s15 }
 0x29a   : > { %1497 = vrot.lane.b32.xlu0 %v6242_v16, %s5685_s15 }
 0x29d   : > { %1499 = vrot.lane.b32.xlu1 %v6240_v55, %s5685_s15 }
 0x29e   : > { %1501 = vrot.lane.b32.xlu0 %v6253_v3, %s5685_s15 }
 0x2a1   : > { %1503 = vrot.lane.b32.xlu1 %v6249_v2, %s5685_s15 }
 0x2a2   : > { %1521 = vrot.lane.b32.xlu0 %v6261_v39, %s5684_s16 }
 0x2cf   : > { %v886_v13 = vpop.permute.xlu1 %885 }
 0x2d0   : > { %v884_v11 = vpop.permute.xlu0 %883  ;;  %v928_v53 = vsel %vm899_vm2, %v886_v13, 0 }
 0x2d1   : > { %5143 = vmatprep.subr.msk.bf16.mxu1 %vm899_vm2, %v884_v11  ;;  %v925_v12 = vsel %vm899_vm2, %v884_v11, 0 }
 0x2d2   : > { %4764 = vmatpush3.bf16.xpose.msra.mxu1 %v925_v12 }
 0x2d3   : > { %5144 = vmatprep.subr.msk.bf16.mxu1 %vm899_vm2, %v886_v13 }
 0x2d8   : > { %v888_v14 = vpop.permute.xlu1 %887 }
 0x2d9   : > { %v931_v33 = vsel %vm899_vm2, %v888_v14, 0 }
 0x2da   : > { %4766 = vmatpush3.bf16.xpose.msra.mxu1 %v928_v53 }
 0x2db   : > { %5145 = vmatprep.subr.msk.bf16.mxu1 %vm899_vm2, %v888_v14 }
 0x2dc   : > { %v890_v15 = vpop.permute.xlu1 %889 }
 0x2dd   : > { %v934_v21 = vsel %vm899_vm2, %v890_v15, 0 }
 0x2e0   : > { %v894_v18 = vpop.permute.xlu1 %893  ;;  %v892_v51 = vpop.permute.xlu0 %891 }
 0x2e1   : > { %v937_v37 = vsel %vm899_vm2, %v892_v51, 0  ;;  %v940_v61 = vsel %vm899_vm2, %v894_v18, 0 }
 0x2e2   : > { %4768 = vmatpush3.bf16.xpose.msra.mxu1 %v931_v33 }
 0x2e3   : > { %5146 = vmatprep.subr.msk.bf16.mxu1 %vm899_vm2, %v890_v15 }
 0x2e7   : > { %v898_v19 = vpop.permute.xlu1 %897 }
 0x2e8   : > { %v896_v20 = vpop.permute.xlu0 %895  ;;  %v946_v34 = vsel %vm899_vm2, %v898_v19, 0 }
 0x2e9   : > { %v943_v31 = vsel %vm899_vm2, %v896_v20, 0 }
 0x2ea   : > { %4770 = vmatpush3.bf16.xpose.msra.mxu1 %v934_v21 }
 0x2eb   : > { %5147 = vmatprep.subr.msk.bf16.mxu1 %vm899_vm2, %v892_v51  ;;  %v1177_v24 = vpop.permute.xlu1 %1176 }
 0x2ec   : > { %v1175_v23 = vpop.permute.xlu0 %1174 }
 0x2ed   : > { %4797 = vmatprep.mubr.msk.bf16.mxu0 %vm899_vm2, %v1175_v23 }
 0x2ee   : > { %4798 = vmatmul.mubr.msk.bf16.vlgmr.msra.gmra.mrb[16].mxu0 %vm899_vm2, %v1177_v24 }
 0x2ef   : > { %v1181_v41 = vpop.permute.xlu1 %1180 }
 0x2f0   : > { %v1179_v25 = vpop.permute.xlu0 %1178 }
 0x2f1   : > { %4801 = vmatprep.mubr.msk.bf16.mxu0 %vm899_vm2, %v1179_v25 }
 0x2f2   : > { %4772 = vmatpush3.bf16.xpose.msra.mxu1 %v937_v37  ;;  %v4512_v37 = vld [vmem:[%s5819_s24 + $0x8] sm:$0xff]  }
 0x2f3   : > { %5148 = vmatprep.subr.msk.bf16.mxu1 %vm899_vm2, %v894_v18  ;;  %v1185_v29 = vpop.permute.xlu1 %1184 }
 0x2f4   : > { %v1183_v28 = vpop.permute.xlu0 %1182 }
 0x2f6   : > { %4802 = vmatmul.mubr.msk.bf16.gmra.mrb[20].mxu0 %vm899_vm2, %v1181_v41  ;;  %v4390_v41 = vunpack.c.l.bf16 %v4512_v37 }
 0x2f7   : > { %4805 = vmatprep.mubr.msk.bf16.mxu0 %vm899_vm2, %v1183_v28  ;;  %v1189_v63 = vpop.permute.xlu1 %1188  ;;  %v4385_v28 = vld [vmem:[%s5819_s24] sm:$0xff]  }
 0x2f8   : > { %v1187_v30 = vpop.permute.xlu0 %1186 }
 0x2fa   : > { %4774 = vmatpush3.bf16.xpose.msra.mxu1 %v940_v61 }
 0x2fb   : > { %5149 = vmatprep.subr.msk.bf16.mxu1 %vm899_vm2, %v896_v20  ;;  %v1512_v32 = vpop.permute.xlu1 %1511 }
 0x2fc   : > { %v1510_v35 = vpop.permute.xlu0 %1509  ;;  %v1553_v49 = vsel %vm899_vm2, %v1512_v32, 0 }
 0x2fd   : > { %v1550_v6 = vsel %vm899_vm2, %v1510_v35, 0 }
 0x2fe   : > { %4806 = vmatmul.mubr.msk.bf16.gmra.mrb[24].mxu0 %vm899_vm2, %v1185_v29  ;;  %v4387_v29 = vunpack.c.h.bf16 %v4385_v28 }
 0x2ff   : > { %4809 = vmatprep.mubr.msk.bf16.mxu0 %vm899_vm2, %v1187_v30  ;;  %v1516_v52 = vpop.permute.xlu1 %1515 }
 0x300   : > { %v1514_v42 = vpop.permute.xlu0 %1513  ;;  %v1559_v50 = vsel %vm899_vm2, %v1516_v52, 0 }
 0x301   : > { %v1556_v38 = vsel %vm899_vm2, %v1514_v42, 0 }
 0x302   : > { %4776 = vmatpush3.bf16.xpose.msra.mxu1 %v943_v31  ;;  %v4386_v31 = vunpack.c.l.bf16 %v4385_v28 }
 0x303   : > { %5150 = vmatprep.subr.msk.bf16.mxu1 %vm899_vm2, %v898_v19  ;;  %v1520_v54 = vpop.permute.xlu1 %1519 }
 0x304   : > { %v1518_v47 = vpop.permute.xlu0 %1517  ;;  %v1565_v57 = vsel %vm899_vm2, %v1520_v54, 0 }
 0x305   : > { %v1562_v36 = vsel %vm899_vm2, %v1518_v47, 0 }
 0x306   : > { %4810 = vmatmul.mubr.msk.bf16.gmra.mrb[28].mxu0 %vm899_vm2, %v1189_v63 }
 0x307   : > { %v1524_v62 = vpop.permute.xlu1 %1523 }
 0x308   : > { %v1494_v48 = vpop.permute.xlu0 %1493  ;;  %v1571_v40 = vsel %vm899_vm2, %v1524_v62, 0 }
 0x30a   : > { %4778 = vmatpush3.bf16.xpose.msra.mxu1 %v946_v34 }
 0x30b   : > { %5152 = vmatprep.subr.msk.bf16.mxu1 %vm899_vm2, %v1510_v35  ;;  %v1496_v0 = vpop.permute.xlu1 %1495 }
 0x30c   : > { %v1498_v7 = vpop.permute.xlu0 %1497 }
 0x30f   : > { %v1500_v1 = vpop.permute.xlu1 %1499 }
 0x310   : > { %v1502_v56 = vpop.permute.xlu0 %1501 }
 0x311   : > { %4780 = vmatmul.mubr.msk.bf16.vlgmr.msra.gmra.mrb[0].mxu1 %vm899_vm2, %v6230_v43 }
 0x312   : > { %4783 = vmatprep.mubr.msk.bf16.mxu1 %vm899_vm2, %v6242_v16  ;;  %4846 = vmatpush3.bf16.xpose.msra.mxu1 %v1550_v6  ;;  %v4513_v6 = vld [vmem:[%s5819_s24 + $0x10] sm:$0xff]  }
 0x313   : > { %5153 = vmatprep.subr.msk.bf16.mxu1 %vm899_vm2, %v1512_v32  ;;  %v1504_v17 = vpop.permute.xlu1 %1503 }
 0x314   : > { %v1522_v58 = vpop.permute.xlu0 %1521 }
 0x315   : > { %v1568_v59 = vsel %vm899_vm2, %v1522_v58, 0 }
 0x319   : > { %4784 = vmatmul.mubr.msk.bf16.gmra.mrb[4].mxu1 %vm899_vm2, %v6240_v55 }
 0x31a   : > { %4787 = vmatprep.mubr.msk.bf16.mxu1 %vm899_vm2, %v6253_v3  ;;  %4848 = vmatpush3.bf16.xpose.msra.mxu1 %v1553_v49 }
 0x31b   : > { %5154 = vmatprep.subr.msk.bf16.mxu1 %vm899_vm2, %v1514_v42  ;;  %v4391_v42 = vunpack.c.h.bf16 %v4512_v37 }
 0x321   : > { %4788 = vmatmul.mubr.msk.bf16.gmra.mrb[8].mxu1 %vm899_vm2, %v6249_v2 }
 0x322   : > { %4791 = vmatprep.mubr.msk.bf16.mxu1 %vm899_vm2, %v6261_v39  ;;  %4850 = vmatpush3.bf16.xpose.msra.mxu1 %v1556_v38  ;;  %v4514_v38 = vld [vmem:[%s5819_s24 + $0x18] sm:$0xff]  }
 0x323   : > { %5155 = vmatprep.subr.msk.bf16.mxu1 %vm899_vm2, %v1516_v52  ;;  %v4394_v52 = vunpack.c.l.bf16 %v4513_v6 }
 0x329   : > { %4792 = vmatmul.mubr.msk.bf16.gmra.mrb[12].mxu1 %vm899_vm2, %v6259_v60 }
 0x32a   : > { %4852 = vmatpush3.bf16.xpose.msra.mxu1 %v1559_v50  ;;  %4861 = vmatprep.mubr.msk.bf16.mxu1 %vm899_vm2, %v1494_v48  ;;  %v4398_v50 = vunpack.c.l.bf16 %v4514_v38 }
 0x32b   : > { %5156 = vmatprep.subr.msk.bf16.mxu1 %vm899_vm2, %v1518_v47 }
 0x332   : > { %4854 = vmatpush3.bf16.xpose.msra.mxu1 %v1562_v36 }
 0x333   : > { %5157 = vmatprep.subr.msk.bf16.mxu1 %vm899_vm2, %v1520_v54  ;;  %v4399_v54 = vunpack.c.h.bf16 %v4514_v38 }
 0x33a   : > { %4856 = vmatpush3.bf16.xpose.msra.mxu1 %v1565_v57 }
 0x33b   : > { %5158 = vmatprep.subr.msk.bf16.mxu1 %vm899_vm2, %v1522_v58  ;;  %v4515_v58 = vld [vmem:[%s5819_s24 + $0x20] sm:$0xff]  }
 0x342   : > { %4858 = vmatpush3.bf16.xpose.msra.mxu1 %v1568_v59 }
 0x343   : > { %5159 = vmatprep.subr.msk.bf16.mxu1 %vm899_vm2, %v1524_v62  ;;  %v4395_v62 = vunpack.c.h.bf16 %v4513_v6 }
 0x34a   : > { %4860 = vmatpush3.bf16.xpose.msra.mxu1 %v1571_v40 }
 0x351   : > { %4862 = vmatmul.mubr.msk.bf16.vlgmr.msra.gmra.mrb[16].mxu1 %vm899_vm2, %v1496_v0  ;;  %v4516_v0 = vld [vmem:[%s5819_s24 + $0x28] sm:$0xff]  }
 0x352   : > { %4865 = vmatprep.mubr.msk.bf16.mxu1 %vm899_vm2, %v1498_v7 }
 0x359   : > { %4866 = vmatmul.mubr.msk.bf16.gmra.mrb[20].mxu1 %vm899_vm2, %v1500_v1  ;;  %v4402_v1 = vunpack.c.l.bf16 %v4515_v58 }
 0x35a   : > { %4869 = vmatprep.mubr.msk.bf16.mxu1 %vm899_vm2, %v1502_v56 }
 0x361   : > { %4870 = vmatmul.mubr.msk.bf16.gmra.mrb[24].mxu1 %vm899_vm2, %v1504_v17 }
 0x3c1   : > { %v4799_v26 = vpop.f32.mrb[16].mxu0 }
 0x3c2   : > { %v1252_v4 = vpop.f32.mrb[17].mxu0 }
 0x3c3   : > { %v4800_v44 = vpop.f32.mrb[18].mxu0 }
 0x3c4   : > { %v1324_v45 = vpack.c.bf16 %v4800_v44, %v4799_v26  ;;  %v1255_v5 = vpop.f32.mrb[19].mxu0 }
 0x3c5   : > { %v1323_v8 = vpack.c.bf16 %v1255_v5, %v1252_v4  ;;  %v4406_v4 = vunpack.c.l.bf16 %v4516_v0  ;;  %v4407_v5 = vunpack.c.h.bf16 %v4516_v0 }
 0x3c7   : > { %4813 = vmatprep.subr.bf16.mxu0 %v1323_v8 }
 0x3c8   : > { %4814 = vmatpush3.bf16.msra.mxu0 %v1323_v8 }
 0x3c9   : > { %v4803_v9 = vpop.f32.mrb[20].mxu0  ;;  %4815 = vmatprep.subr.bf16.mxu0 %v1324_v45 }
 0x3ca   : > { %v1268_v27 = vpop.f32.mrb[21].mxu0 }
 0x3cb   : > { %v4804_v10 = vpop.f32.mrb[22].mxu0 }
 0x3cc   : > { %v1326_v11 = vpack.c.bf16 %v4804_v10, %v4803_v9  ;;  %v1271_v12 = vpop.f32.mrb[23].mxu0  ;;  %4816 = vmatpush3.bf16.msra.mxu0 %v1324_v45 }
 0x3cd   : > { %v1325_v13 = vpack.c.bf16 %v1271_v12, %v1268_v27  ;;  %v4517_v27 = vld [vmem:[%s5819_s24 + $0x30] sm:$0xff]  }
 0x3cf   : > { %4817 = vmatprep.subr.bf16.mxu0 %v1325_v13 }
 0x3d0   : > { %4818 = vmatpush3.bf16.msra.mxu0 %v1325_v13  ;;  %v4518_v13 = vld [vmem:[%s5819_s24 + $0x38] sm:$0xff]  }
 0x3d1   : > { %v4807_v14 = vpop.f32.mrb[24].mxu0  ;;  %4819 = vmatprep.subr.bf16.mxu0 %v1326_v11 }
 0x3d2   : > { %v1284_v53 = vpop.f32.mrb[25].mxu0 }
 0x3d3   : > { %v4808_v15 = vpop.f32.mrb[26].mxu0 }
 0x3d4   : > { %v1328_v33 = vpack.c.bf16 %v4808_v15, %v4807_v14  ;;  %v1287_v18 = vpop.f32.mrb[27].mxu0  ;;  %4820 = vmatpush3.bf16.msra.mxu0 %v1326_v11  ;;  %v4403_v11 = vunpack.c.h.bf16 %v4515_v58  ;;  %v4410_v14 = vunpack.c.l.bf16 %v4517_v27 }
 0x3d5   : > { %v1327_v51 = vpack.c.bf16 %v1287_v18, %v1284_v53 }
 0x3d7   : > { %4821 = vmatprep.subr.bf16.mxu0 %v1327_v51 }
 0x3d8   : > { %4822 = vmatpush3.bf16.msra.mxu0 %v1327_v51 }
 0x3d9   : > { %v4811_v19 = vpop.f32.mrb[28].mxu0  ;;  %4823 = vmatprep.subr.bf16.mxu0 %v1328_v33 }
 0x3da   : > { %v1300_v20 = vpop.f32.mrb[29].mxu0 }
 0x3db   : > { %v4812_v21 = vpop.f32.mrb[30].mxu0 }
 0x3dc   : > { %v1330_v23 = vpack.c.bf16 %v4812_v21, %v4811_v19  ;;  %v1303_v24 = vpop.f32.mrb[31].mxu0  ;;  %4824 = vmatpush3.bf16.msra.mxu0 %v1328_v33  ;;  %v4414_v33 = vunpack.c.l.bf16 %v4518_v13  ;;  %v4415_v19 = vunpack.c.h.bf16 %v4518_v13 }
 0x3dd   : > { %v1329_v25 = vpack.c.bf16 %v1303_v24, %v1300_v20  ;;  %v4411_v24 = vunpack.c.h.bf16 %v4517_v27 }
 0x3df   : > { %4825 = vmatprep.subr.bf16.mxu0 %v1329_v25 }
 0x3e0   : > { %4826 = vmatpush3.bf16.msra.mxu0 %v1329_v25 }
 0x3e1   : > { %4827 = vmatprep.subr.bf16.mxu0 %v1330_v23 }
 0x3e4   : > { %v4781_v61 = vpop.f32.mrb[0].mxu1  ;;  %4828 = vmatpush3.bf16.msra.mxu0 %v1330_v23 }
 0x3e5   : > { %v6357_v30 = vadd.f32 %v4781_v61, %v4390_v41  ;;  %v982_v63 = vpop.f32.mrb[1].mxu1 }
 0x3e6   : > { %v4782_v34 = vpop.f32.mrb[2].mxu1  ;;  %v6363_v49 = vadd.f32 %v4386_v31, %v982_v63  ;;  %v6424_v31 = vld [vmem:[%s5840_s10 + $0x4] sm:$0xf] }
 0x3e7   : > { %1049 = vmax.xlane.f32.xlu0 %v6357_v30  ;;  %v985_v35 = vpop.f32.mrb[3].mxu1  ;;  %v6368_v48 = vadd.f32 %v4782_v34, %v4391_v42  ;;  %5160 = vmatprep.subr.msk.bf16.mxu0 %vm1214_vm3, %v6424_v31 }
 0x3e8   : > { %v6361_v32 = vadd.f32 %v4387_v29, %v985_v35 }
 0x3ea   : > { %1047 = vmax.xlane.f32.xlu1 %v6361_v32 }
 0x3eb   : > { %1045 = vmax.xlane.f32.xlu0 %v6363_v49 }
 0x3ec   : > { %v4785_v47 = vpop.f32.mrb[4].mxu1 }
 0x3ed   : > { %v998_v7 = vpop.f32.mrb[5].mxu1  ;;  %v6375_v59 = vadd.f32 %v4785_v47, %v4398_v50  ;;  %v4520_v50 = vld [vmem:[%s5819_s24 + $0x48] sm:$0xff]  }
 0x3ee   : > { %v6370_v36 = vadd.f32 %v4394_v52, %v998_v7  ;;  %v4786_v56 = vpop.f32.mrb[6].mxu1  ;;  %v4422_v7 = vunpack.c.l.bf16 %v4520_v50 }
 0x3ef   : > { %v1001_v57 = vpop.f32.mrb[7].mxu1  ;;  %1051 = vmax.xlane.f32.xlu0 %v6368_v48  ;;  %v6377_v40 = vadd.f32 %v4786_v56, %v4399_v54  ;;  %v4519_v54 = vld [vmem:[%s5819_s24 + $0x40] sm:$0xff]  }
 0x3f0   : > { %1053 = vmax.xlane.f32.xlu1 %v6370_v36  ;;  %v6382_v26 = vadd.f32 %v4395_v62, %v1001_v57  ;;  %v4418_v57 = vunpack.c.l.bf16 %v4519_v54  ;;  %v4419_v58 = vunpack.c.h.bf16 %v4519_v54  ;;  %v4521_v62 = vld [vmem:[%s5819_s24 + $0x50] sm:$0xff]  }
 0x3f3   : > { %1057 = vmax.xlane.f32.xlu0 %v6375_v59 }
 0x3f4   : > { %v4789_v17 = vpop.f32.mrb[8].mxu1  ;;  %1059 = vmax.xlane.f32.xlu1 %v6377_v40 }
 0x3f5   : > { %v1014_v44 = vpop.f32.mrb[9].mxu1  ;;  %v6389_v10 = vadd.f32 %v4789_v17, %v4406_v4  ;;  %v4522_v4 = vld [vmem:[%s5819_s24 + $0x58] sm:$0xff]  }
 0x3f6   : > { %v6384_v45 = vadd.f32 %v4402_v1, %v1014_v44  ;;  %v4790_v8 = vpop.f32.mrb[10].mxu1  ;;  %v4423_v1 = vunpack.c.h.bf16 %v4520_v50  ;;  %v4426_v44 = vunpack.c.l.bf16 %v4521_v62  ;;  %v4431_v27 = vunpack.c.h.bf16 %v4522_v4 }
 0x3f7   : > { %v1017_v9 = vpop.f32.mrb[11].mxu1  ;;  %1055 = vmax.xlane.f32.xlu0 %v6382_v26  ;;  %v6391_v12 = vadd.f32 %v4790_v8, %v4407_v5  ;;  %v4430_v8 = vunpack.c.l.bf16 %v4522_v4 }
 0x3f8   : > { %1061 = vmax.xlane.f32.xlu1 %v6384_v45  ;;  %v6396_v15 = vadd.f32 %v4403_v11, %v1017_v9  ;;  %v4523_v11 = vld [vmem:[%s5819_s24 + $0x60] sm:$0xff]  }
 0x3fb   : > { %1065 = vmax.xlane.f32.xlu0 %v6389_v10 }
 0x3fc   : > { %v4793_v53 = vpop.f32.mrb[12].mxu1  ;;  %1067 = vmax.xlane.f32.xlu1 %v6391_v12 }
 0x3fd   : > { %v1030_v18 = vpop.f32.mrb[13].mxu1  ;;  %v6402_v23 = vadd.f32 %v4793_v53, %v4414_v33  ;;  %v4524_v33 = vld [vmem:[%s5819_s24 + $0x68] sm:$0xff]  }
 0x3fe   : > { %v6398_v51 = vadd.f32 %v4410_v14, %v1030_v18  ;;  %v4794_v20 = vpop.f32.mrb[14].mxu1  ;;  %v4427_v14 = vunpack.c.h.bf16 %v4521_v62  ;;  %v4434_v18 = vunpack.c.l.bf16 %v4523_v11 }
 0x3ff   : > { %v1033_v21 = vpop.f32.mrb[15].mxu1  ;;  %1063 = vmax.xlane.f32.xlu0 %v6396_v15  ;;  %v6404_v25 = vadd.f32 %v4794_v20, %v4415_v19  ;;  %v4438_v20 = vunpack.c.l.bf16 %v4524_v33 }
 0x400   : > { %1069 = vmax.xlane.f32.xlu1 %v6398_v51  ;;  %v6408_v37 = vadd.f32 %v4411_v24, %v1033_v21  ;;  %v4439_v24 = vunpack.c.h.bf16 %v4524_v33 }
 0x403   : > { %1073 = vmax.xlane.f32.xlu0 %v6402_v23 }
 0x404   : > { %1075 = vmax.xlane.f32.xlu1 %v6404_v25 }
 0x407   : > { %1071 = vmax.xlane.f32.xlu0 %v6408_v37 }
 0x415   : > { %1507 = vrot.lane.b32.xlu1 %v6259_v60, %s5685_s15 }
 0x419   : > { %1800 = vrot.lane.b32.xlu1 %v6232_v46, %s5686_s28 }
 0x41d   : > { %1802 = vrot.lane.b32.xlu1 %v6230_v43, %s5686_s28  ;;  %1505 = vrot.lane.b32.xlu0 %v6261_v39, %s5685_s15 }
 0x421   : > { %1806 = vrot.lane.b32.xlu1 %v6240_v55, %s5686_s28  ;;  %1804 = vrot.lane.b32.xlu0 %v6242_v16, %s5686_s28 }
 0x424   : > { %v4863_v41 = vpop.f32.mrb[16].mxu1 }
 0x425   : > { %1810 = vrot.lane.b32.xlu1 %v6249_v2, %s5686_s28  ;;  %1808 = vrot.lane.b32.xlu0 %v6253_v3, %s5686_s28  ;;  %v1607_v28 = vpop.f32.mrb[17].mxu1  ;;  %v6450_v56 = vadd.f32 %v4863_v41, %v4422_v7 }
 0x426   : > { %v4864_v61 = vpop.f32.mrb[18].mxu1  ;;  %v6454_v0 = vadd.f32 %v4418_v57, %v1607_v28 }
 0x427   : > { %v1610_v29 = vpop.f32.mrb[19].mxu1  ;;  %v6461_v5 = vadd.f32 %v4864_v61, %v4423_v1  ;;  %v4435_v61 = vunpack.c.h.bf16 %v4523_v11 }
 0x428   : > { %v6456_v17 = vadd.f32 %v4419_v58, %v1610_v29 }
 0x429   : > { %1814 = vrot.lane.b32.xlu1 %v6259_v60, %s5686_s28  ;;  %1812 = vrot.lane.b32.xlu0 %v6261_v39, %s5686_s28 }
 0x42c   : > { %v4867_v63 = vpop.f32.mrb[20].mxu1 }
 0x42d   : > { %2136 = vrot.lane.b32.xlu1 %v6230_v43, %s5687_s17  ;;  %2134 = vrot.lane.b32.xlu0 %v6232_v46, %s5687_s17  ;;  %v1623_v34 = vpop.f32.mrb[21].mxu1  ;;  %v6468_v13 = vadd.f32 %v4867_v63, %v4430_v8 }
 0x42e   : > { %v4868_v35 = vpop.f32.mrb[22].mxu1  ;;  %v6463_v9 = vadd.f32 %v4426_v44, %v1623_v34 }
 0x42f   : > { %v1626_v6 = vpop.f32.mrb[23].mxu1  ;;  %v6470_v53 = vadd.f32 %v4868_v35, %v4431_v27 }
 0x430   : > { %v6475_v19 = vadd.f32 %v4427_v14, %v1626_v6 }
 0x431   : > { %2140 = vrot.lane.b32.xlu1 %v6240_v55, %s5687_s17  ;;  %2138 = vrot.lane.b32.xlu0 %v6242_v16, %s5687_s17 }
 0x434   : > { %v4871_v42 = vpop.f32.mrb[24].mxu1 }
 0x435   : > { %2144 = vrot.lane.b32.xlu1 %v6249_v2, %s5687_s17  ;;  %2142 = vrot.lane.b32.xlu0 %v6253_v3, %s5687_s17  ;;  %v1639_v38 = vpop.f32.mrb[25].mxu1  ;;  %v6481_v28 = vadd.f32 %v4871_v42, %v4438_v20 }
 0x436   : > { %v4872_v52 = vpop.f32.mrb[26].mxu1  ;;  %v6477_v21 = vadd.f32 %v4434_v18, %v1639_v38 }
 0x437   : > { %v1642_v47 = vpop.f32.mrb[27].mxu1  ;;  %v6483_v29 = vadd.f32 %v4872_v52, %v4439_v24 }
 0x438   : > { %v6490_v50 = vadd.f32 %v4435_v61, %v1642_v47 }
 0x439   : > { %2148 = vrot.lane.b32.xlu1 %v6259_v60, %s5687_s17  ;;  %2146 = vrot.lane.b32.xlu0 %v6261_v39, %s5687_s17 }
 0x43d   : > { %2120 = vrot.lane.b32.xlu1 %v6230_v43, %s5688_s22  ;;  %2118 = vrot.lane.b32.xlu0 %v6232_v46, %s5688_s22 }
 0x441   : > { %2124 = vrot.lane.b32.xlu1 %v6240_v55, %s5688_s22  ;;  %2122 = vrot.lane.b32.xlu0 %v6242_v16, %s5688_s22 }
 0x445   : > { %2128 = vrot.lane.b32.xlu1 %v6249_v2, %s5688_s22  ;;  %2126 = vrot.lane.b32.xlu0 %v6253_v3, %s5688_s22 }
 0x464   : > { %1674 = vmax.xlane.f32.xlu0 %v6450_v56 }
 0x468   : > { %1670 = vmax.xlane.f32.xlu0 %v6454_v0 }
 0x469   : > { %1672 = vmax.xlane.f32.xlu1 %v6456_v17 }
 0x46c   : > { %1676 = vmax.xlane.f32.xlu0 %v6461_v5 }
 0x46d   : > { %1678 = vmax.xlane.f32.xlu1 %v6463_v9 }
 0x470   : > { %1682 = vmax.xlane.f32.xlu0 %v6468_v13 }
 0x471   : > { %1684 = vmax.xlane.f32.xlu1 %v6470_v53 }
 0x474   : > { %1680 = vmax.xlane.f32.xlu0 %v6475_v19  ;;  %v1050_v41 = vpop.xlane.xlu0 %1049 }
 0x475   : > { %1686 = vmax.xlane.f32.xlu1 %v6477_v21  ;;  %v1079_v34 = vsub.f32 %v6357_v30, %v1050_v41 }
 0x477   : > { %v1048_v63 = vpop.xlane.xlu1 %1047  ;;  %v1097_v54 = vmul.f32 1.442695, %v1079_v34 }
 0x478   : > { %v1078_v35 = vsub.f32 %v6361_v32, %v1048_v63  ;;  %1690 = vmax.xlane.f32.xlu0 %v6481_v28  ;;  %v1046_v6 = vpop.xlane.xlu0 %1045 }
 0x479   : > { %v1077_v38 = vsub.f32 %v6363_v49, %v1046_v6  ;;  %1692 = vmax.xlane.f32.xlu1 %v6483_v29 }
 0x47a   : > { %v1095_v7 = vmul.f32 1.442695, %v1078_v35 }
 0x47b   : > { %v1093_v42 = vmul.f32 1.442695, %v1077_v38  ;;  %v1841_v38 = vsel %vm1214_vm3, %v6424_v31, 0 }
 0x47c   : > { %5275 = vpow2.f32 %v1095_v7  ;;  %1688 = vmax.xlane.f32.xlu0 %v6490_v50  ;;  %v1052_v52 = vpop.xlane.xlu0 %1051 }
 0x47d   : > { %5277 = vpow2.f32 %v1093_v42  ;;  %v1080_v30 = vsub.f32 %v6368_v48, %v1052_v52  ;;  %v1054_v32 = vpop.xlane.xlu1 %1053 }
 0x47e   : > { %v1081_v57 = vsub.f32 %v6370_v36, %v1054_v32  ;;  %5279 = vpow2.f32 %v1097_v54 }
 0x47f   : > { %v1099_v58 = vmul.f32 1.442695, %v1080_v30 }
 0x480   : > { %v1058_v49 = vpop.xlane.xlu0 %1057  ;;  %v1101_v1 = vmul.f32 1.442695, %v1081_v57 }
 0x481   : > { %5281 = vpow2.f32 %v1099_v58  ;;  %v1083_v47 = vsub.f32 %v6375_v59, %v1058_v49  ;;  %v1060_v62 = vpop.xlane.xlu1 %1059 }
 0x482   : > { %v1084_v4 = vsub.f32 %v6377_v40, %v1060_v62  ;;  %5283 = vpow2.f32 %v1101_v1 }
 0x483   : > { %v1105_v44 = vmul.f32 1.442695, %v1083_v47 }
 0x484   : > { %v1107_v8 = vmul.f32 1.442695, %v1084_v4  ;;  %v1056_v27 = vpop.xlane.xlu0 %1055 }
 0x485   : > { %v1082_v11 = vsub.f32 %v6382_v26, %v1056_v27  ;;  %v1062_v14 = vpop.xlane.xlu1 %1061  ;;  %5285 = vpow2.f32 %v1105_v44 }
 0x486   : > { %v6498_v48 = vpop.eup %5275  ;;  %v1085_v36 = vsub.f32 %v6384_v45, %v1062_v14  ;;  %5287 = vpow2.f32 %v1107_v8 }
 0x487   : > { %v6501_v33 = vpop.eup %5277  ;;  %v1103_v18 = vmul.f32 1.442695, %v1082_v11 }
 0x488   : > { %v1066_v59 = vpop.xlane.xlu0 %1065  ;;  %v1315_v40 = vpack.c.bf16 %v6498_v48, %v6501_v33  ;;  %v6506_v26 = vpop.eup %5279  ;;  %v1109_v41 = vmul.f32 1.442695, %v1085_v36 }
 0x489   : > { %5289 = vpow2.f32 %v1103_v18  ;;  %v1087_v20 = vsub.f32 %v6389_v10, %v1066_v59  ;;  %v1068_v24 = vpop.xlane.xlu1 %1067 }
 0x48a   : > { %v1088_v61 = vsub.f32 %v6391_v12, %v1068_v24  ;;  %4829 = vmatprep.mubr.bf16.mxu0 %v1315_v40  ;;  %5291 = vpow2.f32 %v1109_v41 }
 0x48b   : > { %v6509_v45 = vpop.eup %5281  ;;  %v1113_v63 = vmul.f32 1.442695, %v1087_v20 }
 0x48c   : > { %v1115_v34 = vmul.f32 1.442695, %v1088_v61  ;;  %v1064_v35 = vpop.xlane.xlu0 %1063  ;;  %v1316_v6 = vpack.c.bf16 %v6509_v45, %v6506_v26  ;;  %v6517_v54 = vpop.eup %5283 }
 0x48d   : > { %v1086_v10 = vsub.f32 %v6396_v15, %v1064_v35  ;;  %v1070_v7 = vpop.xlane.xlu1 %1069  ;;  %5293 = vpow2.f32 %v1113_v63 }
 0x48e   : > { %v1089_v42 = vsub.f32 %v6398_v51, %v1070_v7  ;;  %4830 = vmatmul.mubr.bf16.vlgmr.msra.gmra.mrb[32].mxu0 %v1316_v6  ;;  %5295 = vpow2.f32 %v1115_v34 }
 0x48f   : > { %v1111_v12 = vmul.f32 1.442695, %v1086_v10  ;;  %4878 = vmatpush3.bf16.msra.mxu0 %v1841_v38  ;;  %v6519_v30 = vpop.eup %5285 }
 0x490   : > { %v1074_v52 = vpop.xlane.xlu0 %1073  ;;  %v6522_v57 = vpop.eup %5287  ;;  %v1117_v15 = vmul.f32 1.442695, %v1089_v42 }
 0x491   : > { %5297 = vpow2.f32 %v1111_v12  ;;  %v1091_v32 = vsub.f32 %v6402_v23, %v1074_v52  ;;  %v1076_v31 = vpop.xlane.xlu1 %1075  ;;  %v1318_v23 = vpack.c.bf16 %v6522_v57, %v6519_v30 }
 0x492   : > { %v1092_v58 = vsub.f32 %v6404_v25, %v1076_v31  ;;  %5299 = vpow2.f32 %v1117_v15 }
 0x493   : > { %v6525_v51 = vpop.eup %5289  ;;  %v1121_v49 = vmul.f32 1.442695, %v1091_v32 }
 0x494   : > { %v1123_v47 = vmul.f32 1.442695, %v1092_v58  ;;  %v1072_v62 = vpop.xlane.xlu0 %1071  ;;  %v1317_v1 = vpack.c.bf16 %v6525_v51, %v6517_v54  ;;  %v6532_v25 = vpop.eup %5291 }
 0x495   : > { %v1090_v4 = vsub.f32 %v6408_v37, %v1072_v62  ;;  %v1508_v44 = vpop.permute.xlu1 %1507  ;;  %5301 = vpow2.f32 %v1121_v49 }
 0x496   : > { %4833 = vmatprep.mubr.bf16.mxu0 %v1317_v1  ;;  %5303 = vpow2.f32 %v1123_v47 }
 0x497   : > { %v1119_v8 = vmul.f32 1.442695, %v1090_v4  ;;  %4834 = vmatmul.mubr.bf16.gmra.mrb[36].mxu0 %v1318_v23  ;;  %v6534_v11 = vpop.eup %5293 }
 0x498   : > { %v1506_v27 = vpop.permute.xlu0 %1505  ;;  %v6537_v37 = vpop.eup %5295 }
 0x499   : > { %5305 = vpow2.f32 %v1119_v8  ;;  %v1801_v14 = vpop.permute.xlu1 %1800  ;;  %4873 = vmatprep.mubr.msk.bf16.mxu1 %vm899_vm2, %v1506_v27  ;;  %v1320_v20 = vpack.c.bf16 %v6537_v37, %v6534_v11 }
 0x49a   : > { %4874 = vmatmul.mubr.msk.bf16.gmra.mrb[28].mxu1 %vm899_vm2, %v1508_v44 }
 0x49b   : > { %v6540_v36 = vpop.eup %5297 }
 0x49c   : > { %v1805_v18 = vpop.permute.xlu0 %1804  ;;  %v1319_v59 = vpack.c.bf16 %v6540_v36, %v6532_v25  ;;  %v6546_v24 = vpop.eup %5299 }
 0x49d   : > { %v1803_v40 = vpop.permute.xlu1 %1802 }
 0x49e   : > { %4837 = vmatprep.mubr.bf16.mxu0 %v1319_v59 }
 0x49f   : > { %4838 = vmatmul.mubr.bf16.gmra.mrb[40].mxu0 %v1320_v20  ;;  %v6548_v61 = vpop.eup %5301 }
 0x4a0   : > { %v1809_v41 = vpop.permute.xlu0 %1808  ;;  %v6550_v34 = vpop.eup %5303 }
 0x4a1   : > { %v1807_v63 = vpop.permute.xlu1 %1806  ;;  %v1322_v7 = vpack.c.bf16 %v6550_v34, %v6548_v61 }
 0x4a3   : > { %v6552_v35 = vpop.eup %5305 }
 0x4a4   : > { %v1813_v6 = vpop.permute.xlu0 %1812  ;;  %v1321_v38 = vpack.c.bf16 %v6552_v35, %v6546_v24 }
 0x4a5   : > { %v1811_v10 = vpop.permute.xlu1 %1810 }
 0x4a6   : > { %4841 = vmatprep.mubr.bf16.mxu0 %v1321_v38 }
 0x4a7   : > { %4842 = vmatmul.mubr.bf16.gmra.mrb[44].mxu0 %v1322_v7 }
 0x4a8   : > { %4879 = vmatprep.mubr.msk.bf16.mxu0 %vm899_vm2, %v1801_v14  ;;  %v2135_v42 = vpop.permute.xlu0 %2134 }
 0x4a9   : > { %v1815_v12 = vpop.permute.xlu1 %1814  ;;  %5161 = vmatprep.subr.msk.bf16.mxu1 %vm899_vm2, %v2135_v42  ;;  %v2175_v52 = vsel %vm899_vm2, %v2135_v42, 0 }
 0x4aa   : > { %4928 = vmatpush3.bf16.xpose.msra.mxu1 %v2175_v52 }
 0x4ac   : > { %v2139_v32 = vpop.permute.xlu0 %2138 }
 0x4ad   : > { %v2137_v31 = vpop.permute.xlu1 %2136  ;;  %v2181_v62 = vsel %vm899_vm2, %v2139_v32, 0 }
 0x4ae   : > { %5162 = vmatprep.subr.msk.bf16.mxu1 %vm899_vm2, %v2137_v31  ;;  %v2178_v58 = vsel %vm899_vm2, %v2137_v31, 0 }
 0x4af   : > { %4880 = vmatmul.mubr.msk.bf16.vlgmr.msra.gmra.mrb[48].mxu0 %vm899_vm2, %v1803_v40 }
 0x4b0   : > { %4883 = vmatprep.mubr.msk.bf16.mxu0 %vm899_vm2, %v1805_v18  ;;  %v2143_v15 = vpop.permute.xlu0 %2142 }
 0x4b1   : > { %v2141_v1 = vpop.permute.xlu1 %2140  ;;  %v2187_v44 = vsel %vm899_vm2, %v2143_v15, 0 }
 0x4b2   : > { %4930 = vmatpush3.bf16.xpose.msra.mxu1 %v2178_v58  ;;  %v2184_v4 = vsel %vm899_vm2, %v2141_v1, 0 }
 0x4b3   : > { %5163 = vmatprep.subr.msk.bf16.mxu1 %vm899_vm2, %v2139_v32 }
 0x4b4   : > { %v2147_v49 = vpop.permute.xlu0 %2146 }
 0x4b5   : > { %v2145_v23 = vpop.permute.xlu1 %2144  ;;  %v2193_v27 = vsel %vm899_vm2, %v2147_v49, 0 }
 0x4b6   : > { %v2190_v8 = vsel %vm899_vm2, %v2145_v23, 0 }
 0x4b7   : > { %4884 = vmatmul.mubr.msk.bf16.gmra.mrb[52].mxu0 %vm899_vm2, %v1807_v63 }
 0x4b8   : > { %4887 = vmatprep.mubr.msk.bf16.mxu0 %vm899_vm2, %v1809_v41  ;;  %v2119_v47 = vpop.permute.xlu0 %2118 }
 0x4b9   : > { %4943 = vmatprep.mubr.msk.bf16.mxu1 %vm899_vm2, %v2119_v47  ;;  %v2149_v14 = vpop.permute.xlu1 %2148  ;;  %v4526_v47 = vld [vmem:[%s5819_s24 + $0x78] sm:$0xff]  }
 0x4ba   : > { %4932 = vmatpush3.bf16.xpose.msra.mxu1 %v2181_v62  ;;  %v2196_v18 = vsel %vm899_vm2, %v2149_v14, 0  ;;  %v4525_v62 = vld [vmem:[%s5819_s24 + $0x70] sm:$0xff]  }
 0x4bb   : > { %5164 = vmatprep.subr.msk.bf16.mxu1 %vm899_vm2, %v2141_v1 }
 0x4bc   : > { %v2123_v40 = vpop.permute.xlu0 %2122 }
 0x4bd   : > { %v2121_v59 = vpop.permute.xlu1 %2120 }
 0x4bf   : > { %4888 = vmatmul.mubr.msk.bf16.gmra.mrb[56].mxu0 %vm899_vm2, %v1811_v10 }
 0x4c0   : > { %4891 = vmatprep.mubr.msk.bf16.mxu0 %vm899_vm2, %v1813_v6  ;;  %v2127_v41 = vpop.permute.xlu0 %2126 }
 0x4c1   : > { %v2125_v20 = vpop.permute.xlu1 %2124 }
 0x4c2   : > { %4934 = vmatpush3.bf16.xpose.msra.mxu1 %v2184_v4  ;;  %v4446_v4 = vunpack.c.l.bf16 %v4526_v47 }
 0x4c3   : > { %5165 = vmatprep.subr.msk.bf16.mxu1 %vm899_vm2, %v2143_v15 }
 0x4c5   : > { %v2129_v6 = vpop.permute.xlu1 %2128 }
 0x4c7   : > { %4892 = vmatmul.mubr.msk.bf16.gmra.mrb[60].mxu0 %vm899_vm2, %v1815_v12 }
 0x4ca   : > { %4936 = vmatpush3.bf16.xpose.msra.mxu1 %v2187_v44 }
 0x4cb   : > { %5166 = vmatprep.subr.msk.bf16.mxu1 %vm899_vm2, %v2145_v23  ;;  %v4442_v23 = vunpack.c.l.bf16 %v4525_v62 }
 0x4d2   : > { %4938 = vmatpush3.bf16.xpose.msra.mxu1 %v2190_v8 }
 0x4d3   : > { %5167 = vmatprep.subr.msk.bf16.mxu1 %vm899_vm2, %v2147_v49 }
 0x4da   : > { %4940 = vmatpush3.bf16.xpose.msra.mxu1 %v2193_v27 }
 0x4db   : > { %5168 = vmatprep.subr.msk.bf16.mxu1 %vm899_vm2, %v2149_v14 }
 0x4e2   : > { %4942 = vmatpush3.bf16.xpose.msra.mxu1 %v2196_v18  ;;  %v4443_v18 = vunpack.c.h.bf16 %v4525_v62 }
 0x4e9   : > { %4944 = vmatmul.mubr.msk.bf16.vlgmr.msra.gmra.mrb[32].mxu1 %vm899_vm2, %v2121_v59 }
 0x4ea   : > { %4947 = vmatprep.mubr.msk.bf16.mxu1 %vm899_vm2, %v2123_v40 }
 0x4f1   : > { %4948 = vmatmul.mubr.msk.bf16.gmra.mrb[36].mxu1 %vm899_vm2, %v2125_v20  ;;  %v6586_v63 = vpop.xlane.xlu0 %1674 }
 0x4f2   : > { %4951 = vmatprep.mubr.msk.bf16.mxu1 %vm899_vm2, %v2127_v41  ;;  %v4447_v41 = vunpack.c.h.bf16 %v4526_v47 }
 0x4f5   : > { %v1671_v38 = vpop.xlane.xlu0 %1670 }
 0x4f6   : > { %v1702_v10 = vsub.f32 %v6454_v0, %v1671_v38  ;;  %v1673_v7 = vpop.xlane.xlu1 %1672 }
 0x4f7   : > { %v1703_v42 = vsub.f32 %v6456_v17, %v1673_v7 }
 0x4f8   : > { %v1718_v12 = vmul.f32 1.442695, %v1702_v10 }
 0x4f9   : > { %v1720_v52 = vmul.f32 1.442695, %v1703_v42  ;;  %4952 = vmatmul.mubr.msk.bf16.gmra.mrb[40].mxu1 %vm899_vm2, %v2129_v6 }
 0x4fa   : > { %5307 = vpow2.f32 %v1718_v12 }
 0x4fb   : > { %5309 = vpow2.f32 %v1720_v52 }
 0x504   : > { %v6592_v32 = vpop.eup %5307 }
 0x505   : > { %v6594_v31 = vpop.eup %5309 }
 0x506   : > { %v1940_v15 = vpack.c.bf16 %v6594_v31, %v6592_v32 }
 0x508   : > { %4911 = vmatprep.mubr.bf16.mxu0 %v1940_v15 }
 0x561   : > { %v6598_v0 = vpop.f32.mrb[32].mxu0 }
 0x562   : > { %7857 = vst [vmem:[#allocation6_spill] sm:$0xff] %v6598_v0  ;;  %v6600_v58 = vpop.f32.mrb[33].mxu0  ;;  %v4529_v0 = vld [vmem:[%s5819_s24 + $0x90] sm:$0xff]  }
 0x563   : > { %7858 = vst [vmem:[#allocation7_spill] sm:$0xff] %v6600_v58  ;;  %v6602_v49 = vpop.f32.mrb[34].mxu0 }
 0x564   : > { %7859 = vst [vmem:[#allocation8_spill] sm:$0xff] %v6602_v49  ;;  %v6604_v17 = vpop.f32.mrb[35].mxu0 }
 0x565   : > { %7860 = vst [vmem:[#allocation9_spill] sm:$0xff] %v6604_v17 }
 0x56a   : > { %v6608_v1 = vpop.f32.mrb[36].mxu0 }
 0x56b   : > { %7861 = vst [vmem:[#allocation10_spill] sm:$0xff] %v6608_v1  ;;  %v6610_v44 = vpop.f32.mrb[37].mxu0 }
 0x56c   : > { %7862 = vst [vmem:[#allocation11_spill] sm:$0xff] %v6610_v44  ;;  %v6612_v8 = vpop.f32.mrb[38].mxu0  ;;  %v4530_v44 = vld [vmem:[%s5819_s24 + $0x98] sm:$0xff]  }
 0x56d   : > { %7863 = vst [vmem:[#allocation12_spill] sm:$0xff] %v6612_v8  ;;  %v6614_v27 = vpop.f32.mrb[39].mxu0  ;;  %v4875_v14 = vpop.f32.mrb[28].mxu1  ;;  %v4462_v58 = vunpack.c.l.bf16 %v4530_v44 }
 0x56e   : > { %7864 = vst [vmem:[#allocation13_spill] sm:$0xff] %v6614_v27  ;;  %v6616_v59 = vadd.f32 %v4875_v14, %v4446_v4  ;;  %v1655_v40 = vpop.f32.mrb[29].mxu1  ;;  %v1677_v14 = vpop.xlane.xlu0 %1676 }
 0x56f   : > { %v6618_v20 = vadd.f32 %v4442_v23, %v1655_v40  ;;  %v4876_v6 = vpop.f32.mrb[30].mxu1 }
 0x570   : > { %1698 = vmax.xlane.f32.xlu0 %v6616_v59  ;;  %v1658_v38 = vpop.f32.mrb[31].mxu1  ;;  %v6626_v42 = vadd.f32 %v4876_v6, %v4447_v41 }
 0x571   : > { %v6621_v10 = vadd.f32 %v4443_v18, %v1658_v38  ;;  %1694 = vmax.xlane.f32.xlu1 %v6618_v20 }
 0x572   : > { %v6624_v7 = vpop.f32.mrb[40].mxu0  ;;  %v6644_v6 = vpop.xlane.xlu0 %1682 }
 0x573   : > { %7865 = vst [vmem:[#allocation14_spill] sm:$0xff] %v6624_v7  ;;  %v6628_v12 = vpop.f32.mrb[41].mxu0 }
 0x574   : > { %7866 = vst [vmem:[#allocation15_spill] sm:$0xff] %v6628_v12  ;;  %v6630_v52 = vpop.f32.mrb[42].mxu0  ;;  %1696 = vmax.xlane.f32.xlu0 %v6621_v10 }
 0x575   : > { %7867 = vst [vmem:[#allocation16_spill] sm:$0xff] %v6630_v52  ;;  %v6633_v15 = vpop.f32.mrb[43].mxu0  ;;  %1700 = vmax.xlane.f32.xlu1 %v6626_v42 }
 0x576   : > { %7868 = vst [vmem:[#allocation17_spill] sm:$0xff] %v6633_v15 }
 0x57a   : > { %v6636_v47 = vpop.f32.mrb[44].mxu0 }
 0x57b   : > { %7869 = vst [vmem:[#allocation18_spill] sm:$0xff] %v6636_v47  ;;  %v6638_v62 = vpop.f32.mrb[45].mxu0  ;;  %v1681_v47 = vpop.xlane.xlu0 %1680 }
 0x57c   : > { %7870 = vst [vmem:[#allocation19_spill] sm:$0xff] %v6638_v62  ;;  %v6640_v4 = vpop.f32.mrb[46].mxu0  ;;  %v1679_v62 = vpop.xlane.xlu1 %1678  ;;  %v1707_v12 = vsub.f32 %v6475_v19, %v1681_v47 }
 0x57d   : > { %7871 = vst [vmem:[#allocation20_spill] sm:$0xff] %v6640_v4  ;;  %v6642_v23 = vpop.f32.mrb[47].mxu0 }
 0x57e   : > { %7872 = vst [vmem:[#allocation21_spill] sm:$0xff] %v6642_v23  ;;  %v1728_v19 = vmul.f32 1.442695, %v1707_v12 }
 0x57f   : > { %v6657_v7 = vpop.xlane.xlu0 %1690 }
 0x580   : > { %v1685_v15 = vpop.xlane.xlu1 %1684 }
 0x582   : > { %v4881_v18 = vpop.f32.mrb[48].mxu0 }
 0x583   : > { %v1877_v40 = vpop.f32.mrb[49].mxu0  ;;  %v1689_v1 = vpop.xlane.xlu0 %1688 }
 0x584   : > { %v4882_v41 = vpop.f32.mrb[50].mxu0  ;;  %v1711_v12 = vsub.f32 %v6490_v50, %v1689_v1 }
 0x585   : > { %v1949_v38 = vpack.c.bf16 %v4882_v41, %v4881_v18  ;;  %v1880_v22 = vpop.f32.mrb[51].mxu0 }
 0x586   : > { %v1948_v52 = vpack.c.bf16 %v1880_v22, %v1877_v40  ;;  %2132 = vrot.lane.b32.xlu1 %v6259_v60, %s5688_s22  ;;  %v1736_v1 = vmul.f32 1.442695, %v1711_v12 }
 0x588   : > { %4895 = vmatprep.subr.bf16.mxu0 %v1948_v52 }
 0x589   : > { %4896 = vmatpush3.bf16.msra.mxu0 %v1948_v52  ;;  %v1705_v52 = vsub.f32 %v6461_v5, %v1677_v14  ;;  %v1706_v5 = vsub.f32 %v6463_v9, %v1679_v62  ;;  %v1687_v9 = vpop.xlane.xlu1 %1686  ;;  %v1709_v62 = vsub.f32 %v6470_v53, %v1685_v15 }
 0x58a   : > { %4897 = vmatprep.subr.bf16.mxu0 %v1949_v38  ;;  %2130 = vrot.lane.b32.xlu0 %v6261_v39, %s5688_s22  ;;  %v4885_v4 = vpop.f32.mrb[52].mxu0 }
 0x58b   : > { %2425 = vrot.lane.b32.xlu1 %v6232_v46, %s5689_s23  ;;  %v1893_v23 = vpop.f32.mrb[53].mxu0  ;;  %v1732_v15 = vmul.f32 1.442695, %v1709_v62 }
 0x58c   : > { %v4886_v18 = vpop.f32.mrb[54].mxu0 }
 0x58d   : > { %v1951_v41 = vpack.c.bf16 %v4886_v18, %v4885_v4  ;;  %v1896_v22 = vpop.f32.mrb[55].mxu0  ;;  %4898 = vmatpush3.bf16.msra.mxu0 %v1949_v38  ;;  %v1724_v18 = vmul.f32 1.442695, %v1705_v52  ;;  %v1710_v52 = vsub.f32 %v6477_v21, %v1687_v9  ;;  %v1693_v50 = vpop.xlane.xlu1 %1692  ;;  %v1712_v21 = vsub.f32 %v6481_v28, %v6657_v7 }
 0x58e   : > { %v1950_v40 = vpack.c.bf16 %v1896_v22, %v1893_v23  ;;  %2429 = vrot.lane.b32.xlu0 %v6242_v16, %s5689_s23  ;;  %v1704_v23 = vsub.f32 %v6450_v56, %v6586_v63  ;;  %v1726_v56 = vmul.f32 1.442695, %v1706_v5  ;;  %v1708_v63 = vsub.f32 %v6468_v13, %v6644_v6 }
 0x58f   : > { %2427 = vrot.lane.b32.xlu1 %v6230_v43, %s5689_s23  ;;  %5311 = vpow2.f32 %v1724_v18  ;;  %v1713_v5 = vsub.f32 %v6483_v29, %v1693_v50  ;;  %v4317_v18 = vld [vmem:[%s5840_s10 + $0x8] sm:$0xf]  ;;  %v1738_v28 = vmul.f32 1.442695, %v1712_v21 }
 0x590   : > { %4899 = vmatprep.subr.bf16.mxu0 %v1950_v40  ;;  %v1722_v8 = vmul.f32 1.442695, %v1704_v23  ;;  %5313 = vpow2.f32 %v1728_v19  ;;  %v1730_v6 = vmul.f32 1.442695, %v1708_v63 }
 0x591   : > { %4900 = vmatpush3.bf16.msra.mxu0 %v1950_v40 }
 0x592   : > { %2433 = vrot.lane.b32.xlu0 %v6253_v3, %s5689_s23  ;;  %v4889_v4 = vpop.f32.mrb[56].mxu0  ;;  %4901 = vmatprep.subr.bf16.mxu0 %v1951_v41  ;;  %5315 = vpow2.f32 %v1722_v8  ;;  %v1734_v8 = vmul.f32 1.442695, %v1710_v52 }
 0x593   : > { %2431 = vrot.lane.b32.xlu1 %v6240_v55, %s5689_s23  ;;  %v1909_v38 = vpop.f32.mrb[57].mxu0  ;;  %5317 = vpow2.f32 %v1726_v56 }
 0x594   : > { %v4890_v14 = vpop.f32.mrb[58].mxu0  ;;  %5319 = vpow2.f32 %v1730_v6 }
 0x595   : > { %v1953_v22 = vpack.c.bf16 %v4890_v14, %v4889_v4  ;;  %v1912_v40 = vpop.f32.mrb[59].mxu0  ;;  %4902 = vmatpush3.bf16.msra.mxu0 %v1951_v41  ;;  %5321 = vpow2.f32 %v1732_v15 }
 0x596   : > { %v1952_v47 = vpack.c.bf16 %v1912_v40, %v1909_v38  ;;  %2437 = vrot.lane.b32.xlu0 %v6261_v39, %s5689_s23  ;;  %5323 = vpow2.f32 %v1736_v1  ;;  %v1740_v40 = vmul.f32 1.442695, %v1713_v5  ;;  %v4528_v5 = vld [vmem:[%s5819_s24 + $0x88] sm:$0xff]  }
 0x597   : > { %2435 = vrot.lane.b32.xlu1 %v6249_v2, %s5689_s23  ;;  %5325 = vpow2.f32 %v1734_v8  ;;  %v4455_v27 = vunpack.c.h.bf16 %v4528_v5 }
 0x598   : > { %4903 = vmatprep.subr.bf16.mxu0 %v1952_v47  ;;  %5327 = vpow2.f32 %v1738_v28  ;;  %v4527_v28 = vld [vmem:[%s5819_s24 + $0x80] sm:$0xff]  }
 0x599   : > { %4904 = vmatpush3.bf16.msra.mxu0 %v1952_v47  ;;  %v6689_v14 = vpop.eup %5311  ;;  %v2466_v47 = vsel %vm1214_vm3, %v4317_v18, 0  ;;  %5329 = vpow2.f32 %v1740_v40  ;;  %v4451_v49 = vunpack.c.h.bf16 %v4527_v28 }
 0x59a   : > { %2759 = vrot.lane.b32.xlu0 %v6232_v46, %s5690_s19  ;;  %v4893_v41 = vpop.f32.mrb[60].mxu0  ;;  %4905 = vmatprep.subr.bf16.mxu0 %v1953_v22 }
 0x59b   : > { %2439 = vrot.lane.b32.xlu1 %v6259_v60, %s5689_s23  ;;  %v1925_v13 = vpop.f32.mrb[61].mxu0 }
 0x59c   : > { %v4894_v53 = vpop.f32.mrb[62].mxu0 }
 0x59d   : > { %v1955_v4 = vpack.c.bf16 %v4894_v53, %v4893_v41  ;;  %v1928_v23 = vpop.f32.mrb[63].mxu0  ;;  %4906 = vmatpush3.bf16.msra.mxu0 %v1953_v22  ;;  %v6694_v22 = vpop.eup %5313 }
 0x59e   : > { %v1954_v38 = vpack.c.bf16 %v1928_v23, %v1925_v13  ;;  %2763 = vrot.lane.b32.xlu0 %v6242_v16, %s5690_s19  ;;  %v6696_v7 = vpop.eup %5315 }
 0x59f   : > { %2761 = vrot.lane.b32.xlu1 %v6230_v43, %s5690_s19  ;;  %v6698_v29 = vpop.eup %5317  ;;  %v1941_v19 = vpack.c.bf16 %v6689_v14, %v6696_v7 }
 0x5a0   : > { %4907 = vmatprep.subr.bf16.mxu0 %v1954_v38  ;;  %v1942_v56 = vpack.c.bf16 %v6694_v22, %v6698_v29  ;;  %v6710_v63 = vpop.eup %5319 }
 0x5a1   : > { %4908 = vmatpush3.bf16.msra.mxu0 %v1954_v38  ;;  %v6714_v9 = vpop.eup %5321 }
 0x5a2   : > { %2767 = vrot.lane.b32.xlu0 %v6253_v3, %s5690_s19  ;;  %4909 = vmatprep.subr.bf16.mxu0 %v1955_v4  ;;  %v6718_v62 = vpop.eup %5323  ;;  %v1943_v41 = vpack.c.bf16 %v6714_v9, %v6710_v63 }
 0x5a3   : > { %2765 = vrot.lane.b32.xlu1 %v6240_v55, %s5690_s19  ;;  %7873 = vst [vmem:[#allocation22_spill] sm:$0xff] %v6718_v62  ;;  %v6720_v12 = vpop.eup %5325 }
 0x5a4   : > { %7874 = vst [vmem:[#allocation23_spill] sm:$0xff] %v6720_v12  ;;  %v1944_v13 = vpack.c.bf16 %v6718_v62, %v6720_v12  ;;  %v6730_v6 = vpop.eup %5327  ;;  %v4459_v12 = vunpack.c.h.bf16 %v4529_v0 }
 0x5a5   : > { %4910 = vmatpush3.bf16.msra.mxu0 %v1955_v4  ;;  %v6734_v52 = vpop.eup %5329 }
 0x5a6   : > { %2771 = vrot.lane.b32.xlu0 %v6261_v39, %s5690_s19  ;;  %5169 = vmatprep.subr.msk.bf16.mxu0 %vm1214_vm3, %v4317_v18  ;;  %v1945_v53 = vpack.c.bf16 %v6734_v52, %v6730_v6  ;;  %v4454_v18 = vunpack.c.l.bf16 %v4528_v5 }
 0x5a7   : > { %2769 = vrot.lane.b32.xlu1 %v6249_v2, %s5690_s19 }
 0x5a8   : > { %4912 = vmatmul.mubr.bf16.vlgmr.msra.gmra.mrb[64].mxu0 %v1941_v19 }
 0x5a9   : > { %4915 = vmatprep.mubr.bf16.mxu0 %v1942_v56  ;;  %4960 = vmatpush3.bf16.msra.mxu0 %v2466_v47 }
 0x5aa   : > { %2743 = vrot.lane.b32.xlu0 %v6232_v46, %s5691_s20 }
 0x5ab   : > { %2773 = vrot.lane.b32.xlu1 %v6259_v60, %s5690_s19 }
 0x5ae   : > { %2747 = vrot.lane.b32.xlu0 %v6242_v16, %s5691_s20 }
 0x5af   : > { %2745 = vrot.lane.b32.xlu1 %v6230_v43, %s5691_s20 }
 0x5b0   : > { %4916 = vmatmul.mubr.bf16.gmra.mrb[68].mxu0 %v1943_v41  ;;  %v4450_v41 = vunpack.c.l.bf16 %v4527_v28  ;;  %v4463_v28 = vunpack.c.h.bf16 %v4530_v44 }
 0x5b1   : > { %4919 = vmatprep.mubr.bf16.mxu0 %v1944_v13 }
 0x5b2   : > { %2751 = vrot.lane.b32.xlu0 %v6253_v3, %s5691_s20 }
 0x5b3   : > { %2749 = vrot.lane.b32.xlu1 %v6240_v55, %s5691_s20 }
 0x5b7   : > { %2753 = vrot.lane.b32.xlu1 %v6249_v2, %s5691_s20 }
 0x5b8   : > { %4920 = vmatmul.mubr.bf16.gmra.mrb[72].mxu0 %v1945_v53 }
 0x5bc   : > { %v4945_v15 = vpop.f32.mrb[32].mxu1 }
 0x5bd   : > { %v2232_v4 = vpop.f32.mrb[33].mxu1  ;;  %v6744_v56 = vadd.f32 %v4945_v15, %v4454_v18  ;;  %v4458_v15 = vunpack.c.l.bf16 %v4529_v0 }
 0x5be   : > { %v4946_v23 = vpop.f32.mrb[34].mxu1  ;;  %v6747_v53 = vadd.f32 %v4450_v41, %v2232_v4  ;;  %v4532_v4 = vld [vmem:[%s5819_s24 + $0xa8] sm:$0xff]   ;;  %v4531_v41 = vld [vmem:[%s5819_s24 + $0xa0] sm:$0xff]  }
 0x5bf   : > { %v2235_v50 = vpop.f32.mrb[35].mxu1  ;;  %v6752_v17 = vadd.f32 %v4946_v23, %v4455_v27  ;;  %v4470_v23 = vunpack.c.l.bf16 %v4532_v4  ;;  %v4471_v44 = vunpack.c.h.bf16 %v4532_v4 }
 0x5c0   : > { %v6754_v62 = vadd.f32 %v4451_v49, %v2235_v50  ;;  %v4466_v50 = vunpack.c.l.bf16 %v4531_v41 }
 0x5c4   : > { %v4949_v1 = vpop.f32.mrb[36].mxu1 }
 0x5c5   : > { %v2248_v38 = vpop.f32.mrb[37].mxu1  ;;  %v6757_v18 = vadd.f32 %v4949_v1, %v4462_v58  ;;  %v4467_v58 = vunpack.c.h.bf16 %v4531_v41 }
 0x5c6   : > { %v4950_v8 = vpop.f32.mrb[38].mxu1  ;;  %v6761_v5 = vadd.f32 %v4458_v15, %v2248_v38 }
 0x5c7   : > { %v2251_v21 = vpop.f32.mrb[39].mxu1  ;;  %v6768_v49 = vadd.f32 %v4950_v8, %v4463_v28 }
 0x5c8   : > { %v6765_v27 = vadd.f32 %v4459_v12, %v2251_v21 }
 0x5cc   : > { %v4953_v40 = vpop.f32.mrb[40].mxu1 }
 0x5cd   : > { %v2264_v19 = vpop.f32.mrb[41].mxu1  ;;  %v6771_v0 = vadd.f32 %v4953_v40, %v4470_v23 }
 0x5ce   : > { %v4954_v47 = vpop.f32.mrb[42].mxu1  ;;  %v6774_v1 = vadd.f32 %v4466_v50, %v2264_v19 }
 0x5cf   : > { %v2267_v13 = vpop.f32.mrb[43].mxu1  ;;  %v6780_v38 = vadd.f32 %v4954_v47, %v4471_v44 }
 0x5d0   : > { %v6777_v12 = vadd.f32 %v4467_v58, %v2267_v13 }
 0x5d1   : > { %2299 = vmax.xlane.f32.xlu0 %v6744_v56 }
 0x5d5   : > { %2295 = vmax.xlane.f32.xlu0 %v6747_v53 }
 0x5d9   : > { %2301 = vmax.xlane.f32.xlu0 %v6752_v17 }
 0x5db   : > { %2297 = vmax.xlane.f32.xlu1 %v6754_v62 }
 0x5dd   : > { %2307 = vmax.xlane.f32.xlu0 %v6757_v18 }
 0x5df   : > { %2303 = vmax.xlane.f32.xlu1 %v6761_v5 }
 0x5e1   : > { %2305 = vmax.xlane.f32.xlu0 %v6765_v27 }
 0x5e3   : > { %2309 = vmax.xlane.f32.xlu1 %v6768_v49 }
 0x5e5   : > { %2315 = vmax.xlane.f32.xlu0 %v6771_v0 }
 0x5e7   : > { %2311 = vmax.xlane.f32.xlu1 %v6774_v1 }
 0x5e9   : > { %2313 = vmax.xlane.f32.xlu0 %v6777_v12 }
 0x5eb   : > { %2317 = vmax.xlane.f32.xlu1 %v6780_v38 }
 0x5fd   : > { %v1699_v8 = vpop.xlane.xlu0 %1698 }
 0x5fe   : > { %v1716_v21 = vsub.f32 %v6616_v59, %v1699_v8  ;;  %v1695_v40 = vpop.xlane.xlu1 %1694 }
 0x5ff   : > { %v1714_v19 = vsub.f32 %v6618_v20, %v1695_v40 }
 0x600   : > { %v1746_v15 = vmul.f32 1.442695, %v1716_v21 }
 0x601   : > { %v1742_v4 = vmul.f32 1.442695, %v1714_v19  ;;  %v1697_v28 = vpop.xlane.xlu0 %1696 }
 0x602   : > { %v1715_v13 = vsub.f32 %v6621_v10, %v1697_v28  ;;  %v1701_v41 = vpop.xlane.xlu1 %1700  ;;  %5331 = vpow2.f32 %v1746_v15 }
 0x603   : > { %v1717_v23 = vsub.f32 %v6626_v42, %v1701_v41  ;;  %5333 = vpow2.f32 %v1742_v4 }
 0x604   : > { %v1744_v47 = vmul.f32 1.442695, %v1715_v13 }
 0x605   : > { %v1748_v50 = vmul.f32 1.442695, %v1717_v23  ;;  %v2131_v58 = vpop.permute.xlu0 %2130 }
 0x606   : > { %5335 = vpow2.f32 %v1744_v47  ;;  %v2133_v44 = vpop.permute.xlu1 %2132  ;;  %4955 = vmatprep.mubr.msk.bf16.mxu1 %vm899_vm2, %v2131_v58 }
 0x607   : > { %5337 = vpow2.f32 %v1748_v50  ;;  %4956 = vmatmul.mubr.msk.bf16.gmra.mrb[44].mxu1 %vm899_vm2, %v2133_v44 }
 0x609   : > { %v2430_v59 = vpop.permute.xlu0 %2429 }
 0x60a   : > { %v2426_v20 = vpop.permute.xlu1 %2425 }
 0x60c   : > { %v6790_v21 = vpop.eup %5331 }
 0x60d   : > { %v2434_v8 = vpop.permute.xlu0 %2433  ;;  %v6792_v40 = vpop.eup %5333 }
 0x60e   : > { %v2428_v10 = vpop.permute.xlu1 %2427  ;;  %7875 = vst [vmem:[#allocation24_spill] sm:$0xff] %v6792_v40 }
 0x610   : > { %v6794_v42 = vpop.eup %5335 }
 0x611   : > { %7876 = vst [vmem:[#allocation25_spill] sm:$0xff] %v6794_v42  ;;  %v6796_v19 = vpop.eup %5337  ;;  %v2438_v15 = vpop.permute.xlu0 %2437  ;;  %v1946_v4 = vpack.c.bf16 %v6794_v42, %v6792_v40 }
 0x612   : > { %7877 = vst [vmem:[#allocation26_spill] sm:$0xff] %v6796_v19  ;;  %v2432_v28 = vpop.permute.xlu1 %2431  ;;  %v1947_v13 = vpack.c.bf16 %v6796_v19, %v6790_v21 }
 0x613   : > { %4923 = vmatprep.mubr.bf16.mxu0 %v1946_v4 }
 0x614   : > { %4924 = vmatmul.mubr.bf16.gmra.mrb[76].mxu0 %v1947_v13 }
 0x615   : > { %4961 = vmatprep.mubr.msk.bf16.mxu0 %vm899_vm2, %v2426_v20  ;;  %v2760_v41 = vpop.permute.xlu0 %2759 }
 0x616   : > { %v2436_v23 = vpop.permute.xlu1 %2435  ;;  %5170 = vmatprep.subr.msk.bf16.mxu1 %vm899_vm2, %v2760_v41  ;;  %v2800_v47 = vsel %vm899_vm2, %v2760_v41, 0 }
 0x617   : > { %5010 = vmatpush3.bf16.xpose.msra.mxu1 %v2800_v47 }
 0x619   : > { %v2764_v50 = vpop.permute.xlu0 %2763 }
 0x61a   : > { %v2440_v58 = vpop.permute.xlu1 %2439 }
 0x61c   : > { %4962 = vmatmul.mubr.msk.bf16.vlgmr.msra.gmra.mrb[80].mxu0 %vm899_vm2, %v2428_v10  ;;  %v2806_v10 = vsel %vm899_vm2, %v2764_v50, 0 }
 0x61d   : > { %4965 = vmatprep.mubr.msk.bf16.mxu0 %vm899_vm2, %v2430_v59  ;;  %v2768_v44 = vpop.permute.xlu0 %2767 }
 0x61e   : > { %v2762_v42 = vpop.permute.xlu1 %2761 }
 0x61f   : > { %5171 = vmatprep.subr.msk.bf16.mxu1 %vm899_vm2, %v2762_v42  ;;  %v2803_v4 = vsel %vm899_vm2, %v2762_v42, 0 }
 0x620   : > { %5012 = vmatpush3.bf16.xpose.msra.mxu1 %v2803_v4 }
 0x621   : > { %5172 = vmatprep.subr.msk.bf16.mxu1 %vm899_vm2, %v2764_v50  ;;  %v2772_v20 = vpop.permute.xlu0 %2771 }
 0x622   : > { %v2766_v59 = vpop.permute.xlu1 %2765 }
 0x623   : > { %v2809_v42 = vsel %vm899_vm2, %v2766_v59, 0 }
 0x624   : > { %4966 = vmatmul.mubr.msk.bf16.gmra.mrb[84].mxu0 %vm899_vm2, %v2432_v28 }
 0x625   : > { %4969 = vmatprep.mubr.msk.bf16.mxu0 %vm899_vm2, %v2434_v8  ;;  %v2744_v13 = vpop.permute.xlu0 %2743  ;;  %v2812_v8 = vsel %vm899_vm2, %v2768_v44, 0 }
 0x626   : > { %5025 = vmatprep.mubr.msk.bf16.mxu1 %vm899_vm2, %v2744_v13  ;;  %v2770_v28 = vpop.permute.xlu1 %2769 }
 0x627   : > { %v2815_v41 = vsel %vm899_vm2, %v2770_v28, 0 }
 0x628   : > { %5014 = vmatpush3.bf16.xpose.msra.mxu1 %v2806_v10 }
 0x629   : > { %5173 = vmatprep.subr.msk.bf16.mxu1 %vm899_vm2, %v2766_v59  ;;  %v2748_v50 = vpop.permute.xlu0 %2747 }
 0x62c   : > { %4970 = vmatmul.mubr.msk.bf16.gmra.mrb[88].mxu0 %vm899_vm2, %v2436_v23  ;;  %v2774_v23 = vpop.permute.xlu1 %2773 }
 0x62d   : > { %4973 = vmatprep.mubr.msk.bf16.mxu0 %vm899_vm2, %v2438_v15  ;;  %v2818_v15 = vsel %vm899_vm2, %v2772_v20, 0  ;;  %v2821_v47 = vsel %vm899_vm2, %v2774_v23, 0 }
 0x630   : > { %5016 = vmatpush3.bf16.xpose.msra.mxu1 %v2809_v42 }
 0x631   : > { %5174 = vmatprep.subr.msk.bf16.mxu1 %vm899_vm2, %v2768_v44  ;;  %v2752_v44 = vpop.permute.xlu0 %2751 }
 0x634   : > { %4974 = vmatmul.mubr.msk.bf16.gmra.mrb[92].mxu0 %vm899_vm2, %v2440_v58  ;;  %v2746_v58 = vpop.permute.xlu1 %2745 }
 0x638   : > { %5018 = vmatpush3.bf16.xpose.msra.mxu1 %v2812_v8  ;;  %v2750_v4 = vpop.permute.xlu1 %2749 }
 0x639   : > { %5175 = vmatprep.subr.msk.bf16.mxu1 %vm899_vm2, %v2770_v28 }
 0x63c   : > { %v2754_v10 = vpop.permute.xlu1 %2753 }
 0x640   : > { %5020 = vmatpush3.bf16.xpose.msra.mxu1 %v2815_v41 }
 0x641   : > { %5176 = vmatprep.subr.msk.bf16.mxu1 %vm899_vm2, %v2772_v20 }
 0x648   : > { %5022 = vmatpush3.bf16.xpose.msra.mxu1 %v2818_v15 }
 0x649   : > { %5177 = vmatprep.subr.msk.bf16.mxu1 %vm899_vm2, %v2774_v23 }
 0x650   : > { %5024 = vmatpush3.bf16.xpose.msra.mxu1 %v2821_v47 }
 0x657   : > { %5026 = vmatmul.mubr.msk.bf16.vlgmr.msra.gmra.mrb[48].mxu1 %vm899_vm2, %v2746_v58 }
 0x658   : > { %5029 = vmatprep.mubr.msk.bf16.mxu1 %vm899_vm2, %v2748_v50 }
 0x65e   : > { %v6829_v13 = vpop.xlane.xlu0 %2299 }
 0x65f   : > { %5030 = vmatmul.mubr.msk.bf16.gmra.mrb[52].mxu1 %vm899_vm2, %v2750_v4 }
 0x660   : > { %5033 = vmatprep.mubr.msk.bf16.mxu1 %vm899_vm2, %v2752_v44 }
 0x662   : > { %v2296_v20 = vpop.xlane.xlu0 %2295 }
 0x663   : > { %v2327_v59 = vsub.f32 %v6747_v53, %v2296_v20 }
 0x665   : > { %v2343_v42 = vmul.f32 1.442695, %v2327_v59 }
 0x667   : > { %5034 = vmatmul.mubr.msk.bf16.gmra.mrb[56].mxu1 %vm899_vm2, %v2754_v10  ;;  %5339 = vpow2.f32 %v2343_v42 }
 0x668   : > { %v2298_v8 = vpop.xlane.xlu1 %2297 }
 0x669   : > { %v2328_v28 = vsub.f32 %v6754_v62, %v2298_v8 }
 0x66b   : > { %v2345_v41 = vmul.f32 1.442695, %v2328_v28 }
 0x66d   : > { %5341 = vpow2.f32 %v2345_v41  ;;  %v4534_v41 = vld [vmem:[%s5819_s24 + $0xb8] sm:$0xff]  }
 0x671   : > { %v6836_v15 = vpop.eup %5339 }
 0x672   : > { %7878 = vst [vmem:[#allocation27_spill] sm:$0xff] %v6836_v15 }
 0x677   : > { %v6838_v23 = vpop.eup %5341 }
 0x678   : > { %7879 = vst [vmem:[#allocation28_spill] sm:$0xff] %v6838_v23  ;;  %v2565_v47 = vpack.c.bf16 %v6838_v23, %v6836_v15 }
 0x67a   : > { %4993 = vmatprep.mubr.bf16.mxu0 %v2565_v47  ;;  %v4533_v47 = vld [vmem:[%s5819_s24 + $0xb0] sm:$0xff]  }
 0x67b   : > { %v6842_v53 = vpop.f32.mrb[64].mxu0 }
 0x67c   : > { %7880 = vst [vmem:[#allocation29_spill] sm:$0xff] %v6842_v53  ;;  %v6844_v50 = vpop.f32.mrb[65].mxu0 }
 0x67d   : > { %7881 = vst [vmem:[#allocation30_spill] sm:$0xff] %v6844_v50  ;;  %v6846_v58 = vpop.f32.mrb[66].mxu0  ;;  %v4478_v50 = vunpack.c.l.bf16 %v4534_v41 }
 0x67e   : > { %7882 = vst [vmem:[#allocation31_spill] sm:$0xff] %v6846_v58  ;;  %v6848_v62 = vpop.f32.mrb[67].mxu0 }
 0x67f   : > { %7883 = vst [vmem:[#allocation32_spill] sm:$0xff] %v6848_v62  ;;  %v4474_v62 = vunpack.c.l.bf16 %v4533_v47 }
 0x683   : > { %v6850_v44 = vpop.f32.mrb[68].mxu0 }
 0x684   : > { %7884 = vst [vmem:[#allocation33_spill] sm:$0xff] %v6850_v44  ;;  %v6852_v4 = vpop.f32.mrb[69].mxu0  ;;  %v4475_v44 = vunpack.c.h.bf16 %v4533_v47 }
 0x685   : > { %7885 = vst [vmem:[#allocation34_spill] sm:$0xff] %v6852_v4  ;;  %v6854_v20 = vpop.f32.mrb[70].mxu0 }
 0x686   : > { %7886 = vst [vmem:[#allocation35_spill] sm:$0xff] %v6854_v20  ;;  %v6856_v10 = vpop.f32.mrb[71].mxu0 }
 0x687   : > { %7887 = vst [vmem:[#allocation36_spill] sm:$0xff] %v6856_v10  ;;  %v4479_v10 = vunpack.c.h.bf16 %v4534_v41  ;;  %v2302_v41 = vpop.xlane.xlu0 %2301 }
 0x68b   : > { %v6858_v59 = vpop.f32.mrb[72].mxu0 }
 0x68c   : > { %7888 = vst [vmem:[#allocation37_spill] sm:$0xff] %v6858_v59  ;;  %v6860_v42 = vpop.f32.mrb[73].mxu0 }
 0x68d   : > { %7889 = vst [vmem:[#allocation38_spill] sm:$0xff] %v6860_v42  ;;  %v6862_v8 = vpop.f32.mrb[74].mxu0 }
 0x68e   : > { %7890 = vst [vmem:[#allocation39_spill] sm:$0xff] %v6862_v8  ;;  %v6864_v28 = vpop.f32.mrb[75].mxu0  ;;  %v6888_v8 = vpop.xlane.xlu0 %2307 }
 0x68f   : > { %7891 = vst [vmem:[#allocation40_spill] sm:$0xff] %v6864_v28 }
 0x6da   : > { %v4957_v58 = vpop.f32.mrb[44].mxu1 }
 0x6db   : > { %v6868_v53 = vadd.f32 %v4957_v58, %v4478_v50  ;;  %v2280_v4 = vpop.f32.mrb[45].mxu1 }
 0x6dc   : > { %v6870_v20 = vadd.f32 %v4474_v62, %v2280_v4  ;;  %v4958_v23 = vpop.f32.mrb[46].mxu1 }
 0x6dd   : > { %2323 = vmax.xlane.f32.xlu0 %v6868_v53  ;;  %v2283_v42 = vpop.f32.mrb[47].mxu1  ;;  %v6876_v28 = vadd.f32 %v4958_v23, %v4479_v10 }
 0x6de   : > { %v6873_v59 = vadd.f32 %v4475_v44, %v2283_v42  ;;  %2319 = vmax.xlane.f32.xlu1 %v6870_v20 }
 0x6e1   : > { %2321 = vmax.xlane.f32.xlu0 %v6873_v59 }
 0x6e2   : > { %2325 = vmax.xlane.f32.xlu1 %v6876_v28 }
 0x6e7   : > { %v6880_v50 = vpop.f32.mrb[76].mxu0 }
 0x6e8   : > { %7892 = vst [vmem:[#allocation41_spill] sm:$0xff] %v6880_v50  ;;  %v6882_v58 = vpop.f32.mrb[77].mxu0  ;;  %v2304_v50 = vpop.xlane.xlu1 %2303 }
 0x6e9   : > { %7893 = vst [vmem:[#allocation42_spill] sm:$0xff] %v6882_v58  ;;  %v6884_v62 = vpop.f32.mrb[78].mxu0 }
 0x6ea   : > { %7894 = vst [vmem:[#allocation43_spill] sm:$0xff] %v6884_v62  ;;  %v6886_v4 = vpop.f32.mrb[79].mxu0 }
 0x6eb   : > { %7895 = vst [vmem:[#allocation44_spill] sm:$0xff] %v6886_v4  ;;  %v2306_v4 = vpop.xlane.xlu0 %2305 }
 0x6ec   : > { %v2310_v19 = vpop.xlane.xlu1 %2309 }
 0x6ef   : > { %v4963_v47 = vpop.f32.mrb[80].mxu0  ;;  %v6901_v40 = vpop.xlane.xlu0 %2315 }
 0x6f0   : > { %v2502_v44 = vpop.f32.mrb[81].mxu0 }
 0x6f1   : > { %v4964_v42 = vpop.f32.mrb[82].mxu0 }
 0x6f2   : > { %v2574_v23 = vpack.c.bf16 %v4964_v42, %v4963_v47  ;;  %v2505_v10 = vpop.f32.mrb[83].mxu0 }
 0x6f3   : > { %v2573_v15 = vpack.c.bf16 %v2505_v10, %v2502_v44  ;;  %2757 = vrot.lane.b32.xlu1 %v6259_v60, %s5691_s20 }
 0x6f5   : > { %4977 = vmatprep.subr.bf16.mxu0 %v2573_v15 }
 0x6f6   : > { %4978 = vmatpush3.bf16.msra.mxu0 %v2573_v15  ;;  %v2330_v15 = vsub.f32 %v6752_v17, %v2302_v41  ;;  %v2331_v17 = vsub.f32 %v6761_v5, %v2304_v50  ;;  %v2334_v5 = vsub.f32 %v6768_v49, %v2310_v19 }
 0x6f7   : > { %4979 = vmatprep.subr.bf16.mxu0 %v2574_v23  ;;  %2755 = vrot.lane.b32.xlu0 %v6261_v39, %s5691_s20  ;;  %v4967_v58 = vpop.f32.mrb[84].mxu0 }
 0x6f8   : > { %3050 = vrot.lane.b32.xlu1 %v6232_v46, %s5692_s8  ;;  %v2518_v62 = vpop.f32.mrb[85].mxu0  ;;  %v2332_v46 = vsub.f32 %v6765_v27, %v2306_v4  ;;  %v2349_v41 = vmul.f32 1.442695, %v2330_v15  ;;  %v2357_v15 = vmul.f32 1.442695, %v2334_v5 }
 0x6f9   : > { %v4968_v47 = vpop.f32.mrb[86].mxu0 }
 0x6fa   : > { %v2576_v42 = vpack.c.bf16 %v4968_v47, %v4967_v58  ;;  %v2521_v44 = vpop.f32.mrb[87].mxu0  ;;  %4980 = vmatpush3.bf16.msra.mxu0 %v2574_v23  ;;  %v2353_v27 = vmul.f32 1.442695, %v2332_v46  ;;  %5343 = vpow2.f32 %v2349_v41 }
 0x6fb   : > { %v2575_v10 = vpack.c.bf16 %v2521_v44, %v2518_v62  ;;  %3054 = vrot.lane.b32.xlu0 %v6242_v16, %s5692_s8  ;;  %v2329_v16 = vsub.f32 %v6744_v56, %v6829_v13  ;;  %v2314_v44 = vpop.xlane.xlu0 %2313  ;;  %v2351_v56 = vmul.f32 1.442695, %v2331_v17 }
 0x6fc   : > { %3052 = vrot.lane.b32.xlu1 %v6230_v43, %s5692_s8  ;;  %5345 = vpow2.f32 %v2353_v27  ;;  %v2336_v13 = vsub.f32 %v6777_v12, %v2314_v44 }
 0x6fd   : > { %4981 = vmatprep.subr.bf16.mxu0 %v2575_v10 }
 0x6fe   : > { %4982 = vmatpush3.bf16.msra.mxu0 %v2575_v10  ;;  %v2361_v12 = vmul.f32 1.442695, %v2336_v13 }
 0x6ff   : > { %3058 = vrot.lane.b32.xlu0 %v6253_v3, %s5692_s8  ;;  %v4971_v58 = vpop.f32.mrb[88].mxu0  ;;  %4983 = vmatprep.subr.bf16.mxu0 %v2576_v42  ;;  %v2347_v3 = vmul.f32 1.442695, %v2329_v16 }
 0x700   : > { %3056 = vrot.lane.b32.xlu1 %v6240_v55, %s5692_s8  ;;  %v2534_v43 = vpop.f32.mrb[89].mxu0  ;;  %v2312_v55 = vpop.xlane.xlu1 %2311 }
 0x701   : > { %v4972_v62 = vpop.f32.mrb[90].mxu0  ;;  %5347 = vpow2.f32 %v2347_v3 }
 0x702   : > { %v2578_v23 = vpack.c.bf16 %v4972_v62, %v4971_v58  ;;  %v2537_v47 = vpop.f32.mrb[91].mxu0  ;;  %4984 = vmatpush3.bf16.msra.mxu0 %v2576_v42  ;;  %5349 = vpow2.f32 %v2351_v56  ;;  %v2335_v42 = vsub.f32 %v6774_v1, %v2312_v55  ;;  %v2337_v1 = vsub.f32 %v6771_v0, %v6901_v40 }
 0x703   : > { %v2577_v4 = vpack.c.bf16 %v2537_v47, %v2534_v43  ;;  %3062 = vrot.lane.b32.xlu0 %v6261_v39, %s5692_s8  ;;  %v2333_v39 = vsub.f32 %v6757_v18, %v6888_v8  ;;  %5351 = vpow2.f32 %v2357_v15  ;;  %v4350_v8 = vld [vmem:[%s5840_s10 + $0xc] sm:$0xf] }
 0x704   : > { %3060 = vrot.lane.b32.xlu1 %v6249_v2, %s5692_s8  ;;  %v2318_v46 = vpop.xlane.xlu1 %2317  ;;  %v2359_v43 = vmul.f32 1.442695, %v2335_v42  ;;  %5353 = vpow2.f32 %v2361_v12  ;;  %v3091_v47 = vsel %vm1214_vm3, %v4350_v8, 0  ;;  %v2363_v27 = vmul.f32 1.442695, %v2337_v1  ;;  %v4536_v42 = vld [vmem:[%s5819_s24 + $0xc8] sm:$0xff]  }
 0x705   : > { %4985 = vmatprep.subr.bf16.mxu0 %v2577_v4  ;;  %v2355_v16 = vmul.f32 1.442695, %v2333_v39  ;;  %v2338_v18 = vsub.f32 %v6780_v38, %v2318_v46  ;;  %v4535_v39 = vld [vmem:[%s5819_s24 + $0xc0] sm:$0xff]   ;;  %v4537_v1 = vld [vmem:[%s5819_s24 + $0xd0] sm:$0xff]  }
 0x706   : > { %4986 = vmatpush3.bf16.msra.mxu0 %v2577_v4  ;;  %v4483_v15 = vunpack.c.h.bf16 %v4535_v39 }
 0x707   : > { %v4975_v50 = vpop.f32.mrb[92].mxu0  ;;  %4987 = vmatprep.subr.bf16.mxu0 %v2578_v23  ;;  %5355 = vpow2.f32 %v2355_v16  ;;  %v2365_v41 = vmul.f32 1.442695, %v2338_v18  ;;  %v4487_v18 = vunpack.c.h.bf16 %v4536_v42 }
 0x708   : > { %3064 = vrot.lane.b32.xlu1 %v6259_v60, %s5692_s8  ;;  %v2550_v2 = vpop.f32.mrb[93].mxu0  ;;  %v6923_v60 = vpop.eup %5343  ;;  %5357 = vpow2.f32 %v2359_v43 }
 0x709   : > { %v4976_v10 = vpop.f32.mrb[94].mxu0  ;;  %v6928_v17 = vpop.eup %5345  ;;  %5359 = vpow2.f32 %v2365_v41  ;;  %v4491_v41 = vunpack.c.h.bf16 %v4537_v1 }
 0x70a   : > { %v2580_v49 = vpack.c.bf16 %v4976_v10, %v4975_v50  ;;  %v2553_v19 = vpop.f32.mrb[95].mxu0  ;;  %4988 = vmatpush3.bf16.msra.mxu0 %v2578_v23  ;;  %5361 = vpow2.f32 %v2363_v27  ;;  %v4490_v27 = vunpack.c.l.bf16 %v4537_v1 }
 0x70b   : > { %v2579_v58 = vpack.c.bf16 %v2553_v19, %v2550_v2  ;;  %v6930_v62 = vpop.eup %5347  ;;  %v4482_v2 = vunpack.c.l.bf16 %v4535_v39  ;;  %v4486_v19 = vunpack.c.l.bf16 %v4536_v42 }
 0x70c   : > { %v6932_v23 = vpop.eup %5349  ;;  %v2566_v38 = vpack.c.bf16 %v6923_v60, %v6930_v62 }
 0x70d   : > { %4989 = vmatprep.subr.bf16.mxu0 %v2579_v58  ;;  %v2567_v0 = vpack.c.bf16 %v6928_v17, %v6932_v23  ;;  %v6940_v40 = vpop.eup %5351 }
 0x70e   : > { %4990 = vmatpush3.bf16.msra.mxu0 %v2579_v58  ;;  %v6942_v4 = vpop.eup %5353 }
 0x70f   : > { %4991 = vmatprep.subr.bf16.mxu0 %v2580_v49  ;;  %7896 = vst [vmem:[#allocation45_spill] sm:$0xff] %v6942_v4 }
 0x711   : > { %v6944_v3 = vpop.eup %5355 }
 0x712   : > { %4992 = vmatpush3.bf16.msra.mxu0 %v2580_v49  ;;  %v6946_v44 = vpop.eup %5357  ;;  %v2568_v56 = vpack.c.bf16 %v6940_v40, %v6944_v3 }
 0x713   : > { %5178 = vmatprep.subr.msk.bf16.mxu0 %vm1214_vm3, %v4350_v8  ;;  %7897 = vst [vmem:[#allocation46_spill] sm:$0xff] %v6946_v44  ;;  %v2569_v55 = vpack.c.bf16 %v6942_v4, %v6946_v44  ;;  %v6952_v5 = vpop.eup %5359 }
 0x714   : > { %7898 = vst [vmem:[#allocation47_spill] sm:$0xff] %v6952_v5  ;;  %v6954_v13 = vpop.eup %5361 }
 0x715   : > { %4994 = vmatmul.mubr.bf16.vlgmr.msra.gmra.mrb[96].mxu0 %v2566_v38  ;;  %v2570_v50 = vpack.c.bf16 %v6952_v5, %v6954_v13 }
 0x716   : > { %4997 = vmatprep.mubr.bf16.mxu0 %v2567_v0  ;;  %5042 = vmatpush3.bf16.msra.mxu0 %v3091_v47 }
 0x71d   : > { %4998 = vmatmul.mubr.bf16.gmra.mrb[100].mxu0 %v2568_v56  ;;  %v4538_v56 = vld [vmem:[%s5819_s24 + $0xd8] sm:$0xff]  }
 0x71e   : > { %5001 = vmatprep.mubr.bf16.mxu0 %v2569_v55 }
 0x725   : > { %5002 = vmatmul.mubr.bf16.gmra.mrb[104].mxu0 %v2570_v50  ;;  %v4495_v50 = vunpack.c.h.bf16 %v4538_v56 }
 0x72a   : > { %v5027_v10 = vpop.f32.mrb[48].mxu1 }
 0x72b   : > { %v2857_v49 = vpop.f32.mrb[49].mxu1  ;;  %v6965_v43 = vadd.f32 %v5027_v10, %v4486_v19  ;;  %v4539_v10 = vld [vmem:[%s5819_s24 + $0xe0] sm:$0xff]  }
 0x72c   : > { %v6960_v12 = vadd.f32 %v4482_v2, %v2857_v49  ;;  %v5028_v46 = vpop.f32.mrb[50].mxu1  ;;  %v4494_v2 = vunpack.c.l.bf16 %v4538_v56  ;;  %v4499_v19 = vunpack.c.h.bf16 %v4539_v10 }
 0x72d   : > { %v2860_v58 = vpop.f32.mrb[51].mxu1  ;;  %v6970_v47 = vadd.f32 %v5028_v46, %v4487_v18  ;;  %v4498_v18 = vunpack.c.l.bf16 %v4539_v10 }
 0x72e   : > { %v6962_v16 = vadd.f32 %v4483_v15, %v2860_v58  ;;  %2920 = vmax.xlane.f32.xlu0 %v6960_v12 }
 0x730   : > { %2922 = vmax.xlane.f32.xlu1 %v6962_v16 }
 0x732   : > { %2924 = vmax.xlane.f32.xlu0 %v6965_v43  ;;  %v5031_v8 = vpop.f32.mrb[52].mxu1 }
 0x733   : > { %v2873_v38 = vpop.f32.mrb[53].mxu1  ;;  %v6983_v58 = vadd.f32 %v5031_v8, %v4494_v2 }
 0x734   : > { %v5032_v0 = vpop.f32.mrb[54].mxu1  ;;  %v6976_v42 = vadd.f32 %v4490_v27, %v2873_v38 }
 0x735   : > { %v2876_v55 = vpop.f32.mrb[55].mxu1  ;;  %v6980_v15 = vadd.f32 %v5032_v0, %v4495_v50 }
 0x736   : > { %v6973_v39 = vadd.f32 %v4491_v41, %v2876_v55  ;;  %2926 = vmax.xlane.f32.xlu0 %v6970_v47  ;;  %v4540_v41 = vld [vmem:[%s5819_s24 + $0xe8] sm:$0xff]  }
 0x737   : > { %v4503_v38 = vunpack.c.h.bf16 %v4540_v41  ;;  %v4502_v0 = vunpack.c.l.bf16 %v4540_v41 }
 0x738   : > { %2930 = vmax.xlane.f32.xlu1 %v6973_v39 }
 0x73a   : > { %2928 = vmax.xlane.f32.xlu0 %v6976_v42  ;;  %v5035_v49 = vpop.f32.mrb[56].mxu1 }
 0x73b   : > { %v2889_v46 = vpop.f32.mrb[57].mxu1  ;;  %v6996_v8 = vadd.f32 %v5035_v49, %v4502_v0 }
 0x73c   : > { %2934 = vmax.xlane.f32.xlu1 %v6980_v15  ;;  %v5036_v1 = vpop.f32.mrb[58].mxu1  ;;  %v6990_v55 = vadd.f32 %v4498_v18, %v2889_v46 }
 0x73d   : > { %v2892_v56 = vpop.f32.mrb[59].mxu1  ;;  %v6993_v50 = vadd.f32 %v5036_v1, %v4503_v38 }
 0x73e   : > { %v6987_v27 = vadd.f32 %v4499_v19, %v2892_v56  ;;  %2932 = vmax.xlane.f32.xlu0 %v6983_v58 }
 0x740   : > { %2938 = vmax.xlane.f32.xlu1 %v6987_v27 }
 0x742   : > { %2936 = vmax.xlane.f32.xlu0 %v6990_v55 }
 0x744   : > { %2942 = vmax.xlane.f32.xlu1 %v6993_v50 }
 0x746   : > { %2940 = vmax.xlane.f32.xlu0 %v6996_v8 }
 0x76a   : > { %v2324_v2 = vpop.xlane.xlu0 %2323 }
 0x76b   : > { %v2341_v10 = vsub.f32 %v6868_v53, %v2324_v2  ;;  %v2320_v19 = vpop.xlane.xlu1 %2319 }
 0x76c   : > { %v2339_v41 = vsub.f32 %v6870_v20, %v2320_v19 }
 0x76d   : > { %v2371_v46 = vmul.f32 1.442695, %v2341_v10 }
 0x76e   : > { %v2367_v18 = vmul.f32 1.442695, %v2339_v41  ;;  %v2322_v56 = vpop.xlane.xlu0 %2321 }
 0x76f   : > { %v2340_v1 = vsub.f32 %v6873_v59, %v2322_v56  ;;  %v2326_v38 = vpop.xlane.xlu1 %2325  ;;  %5363 = vpow2.f32 %v2371_v46 }
 0x770   : > { %v2342_v4 = vsub.f32 %v6876_v28, %v2326_v38  ;;  %5365 = vpow2.f32 %v2367_v18 }
 0x771   : > { %v2369_v49 = vmul.f32 1.442695, %v2340_v1 }
 0x772   : > { %v2373_v0 = vmul.f32 1.442695, %v2342_v4  ;;  %v2756_v44 = vpop.permute.xlu0 %2755 }
 0x773   : > { %5367 = vpow2.f32 %v2369_v49  ;;  %v2758_v5 = vpop.permute.xlu1 %2757  ;;  %5037 = vmatprep.mubr.msk.bf16.mxu1 %vm899_vm2, %v2756_v44 }
 0x774   : > { %5369 = vpow2.f32 %v2373_v0  ;;  %5038 = vmatmul.mubr.msk.bf16.gmra.mrb[60].mxu1 %vm899_vm2, %v2758_v5 }
 0x776   : > { %v3055_v5 = vpop.permute.xlu0 %3054 }
 0x777   : > { %v3051_v10 = vpop.permute.xlu1 %3050 }
 0x779   : > { %v7006_v53 = vpop.eup %5363 }
 0x77a   : > { %7899 = vst [vmem:[#allocation48_spill] sm:$0xff] %v7006_v53  ;;  %v7008_v20 = vpop.eup %5365  ;;  %v3059_v41 = vpop.permute.xlu0 %3058 }
 0x77b   : > { %v3053_v44 = vpop.permute.xlu1 %3052 }
 0x77d   : > { %v7010_v59 = vpop.eup %5367 }
 0x77e   : > { %v7012_v2 = vpop.eup %5369  ;;  %v2571_v28 = vpack.c.bf16 %v7010_v59, %v7008_v20  ;;  %v3063_v18 = vpop.permute.xlu0 %3062 }
 0x77f   : > { %7900 = vst [vmem:[#allocation49_spill] sm:$0xff] %v7012_v2  ;;  %v2572_v4 = vpack.c.bf16 %v7012_v2, %v7006_v53  ;;  %v3057_v19 = vpop.permute.xlu1 %3056 }
 0x780   : > { %5005 = vmatprep.mubr.bf16.mxu0 %v2571_v28 }
 0x781   : > { %5006 = vmatmul.mubr.bf16.gmra.mrb[108].mxu0 %v2572_v4 }
 0x782   : > { %5043 = vmatprep.mubr.msk.bf16.mxu0 %vm899_vm2, %v3051_v10 }
 0x783   : > { %v3061_v46 = vpop.permute.xlu1 %3060 }
 0x787   : > { %v3065_v56 = vpop.permute.xlu1 %3064 }
 0x789   : > { %5044 = vmatmul.mubr.msk.bf16.vlgmr.msra.gmra.mrb[112].mxu0 %vm899_vm2, %v3053_v44 }
 0x78a   : > { %5047 = vmatprep.mubr.msk.bf16.mxu0 %vm899_vm2, %v3055_v5 }
 0x791   : > { %5048 = vmatmul.mubr.msk.bf16.gmra.mrb[116].mxu0 %vm899_vm2, %v3057_v19 }
 0x792   : > { %5051 = vmatprep.mubr.msk.bf16.mxu0 %vm899_vm2, %v3059_v41 }
 0x799   : > { %5052 = vmatmul.mubr.msk.bf16.gmra.mrb[120].mxu0 %vm899_vm2, %v3061_v46 }
 0x79a   : > { %5055 = vmatprep.mubr.msk.bf16.mxu0 %vm899_vm2, %v3063_v18 }
 0x7a1   : > { %5056 = vmatmul.mubr.msk.bf16.gmra.mrb[124].mxu0 %vm899_vm2, %v3065_v56 }
 0x7bb   : > { %v2921_v1 = vpop.xlane.xlu0 %2920 }
 0x7bc   : > { %v2952_v38 = vsub.f32 %v6960_v12, %v2921_v1 }
 0x7bd   : > { %v2923_v49 = vpop.xlane.xlu1 %2922 }
 0x7be   : > { %v2968_v0 = vmul.f32 1.442695, %v2952_v38  ;;  %v2953_v28 = vsub.f32 %v6962_v16, %v2923_v49 }
 0x7c0   : > { %v2970_v4 = vmul.f32 1.442695, %v2953_v28  ;;  %5371 = vpow2.f32 %v2968_v0 }
 0x7c2   : > { %5373 = vpow2.f32 %v2970_v4  ;;  %v4541_v4 = vld [vmem:[%s5819_s24 + $0xf0] sm:$0xff]  }
 0x7ca   : > { %v7028_v10 = vpop.eup %5371 }
 0x7cc   : > { %v7030_v44 = vpop.eup %5373 }
 0x7cd   : > { %v3190_v5 = vpack.c.bf16 %v7030_v44, %v7028_v10 }
 0x7cf   : > { %5075 = vmatprep.mubr.bf16.mxu0 %v3190_v5  ;;  %v4506_v5 = vunpack.c.l.bf16 %v4541_v4 }
 0x7e8   : > { %v7034_v19 = vpop.f32.mrb[96].mxu0 }
 0x7e9   : > { %7901 = vst [vmem:[#allocation50_spill] sm:$0xff] %v7034_v19  ;;  %v7036_v12 = vpop.f32.mrb[97].mxu0 }
 0x7ea   : > { %7902 = vst [vmem:[#allocation51_spill] sm:$0xff] %v7036_v12  ;;  %v7038_v41 = vpop.f32.mrb[98].mxu0  ;;  %v4542_v12 = vld [vmem:[%s5819_s24 + $0xf8] sm:$0xff]  }
 0x7eb   : > { %7903 = vst [vmem:[#allocation52_spill] sm:$0xff] %v7038_v41  ;;  %v7040_v16 = vpop.f32.mrb[99].mxu0  ;;  %v4507_v41 = vunpack.c.h.bf16 %v4541_v4  ;;  %v4510_v19 = vunpack.c.l.bf16 %v4542_v12 }
 0x7ec   : > { %7904 = vst [vmem:[#allocation53_spill] sm:$0xff] %v7040_v16 }
 0x7f0   : > { %v7042_v46 = vpop.f32.mrb[100].mxu0 }
 0x7f1   : > { %7905 = vst [vmem:[#allocation54_spill] sm:$0xff] %v7042_v46  ;;  %v7044_v18 = vpop.f32.mrb[101].mxu0 }
 0x7f2   : > { %7906 = vst [vmem:[#allocation55_spill] sm:$0xff] %v7044_v18  ;;  %v7046_v56 = vpop.f32.mrb[102].mxu0 }
 0x7f3   : > { %7907 = vst [vmem:[#allocation56_spill] sm:$0xff] %v7046_v56  ;;  %v7048_v1 = vpop.f32.mrb[103].mxu0 }
 0x7f4   : > { %7908 = vst [vmem:[#allocation57_spill] sm:$0xff] %v7048_v1  ;;  %v4511_v1 = vunpack.c.h.bf16 %v4542_v12  ;;  %v2925_v12 = vpop.xlane.xlu0 %2924 }
 0x7f8   : > { %v7050_v38 = vpop.f32.mrb[104].mxu0 }
 0x7f9   : > { %v7052_v49 = vpop.f32.mrb[105].mxu0 }
 0x7fa   : > { %7909 = vst [vmem:[#allocation58_spill] sm:$0xff] %v7052_v49  ;;  %v7054_v0 = vpop.f32.mrb[106].mxu0 }
 0x7fb   : > { %v7056_v28 = vpop.f32.mrb[107].mxu0 }
 0x7fc   : > { %7910 = vst [vmem:[#allocation59_spill] sm:$0xff] %v7056_v28 }
 0x847   : > { %v5039_v16 = vpop.f32.mrb[60].mxu1 }
 0x848   : > { %v2905_v46 = vpop.f32.mrb[61].mxu1  ;;  %v7065_v49 = vadd.f32 %v5039_v16, %v4510_v19 }
 0x849   : > { %v7060_v18 = vadd.f32 %v4506_v5, %v2905_v46  ;;  %v5040_v56 = vpop.f32.mrb[62].mxu1 }
 0x84a   : > { %v2908_v2 = vpop.f32.mrb[63].mxu1  ;;  %v7068_v28 = vadd.f32 %v5040_v56, %v4511_v1  ;;  %v2927_v56 = vpop.xlane.xlu0 %2926 }
 0x84b   : > { %v7062_v53 = vadd.f32 %v4507_v41, %v2908_v2  ;;  %2944 = vmax.xlane.f32.xlu0 %v7060_v18 }
 0x84d   : > { %2946 = vmax.xlane.f32.xlu1 %v7062_v53 }
 0x84f   : > { %2948 = vmax.xlane.f32.xlu0 %v7065_v49 }
 0x851   : > { %2950 = vmax.xlane.f32.xlu1 %v7068_v28 }
 0x853   : > { %1125 = vadd.xlane.f32.xlu0 %v6501_v33 }
 0x854   : > { %v7073_v46 = vpop.f32.mrb[108].mxu0 }
 0x855   : > { %7911 = vst [vmem:[#allocation60_spill] sm:$0xff] %v7073_v46  ;;  %v7075_v4 = vpop.f32.mrb[109].mxu0  ;;  %1127 = vadd.xlane.f32.xlu1 %v6498_v48 }
 0x856   : > { %v7078_v2 = vpop.f32.mrb[110].mxu0 }
 0x857   : > { %7912 = vst [vmem:[#allocation61_spill] sm:$0xff] %v7078_v2  ;;  %v7080_v19 = vpop.f32.mrb[111].mxu0  ;;  %1129 = vadd.xlane.f32.xlu0 %v6506_v26  ;;  %v2931_v2 = vpop.xlane.xlu1 %2930 }
 0x859   : > { %1131 = vadd.xlane.f32.xlu1 %v6509_v45  ;;  %v2929_v45 = vpop.xlane.xlu0 %2928 }
 0x85b   : > { %1133 = vadd.xlane.f32.xlu0 %v6517_v54 }
 0x85c   : > { %v5045_v41 = vpop.f32.mrb[112].mxu0 }
 0x85d   : > { %v3127_v16 = vpop.f32.mrb[113].mxu0  ;;  %1135 = vadd.xlane.f32.xlu1 %v6525_v51 }
 0x85e   : > { %v5046_v33 = vpop.f32.mrb[114].mxu0 }
 0x85f   : > { %v3199_v1 = vpack.c.bf16 %v5046_v33, %v5045_v41  ;;  %v3130_v5 = vpop.f32.mrb[115].mxu0  ;;  %1137 = vadd.xlane.f32.xlu0 %v6519_v30  ;;  %v2954_v33 = vsub.f32 %v6965_v43, %v2925_v12 }
 0x860   : > { %v3198_v48 = vpack.c.bf16 %v3130_v5, %v3127_v16  ;;  %v2957_v5 = vsub.f32 %v6973_v39, %v2931_v2 }
 0x861   : > { %1139 = vadd.xlane.f32.xlu1 %v6522_v57  ;;  %v2955_v57 = vsub.f32 %v6970_v47, %v2927_v56 }
 0x862   : > { %5059 = vmatprep.subr.bf16.mxu0 %v3198_v48  ;;  %v2978_v43 = vmul.f32 1.442695, %v2957_v5  ;;  %v7913_v5 = vld [vmem:[#allocation23_spill] sm:$0xff] }
 0x863   : > { %5060 = vmatpush3.bf16.msra.mxu0 %v3198_v48  ;;  %1141 = vadd.xlane.f32.xlu0 %v6532_v25  ;;  %v2933_v25 = vpop.xlane.xlu0 %2932  ;;  %v2974_v48 = vmul.f32 1.442695, %v2955_v57 }
 0x864   : > { %v5049_v26 = vpop.f32.mrb[116].mxu0  ;;  %5061 = vmatprep.subr.bf16.mxu0 %v3199_v1 }
 0x865   : > { %1143 = vadd.xlane.f32.xlu1 %v6540_v36  ;;  %v3143_v54 = vpop.f32.mrb[117].mxu0  ;;  %v2956_v36 = vsub.f32 %v6976_v42, %v2929_v45  ;;  %v2972_v42 = vmul.f32 1.442695, %v2954_v33  ;;  %5375 = vpow2.f32 %v2974_v48  ;;  %v7914_v48 = vld [vmem:[#allocation22_spill] sm:$0xff] }
 0x866   : > { %v5050_v51 = vpop.f32.mrb[118].mxu0 }
 0x867   : > { %v3201_v46 = vpack.c.bf16 %v5050_v51, %v5049_v26  ;;  %5062 = vmatpush3.bf16.msra.mxu0 %v3199_v1  ;;  %1145 = vadd.xlane.f32.xlu0 %v6534_v11  ;;  %v3146_v30 = vpop.f32.mrb[119].mxu0  ;;  %v2935_v1 = vpop.xlane.xlu1 %2934 }
 0x868   : > { %v3200_v41 = vpack.c.bf16 %v3146_v30, %v3143_v54  ;;  %v2937_v45 = vpop.xlane.xlu0 %2936 }
 0x869   : > { %1147 = vadd.xlane.f32.xlu1 %v6537_v37 }
 0x86a   : > { %5063 = vmatprep.subr.bf16.mxu0 %v3200_v41 }
 0x86b   : > { %1149 = vadd.xlane.f32.xlu0 %v6546_v24  ;;  %5064 = vmatpush3.bf16.msra.mxu0 %v3200_v41  ;;  %v2976_v24 = vmul.f32 1.442695, %v2956_v36  ;;  %v2939_v12 = vpop.xlane.xlu1 %2938 }
 0x86c   : > { %v5053_v16 = vpop.f32.mrb[120].mxu0  ;;  %5065 = vmatprep.subr.bf16.mxu0 %v3201_v46  ;;  %v2961_v2 = vsub.f32 %v6987_v27, %v2939_v12 }
 0x86d   : > { %1151 = vadd.xlane.f32.xlu1 %v6552_v35  ;;  %v3159_v11 = vpop.f32.mrb[121].mxu0  ;;  %v2958_v35 = vsub.f32 %v6983_v58, %v2933_v25  ;;  %5377 = vpow2.f32 %v2976_v24  ;;  %v7916_v24 = vld [vmem:[#allocation24_spill] sm:$0xff] }
 0x86e   : > { %v5054_v37 = vpop.f32.mrb[122].mxu0  ;;  %5379 = vpow2.f32 %v2972_v42  ;;  %v7918_v42 = vld [vmem:[#allocation27_spill] sm:$0xff] }
 0x86f   : > { %v3203_v26 = vpack.c.bf16 %v5054_v37, %v5053_v16  ;;  %1153 = vadd.xlane.f32.xlu0 %v6548_v61  ;;  %v3162_v47 = vpop.f32.mrb[123].mxu0  ;;  %5066 = vmatpush3.bf16.msra.mxu0 %v3201_v46  ;;  %v2960_v61 = vsub.f32 %v6990_v55, %v2937_v45  ;;  %v2959_v46 = vsub.f32 %v6980_v15, %v2935_v1  ;;  %5381 = vpow2.f32 %v2978_v43  ;;  %v2941_v55 = vpop.xlane.xlu0 %2940  ;;  %v7919_v45 = vld [vmem:[#allocation28_spill] sm:$0xff]  ;;  %v7921_v43 = vld [vmem:[#allocation46_spill] sm:$0xff] }
 0x870   : > { %v3202_v56 = vpack.c.bf16 %v3162_v47, %v3159_v11  ;;  %v2980_v58 = vmul.f32 1.442695, %v2958_v35  ;;  %v2986_v15 = vmul.f32 1.442695, %v2961_v2  ;;  %v2943_v25 = vpop.xlane.xlu1 %2942 }
 0x871   : > { %1155 = vadd.xlane.f32.xlu1 %v6550_v34  ;;  %v2984_v30 = vmul.f32 1.442695, %v2960_v61  ;;  %v2982_v57 = vmul.f32 1.442695, %v2959_v46  ;;  %v2963_v27 = vsub.f32 %v6993_v50, %v2943_v25 }
 0x872   : > { %5067 = vmatprep.subr.bf16.mxu0 %v3202_v56  ;;  %5383 = vpow2.f32 %v2980_v58 }
 0x873   : > { %1754 = vadd.xlane.f32.xlu0 %v6696_v7  ;;  %5068 = vmatpush3.bf16.msra.mxu0 %v3202_v56  ;;  %5385 = vpow2.f32 %v2984_v30  ;;  %v2990_v1 = vmul.f32 1.442695, %v2963_v27  ;;  %v7917_v56 = vld [vmem:[#allocation25_spill] sm:$0xff] }
 0x874   : > { %v5057_v39 = vpop.f32.mrb[124].mxu0  ;;  %5069 = vmatprep.subr.bf16.mxu0 %v3203_v26  ;;  %5387 = vpow2.f32 %v2982_v57  ;;  %v7926_v27 = vld [vmem:[#allocation9_spill] sm:$0xff] }
 0x875   : > { %1756 = vadd.xlane.f32.xlu1 %v6689_v14  ;;  %v3175_v34 = vpop.f32.mrb[125].mxu0  ;;  %v2962_v14 = vsub.f32 %v6996_v8, %v2941_v55  ;;  %5389 = vpow2.f32 %v2986_v15 }
 0x876   : > { %v5058_v54 = vpop.f32.mrb[126].mxu0 }
 0x877   : > { %v3205_v51 = vpack.c.bf16 %v5058_v54, %v5057_v39  ;;  %1750 = vadd.xlane.f32.xlu0 %v6592_v32  ;;  %v3178_v7 = vpop.f32.mrb[127].mxu0  ;;  %5070 = vmatpush3.bf16.msra.mxu0 %v3203_v26  ;;  %v5376_v32 = vpop.eup %5375  ;;  %v2988_v16 = vmul.f32 1.442695, %v2962_v14 }
 0x878   : > { %v3204_v41 = vpack.c.bf16 %v3178_v7, %v3175_v34  ;;  %v5378_v36 = vpop.eup %5377 }
 0x879   : > { %1752 = vadd.xlane.f32.xlu1 %v6594_v31  ;;  %v5380_v31 = vpop.eup %5379  ;;  %5391 = vpow2.f32 %v2988_v16  ;;  %v7927_v16 = vld [vmem:[#allocation6_spill] sm:$0xff] }
 0x87a   : > { %5071 = vmatprep.subr.bf16.mxu0 %v3204_v41  ;;  %v5382_v33 = vpop.eup %5381  ;;  %v3191_v8 = vpack.c.bf16 %v5376_v32, %v5380_v31  ;;  %5393 = vpow2.f32 %v2990_v1 }
 0x87b   : > { %1762 = vadd.xlane.f32.xlu0 %v6710_v63  ;;  %5072 = vmatpush3.bf16.msra.mxu0 %v3204_v41  ;;  %v3192_v63 = vpack.c.bf16 %v5382_v33, %v5378_v36  ;;  %v7925_v41 = vld [vmem:[#allocation7_spill] sm:$0xff] }
 0x87c   : > { %5073 = vmatprep.subr.bf16.mxu0 %v3205_v51  ;;  %v5384_v50 = vpop.eup %5383 }
 0x87d   : > { %1764 = vadd.xlane.f32.xlu1 %v6714_v9  ;;  %v5386_v9 = vpop.eup %5385 }
 0x87e   : > { %v5388_v11 = vpop.eup %5387 }
 0x87f   : > { %1758 = vadd.xlane.f32.xlu0 %v6698_v29  ;;  %5074 = vmatpush3.bf16.msra.mxu0 %v3205_v51  ;;  %v5390_v29 = vpop.eup %5389  ;;  %v3193_v37 = vpack.c.bf16 %v5388_v11, %v5384_v50 }
 0x880   : > { %v3194_v26 = vpack.c.bf16 %v5390_v29, %v5386_v9 }
 0x881   : > { %1760 = vadd.xlane.f32.xlu1 %v6694_v22 }
 0x882   : > { %5076 = vmatmul.mubr.bf16.vlgmr.msra.gmra.mrb[128].mxu0 %v3191_v8 }
 0x883   : > { %1770 = vadd.xlane.f32.xlu0 %v6730_v6  ;;  %5079 = vmatprep.mubr.bf16.mxu0 %v3192_v63  ;;  %v5392_v22 = vpop.eup %5391  ;;  %v7915_v6 = vld [vmem:[#allocation26_spill] sm:$0xff]  ;;  %v7928_v63 = vld [vmem:[#allocation8_spill] sm:$0xff] }
 0x884   : > { %v5394_v47 = vpop.eup %5393 }
 0x885   : > { %1772 = vadd.xlane.f32.xlu1 %v6734_v52  ;;  %v3195_v52 = vpack.c.bf16 %v5394_v47, %v5392_v22 }
 0x887   : > { %1766 = vadd.xlane.f32.xlu0 %v7913_v5  ;;  %v7929_v5 = vld [vmem:[#allocation11_spill] sm:$0xff] }
 0x889   : > { %1768 = vadd.xlane.f32.xlu1 %v7914_v48 }
 0x88a   : > { %5080 = vmatmul.mubr.bf16.gmra.mrb[132].mxu0 %v3193_v37 }
 0x88b   : > { %1778 = vadd.xlane.f32.xlu0 %v6790_v21  ;;  %5083 = vmatprep.mubr.bf16.mxu0 %v3194_v26  ;;  %v7920_v21 = vld [vmem:[#allocation47_spill] sm:$0xff]  ;;  %v7930_v26 = vld [vmem:[#allocation13_spill] sm:$0xff] }
 0x88d   : > { %1780 = vadd.xlane.f32.xlu1 %v7915_v6 }
 0x88f   : > { %1774 = vadd.xlane.f32.xlu0 %v7916_v24  ;;  %v7931_v24 = vld [vmem:[#allocation10_spill] sm:$0xff] }
 0x891   : > { %1776 = vadd.xlane.f32.xlu1 %v7917_v56 }
 0x892   : > { %5084 = vmatmul.mubr.bf16.gmra.mrb[136].mxu0 %v3195_v52 }
 0x893   : > { %2379 = vadd.xlane.f32.xlu0 %v6930_v62  ;;  %v7922_v62 = vld [vmem:[#allocation45_spill] sm:$0xff] }
 0x895   : > { %2381 = vadd.xlane.f32.xlu1 %v6923_v60  ;;  %v7923_v60 = vld [vmem:[#allocation48_spill] sm:$0xff] }
 0x897   : > { %2375 = vadd.xlane.f32.xlu0 %v7918_v42 }
 0x899   : > { %2377 = vadd.xlane.f32.xlu1 %v7919_v45  ;;  %v7932_v45 = vld [vmem:[#allocation12_spill] sm:$0xff] }
 0x89b   : > { %2387 = vadd.xlane.f32.xlu0 %v6944_v3 }
 0x89d   : > { %2389 = vadd.xlane.f32.xlu1 %v6940_v40 }
 0x89f   : > { %2383 = vadd.xlane.f32.xlu0 %v6932_v23 }
 0x8a1   : > { %2385 = vadd.xlane.f32.xlu1 %v6928_v17  ;;  %v7924_v17 = vld [vmem:[#allocation49_spill] sm:$0xff] }
 0x8a3   : > { %2395 = vadd.xlane.f32.xlu0 %v6954_v13 }
 0x8a5   : > { %2397 = vadd.xlane.f32.xlu1 %v7920_v21 }
 0x8a7   : > { %2391 = vadd.xlane.f32.xlu0 %v7921_v43 }
 0x8a9   : > { %2393 = vadd.xlane.f32.xlu1 %v7922_v62 }
 0x8ab   : > { %2399 = vadd.xlane.f32.xlu0 %v7008_v20 }
 0x8ad   : > { %2401 = vadd.xlane.f32.xlu1 %v7010_v59 }
 0x8af   : > { %3004 = vadd.xlane.f32.xlu0 %v5380_v31 }
 0x8b1   : > { %3006 = vadd.xlane.f32.xlu1 %v5376_v32 }
 0x8b3   : > { %3000 = vadd.xlane.f32.xlu0 %v7028_v10 }
 0x8b5   : > { %3002 = vadd.xlane.f32.xlu1 %v7030_v44 }
 0x8b7   : > { %3012 = vadd.xlane.f32.xlu0 %v5384_v50 }
 0x8b9   : > { %3014 = vadd.xlane.f32.xlu1 %v5388_v11 }
 0x8bb   : > { %3008 = vadd.xlane.f32.xlu0 %v5378_v36 }
 0x8bd   : > { %3010 = vadd.xlane.f32.xlu1 %v5382_v33 }
 0x8bf   : > { %3020 = vadd.xlane.f32.xlu0 %v5392_v22 }
 0x8c1   : > { %3022 = vadd.xlane.f32.xlu1 %v5394_v47 }
 0x8c3   : > { %3016 = vadd.xlane.f32.xlu0 %v5386_v9 }
 0x8c5   : > { %3018 = vadd.xlane.f32.xlu1 %v5390_v29 }
 0x8c7   : > { %2403 = vadd.xlane.f32.xlu0 %v7923_v60  ;;  %v7933_v60 = vld [vmem:[#allocation15_spill] sm:$0xff] }
 0x8c9   : > { %2405 = vadd.xlane.f32.xlu1 %v7924_v17 }
 0x8d8   : > { %v2945_v23 = vpop.xlane.xlu0 %2944 }
 0x8d9   : > { %v2964_v40 = vsub.f32 %v7060_v18, %v2945_v23 }
 0x8da   : > { %v2947_v3 = vpop.xlane.xlu1 %2946 }
 0x8db   : > { %v2992_v13 = vmul.f32 1.442695, %v2964_v40  ;;  %v2965_v20 = vsub.f32 %v7062_v53, %v2947_v3  ;;  %v7934_v3 = vld [vmem:[#allocation17_spill] sm:$0xff] }
 0x8dc   : > { %v2949_v59 = vpop.xlane.xlu0 %2948 }
 0x8dd   : > { %5395 = vpow2.f32 %v2992_v13  ;;  %v2994_v10 = vmul.f32 1.442695, %v2965_v20  ;;  %v2966_v44 = vsub.f32 %v7065_v49, %v2949_v59 }
 0x8de   : > { %v2951_v35 = vpop.xlane.xlu1 %2950 }
 0x8df   : > { %5397 = vpow2.f32 %v2994_v10  ;;  %v2996_v12 = vmul.f32 1.442695, %v2966_v44  ;;  %v2967_v61 = vsub.f32 %v7068_v28, %v2951_v35  ;;  %v7935_v10 = vld [vmem:[#allocation14_spill] sm:$0xff] }
 0x8e0   : > { %v1126_v39 = vpop.xlane.xlu0 %1125 }
 0x8e1   : > { %5399 = vpow2.f32 %v2996_v12  ;;  %v2998_v46 = vmul.f32 1.442695, %v2967_v61  ;;  %v7936_v61 = vld [vmem:[#allocation16_spill] sm:$0xff] }
 0x8e2   : > { %5401 = vrcp.f32 %v1126_v39  ;;  %v1128_v34 = vpop.xlane.xlu1 %1127 }
 0x8e3   : > { %5403 = vpow2.f32 %v2998_v46 }
 0x8e4   : > { %5405 = vrcp.f32 %v1128_v34  ;;  %v1130_v18 = vpop.xlane.xlu0 %1129 }
 0x8e5   : > { %5407 = vrcp.f32 %v1130_v18  ;;  %v7937_v18 = vld [vmem:[#allocation19_spill] sm:$0xff] }
 0x8e6   : > { %v1132_v53 = vpop.xlane.xlu1 %1131 }
 0x8e7   : > { %v5396_v2 = vpop.eup %5395  ;;  %5409 = vrcp.f32 %v1132_v53 }
 0x8e8   : > { %3024 = vadd.xlane.f32.xlu0 %v5396_v2  ;;  %v1134_v54 = vpop.xlane.xlu0 %1133 }
 0x8e9   : > { %v5398_v49 = vpop.eup %5397  ;;  %5411 = vrcp.f32 %v1134_v54 }
 0x8ea   : > { %v1136_v58 = vpop.xlane.xlu1 %1135  ;;  %3026 = vadd.xlane.f32.xlu1 %v5398_v49  ;;  %v3196_v51 = vpack.c.bf16 %v5398_v49, %v5396_v2  ;;  %v7938_v49 = vld [vmem:[#allocation21_spill] sm:$0xff] }
 0x8eb   : > { %v5400_v28 = vpop.eup %5399  ;;  %5413 = vrcp.f32 %v1136_v58 }
 0x8ec   : > { %v5402_v7 = vpop.eup %5401  ;;  %5087 = vmatprep.mubr.bf16.mxu0 %v3196_v51  ;;  %3028 = vadd.xlane.f32.xlu0 %v5400_v28  ;;  %v1138_v30 = vpop.xlane.xlu0 %1137 }
 0x8ed   : > { %v5404_v55 = vpop.eup %5403  ;;  %5415 = vrcp.f32 %v1138_v30  ;;  %v7145_v57 = vmul.f32 %v5402_v7, %v7925_v41  ;;  %v7939_v7 = vld [vmem:[#allocation18_spill] sm:$0xff] }
 0x8ee   : > { %v5406_v15 = vpop.eup %5405  ;;  %v1140_v25 = vpop.xlane.xlu1 %1139  ;;  %3030 = vadd.xlane.f32.xlu1 %v5404_v55  ;;  %v3197_v14 = vpack.c.bf16 %v5404_v55, %v5400_v28 }
 0x8ef   : > { %v5408_v32 = vpop.eup %5407  ;;  %5417 = vrcp.f32 %v1140_v25  ;;  %v7148_v36 = vmul.f32 %v5406_v15, %v7926_v27  ;;  %v7940_v15 = vld [vmem:[#allocation20_spill] sm:$0xff]  ;;  %v7941_v27 = vld [vmem:[#allocation29_spill] sm:$0xff] }
 0x8f0   : > { %5088 = vmatmul.mubr.bf16.gmra.mrb[140].mxu0 %v3197_v14  ;;  %v1142_v31 = vpop.xlane.xlu0 %1141  ;;  %v1430_v33 = vmul.f32 %v5408_v32, %v7927_v16 }
 0x8f1   : > { %v5410_v8 = vpop.eup %5409  ;;  %5419 = vrcp.f32 %v1142_v31 }
 0x8f2   : > { %v1144_v1 = vpop.xlane.xlu1 %1143  ;;  %v1431_v50 = vmul.f32 %v5410_v8, %v7928_v63  ;;  %v7942_v63 = vld [vmem:[#allocation31_spill] sm:$0xff] }
 0x8f3   : > { %v5412_v9 = vpop.eup %5411  ;;  %5421 = vrcp.f32 %v1144_v1 }
 0x8f4   : > { %v1146_v11 = vpop.xlane.xlu0 %1145  ;;  %v7153_v29 = vmul.f32 %v5412_v9, %v7929_v5 }
 0x8f5   : > { %v5414_v37 = vpop.eup %5413  ;;  %5423 = vrcp.f32 %v1146_v11 }
 0x8f6   : > { %v1148_v48 = vpop.xlane.xlu1 %1147  ;;  %v7156_v22 = vmul.f32 %v5414_v37, %v7930_v26  ;;  %v7943_v37 = vld [vmem:[#allocation30_spill] sm:$0xff] }
 0x8f7   : > { %v5416_v6 = vpop.eup %5415  ;;  %5425 = vrcp.f32 %v1148_v48 }
 0x8f8   : > { %v1150_v47 = vpop.xlane.xlu0 %1149  ;;  %v7159_v52 = vmul.f32 %v5416_v6, %v7931_v24 }
 0x8f9   : > { %v5418_v56 = vpop.eup %5417  ;;  %5427 = vrcp.f32 %v1150_v47 }
 0x8fa   : > { %v1152_v42 = vpop.xlane.xlu1 %1151  ;;  %v7162_v21 = vmul.f32 %v5418_v56, %v7932_v45  ;;  %v7944_v56 = vld [vmem:[#allocation32_spill] sm:$0xff] }
 0x8fb   : > { %v5420_v43 = vpop.eup %5419  ;;  %5429 = vrcp.f32 %v1152_v42 }
 0x8fc   : > { %v1154_v62 = vpop.xlane.xlu0 %1153  ;;  %v7165_v17 = vmul.f32 %v5420_v43, %v7933_v60 }
 0x8fd   : > { %v5422_v23 = vpop.eup %5421  ;;  %5431 = vrcp.f32 %v1154_v62  ;;  %v7945_v62 = vld [vmem:[#allocation33_spill] sm:$0xff] }
 0x8fe   : > { %v1156_v40 = vpop.xlane.xlu1 %1155  ;;  %v7168_v13 = vmul.f32 %v5422_v23, %v7934_v3  ;;  %v7946_v3 = vld [vmem:[#allocation35_spill] sm:$0xff] }
 0x8ff   : > { %v5424_v20 = vpop.eup %5423  ;;  %5433 = vrcp.f32 %v1156_v40 }
 0x900   : > { %v1755_v59 = vpop.xlane.xlu0 %1754  ;;  %v7171_v44 = vmul.f32 %v5424_v20, %v7935_v10  ;;  %v7947_v10 = vld [vmem:[#allocation34_spill] sm:$0xff] }
 0x901   : > { %v5426_v35 = vpop.eup %5425  ;;  %5435 = vrcp.f32 %v1755_v59 }
 0x902   : > { %v1757_v12 = vpop.xlane.xlu1 %1756  ;;  %v7174_v39 = vmul.f32 %v5426_v35, %v7936_v61 }
 0x903   : > { %v5428_v46 = vpop.eup %5427  ;;  %5437 = vrcp.f32 %v1757_v12 }
 0x904   : > { %v1751_v34 = vpop.xlane.xlu0 %1750  ;;  %v7177_v53 = vmul.f32 %v5428_v46, %v7937_v18 }
 0x905   : > { %v5430_v2 = vpop.eup %5429  ;;  %5439 = vrcp.f32 %v1751_v34  ;;  %v7948_v34 = vld [vmem:[#allocation36_spill] sm:$0xff] }
 0x906   : > { %v1753_v54 = vpop.xlane.xlu1 %1752  ;;  %v7180_v58 = vmul.f32 %v5430_v2, %v7938_v49  ;;  %v7949_v49 = vld [vmem:[#allocation37_spill] sm:$0xff] }
 0x907   : > { %v5432_v51 = vpop.eup %5431  ;;  %5441 = vrcp.f32 %v1753_v54 }
 0x908   : > { %v1763_v28 = vpop.xlane.xlu0 %1762  ;;  %v7183_v30 = vmul.f32 %v5432_v51, %v7939_v7 }
 0x909   : > { %v5434_v55 = vpop.eup %5433  ;;  %5443 = vrcp.f32 %v1763_v28 }
 0x90a   : > { %v1765_v41 = vpop.xlane.xlu1 %1764  ;;  %v7186_v25 = vmul.f32 %v5434_v55, %v7940_v15  ;;  %v7950_v55 = vld [vmem:[#allocation39_spill] sm:$0xff] }
 0x90b   : > { %v5436_v14 = vpop.eup %5435  ;;  %5445 = vrcp.f32 %v1765_v41 }
 0x90c   : > { %v1759_v32 = vpop.xlane.xlu0 %1758  ;;  %v2055_v31 = vmul.f32 %v5436_v14, %v7941_v27  ;;  %v7951_v14 = vld [vmem:[#allocation38_spill] sm:$0xff] }
 0x90d   : > { %v5438_v16 = vpop.eup %5437  ;;  %5447 = vrcp.f32 %v1759_v32 }
 0x90e   : > { %v1761_v8 = vpop.xlane.xlu1 %1760  ;;  %v7189_v1 = vadd.f32 %v2055_v31, %v1430_v33  ;;  %v2056_v9 = vmul.f32 %v5438_v16, %v7942_v63 }
 0x90f   : > { %v5440_v11 = vpop.eup %5439  ;;  %5449 = vrcp.f32 %v1761_v8  ;;  %v7952_v8 = vld [vmem:[#allocation40_spill] sm:$0xff] }
 0x910   : > { %v1771_v5 = vpop.xlane.xlu0 %1770  ;;  %v2053_v48 = vmul.f32 %v5440_v11, %v7943_v37  ;;  %v7193_v26 = vadd.f32 %v2056_v9, %v1431_v50 }
 0x911   : > { %v5442_v6 = vpop.eup %5441  ;;  %5451 = vrcp.f32 %v1771_v5  ;;  %v7953_v5 = vld [vmem:[#allocation41_spill] sm:$0xff] }
 0x912   : > { %v1773_v47 = vpop.xlane.xlu1 %1772  ;;  %v7196_v24 = vadd.f32 %v2053_v48, %v7145_v57  ;;  %v2054_v42 = vmul.f32 %v5442_v6, %v7944_v56 }
 0x913   : > { %v5444_v45 = vpop.eup %5443  ;;  %5453 = vrcp.f32 %v1773_v47  ;;  %v7954_v47 = vld [vmem:[#allocation43_spill] sm:$0xff] }
 0x914   : > { %v1767_v33 = vpop.xlane.xlu0 %1766  ;;  %v7200_v43 = vadd.f32 %v2054_v42, %v7148_v36  ;;  %v2059_v60 = vmul.f32 %v5444_v45, %v7945_v62  ;;  %v7955_v45 = vld [vmem:[#allocation42_spill] sm:$0xff] }
 0x915   : > { %v5446_v23 = vpop.eup %5445  ;;  %5455 = vrcp.f32 %v1767_v33 }
 0x916   : > { %v1769_v50 = vpop.xlane.xlu1 %1768  ;;  %v7204_v40 = vadd.f32 %v2059_v60, %v7159_v52  ;;  %v2060_v20 = vmul.f32 %v5446_v23, %v7946_v3 }
 0x917   : > { %v5448_v57 = vpop.eup %5447  ;;  %5457 = vrcp.f32 %v1769_v50  ;;  %v7956_v50 = vld [vmem:[#allocation44_spill] sm:$0xff] }
 0x918   : > { %v1779_v59 = vpop.xlane.xlu0 %1778  ;;  %v2057_v35 = vmul.f32 %v5448_v57, %v7947_v10  ;;  %v7209_v12 = vadd.f32 %v2060_v20, %v7162_v21  ;;  %v7957_v57 = vld [vmem:[#allocation50_spill] sm:$0xff] }
 0x919   : > { %v5450_v36 = vpop.eup %5449  ;;  %5459 = vrcp.f32 %v1779_v59 }
 0x91a   : > { %v1781_v61 = vpop.xlane.xlu1 %1780  ;;  %v7212_v46 = vadd.f32 %v2057_v35, %v7153_v29  ;;  %v2058_v18 = vmul.f32 %v5450_v36, %v7948_v34 }
 0x91b   : > { %v5452_v52 = vpop.eup %5451  ;;  %5461 = vrcp.f32 %v1781_v61  ;;  %v7958_v61 = vld [vmem:[#allocation52_spill] sm:$0xff] }
 0x91c   : > { %v1775_v2 = vpop.xlane.xlu0 %1774  ;;  %v7216_v54 = vadd.f32 %v2058_v18, %v7156_v22  ;;  %v2063_v51 = vmul.f32 %v5452_v52, %v7949_v49  ;;  %v7959_v52 = vld [vmem:[#allocation51_spill] sm:$0xff] }
 0x91d   : > { %v5454_v28 = vpop.eup %5453  ;;  %5463 = vrcp.f32 %v1775_v2 }
 0x91e   : > { %v1777_v21 = vpop.xlane.xlu1 %1776  ;;  %v7220_v7 = vadd.f32 %v2063_v51, %v7171_v44  ;;  %v2064_v41 = vmul.f32 %v5454_v28, %v7950_v55 }
 0x91f   : > { %v5456_v29 = vpop.eup %5455  ;;  %5465 = vrcp.f32 %v1777_v21  ;;  %v7960_v21 = vld [vmem:[#allocation53_spill] sm:$0xff] }
 0x920   : > { %v2380_v15 = vpop.xlane.xlu0 %2379  ;;  %v2061_v32 = vmul.f32 %v5456_v29, %v7951_v14  ;;  %v7225_v27 = vadd.f32 %v2064_v41, %v7174_v39 }
 0x921   : > { %v5458_v22 = vpop.eup %5457  ;;  %5467 = vrcp.f32 %v2380_v15  ;;  %v7961_v15 = vld [vmem:[#allocation54_spill] sm:$0xff] }
 0x922   : > { %v2382_v31 = vpop.xlane.xlu1 %2381  ;;  %v7228_v16 = vadd.f32 %v2061_v32, %v7165_v17  ;;  %v2062_v63 = vmul.f32 %v5458_v22, %v7952_v8 }
 0x923   : > { %v5460_v44 = vpop.eup %5459  ;;  %5469 = vrcp.f32 %v2382_v31  ;;  %v7962_v31 = vld [vmem:[#allocation56_spill] sm:$0xff] }
 0x924   : > { %v2376_v9 = vpop.xlane.xlu0 %2375  ;;  %v7232_v11 = vadd.f32 %v2062_v63, %v7168_v13  ;;  %v2067_v37 = vmul.f32 %v5460_v44, %v7953_v5  ;;  %v7963_v44 = vld [vmem:[#allocation55_spill] sm:$0xff] }
 0x925   : > { %v5462_v48 = vpop.eup %5461  ;;  %5471 = vrcp.f32 %v2376_v9 }
 0x926   : > { %v2378_v39 = vpop.xlane.xlu1 %2377  ;;  %v7236_v6 = vadd.f32 %v2067_v37, %v7183_v30  ;;  %v2068_v56 = vmul.f32 %v5462_v48, %v7954_v47 }
 0x927   : > { %v5464_v17 = vpop.eup %5463  ;;  %5473 = vrcp.f32 %v2378_v39  ;;  %v7964_v39 = vld [vmem:[#allocation57_spill] sm:$0xff] }
 0x928   : > { %v2388_v42 = vpop.xlane.xlu0 %2387  ;;  %v2065_v33 = vmul.f32 %v5464_v17, %v7955_v45  ;;  %v7241_v62 = vadd.f32 %v2068_v56, %v7186_v25 }
 0x929   : > { %v5466_v13 = vpop.eup %5465  ;;  %5475 = vrcp.f32 %v2388_v42 }
 0x92a   : > { %v2390_v60 = vpop.xlane.xlu1 %2389  ;;  %v7244_v23 = vadd.f32 %v2065_v33, %v7177_v53  ;;  %v2066_v3 = vmul.f32 %v5466_v13, %v7956_v50  ;;  %v7965_v50 = vld [vmem:[#allocation58_spill] sm:$0xff] }
 0x92b   : > { %v5468_v30 = vpop.eup %5467  ;;  %5477 = vrcp.f32 %v2390_v60 }
 0x92c   : > { %v2384_v20 = vpop.xlane.xlu0 %2383  ;;  %v2680_v59 = vmul.f32 %v5468_v30, %v7957_v57  ;;  %v2082_v10 = vadd.f32 %v2066_v3, %v7180_v58 }
 0x92d   : > { %v5470_v35 = vpop.eup %5469  ;;  %5479 = vrcp.f32 %v2384_v20 }
 0x92e   : > { %v2386_v36 = vpop.xlane.xlu1 %2385  ;;  %v7250_v25 = vadd.f32 %v2680_v59, %v7189_v1  ;;  %v2681_v34 = vmul.f32 %v5470_v35, %v7958_v61 }
 0x92f   : > { %v5472_v18 = vpop.eup %5471  ;;  %5481 = vrcp.f32 %v2386_v36 }
 0x930   : > { %v2396_v53 = vpop.xlane.xlu0 %2395  ;;  %v2678_v2 = vmul.f32 %v5472_v18, %v7959_v52  ;;  %v7255_v49 = vadd.f32 %v2681_v34, %v7193_v26 }
 0x931   : > { %v5474_v51 = vpop.eup %5473  ;;  %5483 = vrcp.f32 %v2396_v53 }
 0x932   : > { %v2398_v28 = vpop.xlane.xlu1 %2397  ;;  %v7258_v58 = vadd.f32 %v2678_v2, %v7196_v24  ;;  %v2679_v55 = vmul.f32 %v5474_v51, %v7960_v21 }
 0x933   : > { %v5476_v1 = vpop.eup %5475  ;;  %5485 = vrcp.f32 %v2398_v28 }
 0x934   : > { %v2392_v41 = vpop.xlane.xlu0 %2391  ;;  %v7262_v29 = vadd.f32 %v2679_v55, %v7200_v43  ;;  %v2684_v14 = vmul.f32 %v5476_v1, %v7961_v15 }
 0x935   : > { %v5478_v32 = vpop.eup %5477  ;;  %5487 = vrcp.f32 %v2392_v41 }
 0x936   : > { %v2394_v26 = vpop.xlane.xlu1 %2393  ;;  %v7266_v22 = vadd.f32 %v2684_v14, %v7204_v40  ;;  %v2685_v8 = vmul.f32 %v5478_v32, %v7962_v31 }
 0x937   : > { %v5480_v24 = vpop.eup %5479  ;;  %5489 = vrcp.f32 %v2394_v26 }
 0x938   : > { %v2400_v63 = vpop.xlane.xlu0 %2399  ;;  %v2682_v9 = vmul.f32 %v5480_v24, %v7963_v44  ;;  %v7271_v5 = vadd.f32 %v2685_v8, %v7209_v12 }
 0x939   : > { %v5482_v43 = vpop.eup %5481  ;;  %5491 = vrcp.f32 %v2400_v63 }
 0x93a   : > { %v2402_v37 = vpop.xlane.xlu1 %2401  ;;  %v7274_v48 = vadd.f32 %v2682_v9, %v7212_v46  ;;  %v2683_v47 = vmul.f32 %v5482_v43, %v7964_v39  ;;  %v7307_v43 = vld [vmem:[%s5830_s30] sm:$0xff] }
 0x93b   : > { %v5484_v40 = vpop.eup %5483  ;;  %5493 = vrcp.f32 %v2402_v37 }
 0x93c   : > { %v3005_v56 = vpop.xlane.xlu0 %3004  ;;  %v7278_v17 = vadd.f32 %v2683_v47, %v7216_v54  ;;  %v2688_v42 = vmul.f32 %v5484_v40, %v7050_v38  ;;  %v7966_v38 = vld [vmem:[#allocation59_spill] sm:$0xff] }
 0x93d   : > { %v5486_v45 = vpop.eup %5485  ;;  %5495 = vrcp.f32 %v3005_v56  ;;  %v5596_v47 = vld [vmem:[%s7838_s7 + $0x10] sm:$0xff] }
 0x93e   : > { %v3007_v33 = vpop.xlane.xlu1 %3006  ;;  %v7282_v12 = vadd.f32 %v2688_v42, %v7220_v7  ;;  %v2689_v13 = vmul.f32 %v5486_v45, %v7054_v0 }
 0x93f   : > { %v5488_v60 = vpop.eup %5487 }
 0x940   : > { %v3001_v46 = vpop.xlane.xlu0 %3000  ;;  %v2686_v3 = vmul.f32 %v5488_v60, %v7965_v50  ;;  %v7287_v30 = vadd.f32 %v2689_v13, %v7225_v27  ;;  %v5599_v13 = vld [vmem:[%s7838_s7 + $0x8] sm:$0xff] }
 0x941   : > { %v5490_v20 = vpop.eup %5489  ;;  %5497 = vrcp.f32 %v3001_v46 }
 0x942   : > { %v3003_v57 = vpop.xlane.xlu1 %3002  ;;  %v7290_v54 = vadd.f32 %v2686_v3, %v7228_v16  ;;  %v2687_v59 = vmul.f32 %v5490_v20, %v7966_v38  ;;  %5499 = vrcp.f32 %v3007_v33 }
 0x943   : > { %v5492_v35 = vpop.eup %5491  ;;  %5501 = vrcp.f32 %v3003_v57 }
 0x944   : > { %v3013_v36 = vpop.xlane.xlu0 %3012  ;;  %v7294_v7 = vadd.f32 %v2687_v59, %v7232_v11  ;;  %v2690_v0 = vmul.f32 %v5492_v35, %v7075_v4 }
 0x945   : > { %v5494_v61 = vpop.eup %5493  ;;  %5503 = vrcp.f32 %v3013_v36 }
 0x946   : > { %v3015_v34 = vpop.xlane.xlu1 %3014  ;;  %v7298_v18 = vadd.f32 %v2690_v0, %v7244_v23  ;;  %v2691_v27 = vmul.f32 %v5494_v61, %v7080_v19  ;;  %v7967_v19 = vld [vmem:[#allocation5_spill] sm:$0xff] }
 0x947   : > { %5505 = vrcp.f32 %v3015_v34  ;;  %v5496_v23 = vpop.eup %5495  ;;  %v3353_v55 = vsub.s32 3, %v7967_v19 }
 0x948   : > { %v3009_v53 = vpop.xlane.xlu0 %3008  ;;  %v7301_v52 = vadd.f32 %v2691_v27, %v2082_v10 }
 0x949   : > { %5507 = vrcp.f32 %v3009_v53  ;;  %v7310_v37 = vrot.slane %v7307_v43, %v3353_v55  ;;  %v7969_v55 = vld [vmem:[#allocation61_spill] sm:$0xff] }
 0x94a   : > { %v3011_v16 = vpop.xlane.xlu1 %3010 }
 0x94b   : > { %v5498_v10 = vpop.eup %5497 }
 0x94c   : > { %v3021_v2 = vpop.xlane.xlu0 %3020  ;;  %v5500_v14 = vpop.eup %5499 }
 0x94d   : > { %v5502_v31 = vpop.eup %5501 }
 0x94e   : > { %v3023_v11 = vpop.xlane.xlu1 %3022 }
 0x94f   : > { %v5504_v42 = vpop.eup %5503 }
 0x950   : > { %v3017_v51 = vpop.xlane.xlu0 %3016 }
 0x951   : > { %v5506_v45 = vpop.eup %5505 }
 0x952   : > { %v3019_v4 = vpop.xlane.xlu1 %3018 }
 0x953   : > { %v5508_v3 = vpop.eup %5507 }
 0x954   : > { %v2404_v28 = vpop.xlane.xlu0 %2403 }
 0x955   : > { %5509 = vrcp.f32 %v2404_v28  ;;  %v5077_v21 = vpop.f32.mrb[128].mxu0 }
 0x956   : > { %5511 = vrcp.f32 %v3011_v16  ;;  %v3305_v1 = vmul.f32 %v5496_v23, %v5077_v21  ;;  %v2406_v41 = vpop.xlane.xlu1 %2405  ;;  %v3240_v15 = vpop.f32.mrb[129].mxu0  ;;  %v7968_v16 = vld [vmem:[#allocation60_spill] sm:$0xff] }
 0x957   : > { %5513 = vrcp.f32 %v2406_v41  ;;  %v3303_v32 = vmul.f32 %v5498_v10, %v3240_v15  ;;  %v5078_v26 = vpop.f32.mrb[130].mxu0  ;;  %v5601_v41 = vld [vmem:[%s7838_s7 + $0x20] sm:$0xff] }
 0x958   : > { %v3321_v8 = vadd.f32 %v3305_v1, %v7250_v25  ;;  %v3306_v24 = vmul.f32 %v5500_v14, %v5078_v26  ;;  %v3243_v63 = vpop.f32.mrb[131].mxu0  ;;  %5515 = vrcp.f32 %v3021_v2  ;;  %v5597_v25 = vld [vmem:[%s7838_s7] sm:$0xff]  ;;  %v5600_v1 = vld [vmem:[%s7838_s7 + $0x30] sm:$0xff]  ;;  %v5602_v26 = vld [vmem:[%s7838_s7 + $0x38] sm:$0xff] }
 0x959   : > { %v3319_v44 = vadd.f32 %v3303_v32, %v7258_v58  ;;  %v3304_v9 = vmul.f32 %v5502_v31, %v3243_v63  ;;  %5517 = vrcp.f32 %v3017_v51 }
 0x95a   : > { %v3322_v39 = vadd.f32 %v3306_v24, %v7255_v49  ;;  %v3337_v40 = vadd.f32 %v5596_v47, %v3321_v8  ;;  %5519 = vrcp.f32 %v3023_v11  ;;  %v5598_v49 = vld [vmem:[%s7838_s7 + $0x18] sm:$0xff]  ;;  %v5603_v8 = vld [vmem:[%s7838_s7 + $0x28] sm:$0xff] }
 0x95b   : > { %v3335_v56 = vadd.f32 %v5597_v25, %v3319_v44  ;;  %v3320_v58 = vadd.f32 %v3304_v9, %v7262_v29  ;;  %5521 = vrcp.f32 %v3019_v4 }
 0x95c   : > { %v3338_v33 = vadd.f32 %v5598_v49, %v3322_v39  ;;  %v7335_v0 = vadd.f32 %v7310_v37, %v3337_v40 }
 0x95d   : > { %v3336_v60 = vadd.f32 %v5599_v13, %v3320_v58  ;;  %v5081_v46 = vpop.f32.mrb[132].mxu0  ;;  %v7327_v50 = vadd.f32 %v7310_v37, %v3335_v56 }
 0x95e   : > { %v3309_v29 = vmul.f32 %v5504_v42, %v5081_v46  ;;  %v3256_v20 = vpop.f32.mrb[133].mxu0  ;;  %v7343_v23 = vadd.f32 %v7310_v37, %v3338_v33 }
 0x95f   : > { %v5510_v57 = vpop.eup %5509  ;;  %v3307_v38 = vmul.f32 %v5508_v3, %v3256_v20  ;;  %v5082_v59 = vpop.f32.mrb[134].mxu0  ;;  %v3371_v35 = vsel %vm436_vm1, %v7327_v50, 0.0  ;;  %v7332_v36 = vadd.f32 %v7310_v37, %v3336_v60 }
 0x960   : > { %v5512_v61 = vpop.eup %5511  ;;  %v3325_v34 = vadd.f32 %v3309_v29, %v7266_v22  ;;  %v3310_v27 = vmul.f32 %v5506_v45, %v5082_v59  ;;  %v3259_v53 = vpop.f32.mrb[135].mxu0  ;;  %3372 = vadd.xlane.f32.xlu0 %v3371_v35  ;;  %v2692_v2 = vmul.f32 %v5510_v57, %v7968_v16  ;;  %v5604_v57 = vld [vmem:[%s7838_s7 + $0x50] sm:$0xff] }
 0x961   : > { %v5514_v11 = vpop.eup %5513  ;;  %v3323_v51 = vadd.f32 %v3307_v38, %v7274_v48  ;;  %v3308_v4 = vmul.f32 %v5512_v61, %v3259_v53  ;;  %v3374_v28 = vsel %vm436_vm1, %v7332_v36, 0.0  ;;  %v5605_v38 = vld [vmem:[%s7838_s7 + $0x40] sm:$0xff] }
 0x962   : > { %v3326_v21 = vadd.f32 %v3310_v27, %v7271_v5  ;;  %3375 = vadd.xlane.f32.xlu1 %v3374_v28  ;;  %v7347_v22 = vadd.f32 %v2692_v2, %v7236_v6  ;;  %v2693_v10 = vmul.f32 %v5514_v11, %v7969_v55  ;;  %v3341_v48 = vadd.f32 %v5600_v1, %v3325_v34  ;;  %v5516_v32 = vpop.eup %5515  ;;  %v5607_v34 = vld [vmem:[%s7838_s7 + $0x48] sm:$0xff] }
 0x963   : > { %v3339_v15 = vadd.f32 %v5601_v41, %v3323_v51  ;;  %v3324_v14 = vadd.f32 %v3308_v4, %v7278_v17  ;;  %v3377_v5 = vsel %vm436_vm1, %v7335_v0, 0.0  ;;  %v3380_v17 = vsel %vm436_vm1, %v7343_v23, 0.0 }
 0x964   : > { %3378 = vadd.xlane.f32.xlu0 %v3377_v5  ;;  %v7360_v6 = vadd.f32 %v2693_v10, %v7241_v62  ;;  %v3342_v31 = vadd.f32 %v5602_v26, %v3326_v21  ;;  %v5518_v62 = vpop.eup %5517  ;;  %v7379_v42 = vadd.f32 %v7310_v37, %v3341_v48 }
 0x965   : > { %v3340_v24 = vadd.f32 %v5603_v8, %v3324_v14  ;;  %v5085_v63 = vpop.f32.mrb[136].mxu0  ;;  %v7371_v44 = vadd.f32 %v7310_v37, %v3339_v15  ;;  %v5520_v47 = vpop.eup %5519 }
 0x966   : > { %v3313_v9 = vmul.f32 %v5516_v32, %v5085_v63  ;;  %3381 = vadd.xlane.f32.xlu1 %v3380_v17  ;;  %v3272_v39 = vpop.f32.mrb[137].mxu0  ;;  %v5522_v45 = vpop.eup %5521  ;;  %v7386_v29 = vadd.f32 %v7310_v37, %v3342_v31  ;;  %v3389_v35 = vsel %vm436_vm1, %v7379_v42, 0.0 }
 0x967   : > { %v3311_v40 = vmul.f32 %v5518_v62, %v3272_v39  ;;  %v5086_v25 = vpop.f32.mrb[138].mxu0  ;;  %v3383_v56 = vsel %vm436_vm1, %v7371_v44, 0.0  ;;  %v7376_v58 = vadd.f32 %v7310_v37, %v3340_v24 }
 0x968   : > { %v3329_v49 = vadd.f32 %v3313_v9, %v7282_v12  ;;  %v3314_v33 = vmul.f32 %v5520_v47, %v5086_v25  ;;  %v3275_v13 = vpop.f32.mrb[139].mxu0  ;;  %3384 = vadd.xlane.f32.xlu0 %v3383_v56  ;;  %v3392_v53 = vsel %vm436_vm1, %v7386_v29, 0.0  ;;  %v5609_v56 = vld [vmem:[%s7838_s7 + $0x60] sm:$0xff] }
 0x969   : > { %v3327_v60 = vadd.f32 %v3311_v40, %v7290_v54  ;;  %v3312_v46 = vmul.f32 %v5522_v45, %v3275_v13  ;;  %v3386_v3 = vsel %vm436_vm1, %v7376_v58, 0.0  ;;  %v5608_v40 = vld [vmem:[%s7838_s7 + $0x70] sm:$0xff] }
 0x96a   : > { %v3330_v20 = vadd.f32 %v3314_v33, %v7287_v30  ;;  %3387 = vadd.xlane.f32.xlu1 %v3386_v3  ;;  %v3345_v12 = vadd.f32 %v5604_v57, %v3329_v49  ;;  %v5606_v30 = vld [vmem:[%s7838_s7 + $0x58] sm:$0xff] }
 0x96b   : > { %v3343_v54 = vadd.f32 %v5605_v38, %v3327_v60  ;;  %v3328_v59 = vadd.f32 %v3312_v46, %v7294_v7 }
 0x96c   : > { %3390 = vadd.xlane.f32.xlu0 %v3389_v35  ;;  %v3346_v61 = vadd.f32 %v5606_v30, %v3330_v20  ;;  %v7415_v11 = vadd.f32 %v7310_v37, %v3345_v12 }
 0x96d   : > { %v3344_v27 = vadd.f32 %v5607_v34, %v3328_v59  ;;  %v7407_v16 = vadd.f32 %v7310_v37, %v3343_v54 }
 0x96e   : > { %3393 = vadd.xlane.f32.xlu1 %v3392_v53  ;;  %v7420_v4 = vadd.f32 %v7310_v37, %v3346_v61  ;;  %v3401_v28 = vsel %vm436_vm1, %v7415_v11, 0.0 }
 0x96f   : > { %v3395_v7 = vsel %vm436_vm1, %v7407_v16, 0.0  ;;  %v7412_v2 = vadd.f32 %v7310_v37, %v3344_v27 }
 0x970   : > { %3396 = vadd.xlane.f32.xlu0 %v3395_v7  ;;  %v3404_v21 = vsel %vm436_vm1, %v7420_v4, 0.0 }
 0x971   : > { %v3398_v51 = vsel %vm436_vm1, %v7412_v2, 0.0 }
 0x972   : > { %3399 = vadd.xlane.f32.xlu1 %v3398_v51 }
 0x974   : > { %3402 = vadd.xlane.f32.xlu0 %v3401_v28 }
 0x975   : > { %v3025_v55 = vpop.xlane.xlu0 %3024 }
 0x976   : > { %3405 = vadd.xlane.f32.xlu1 %v3404_v21 }
 0x977   : > { %v3027_v10 = vpop.xlane.xlu1 %3026 }
 0x979   : > { %v3029_v1 = vpop.xlane.xlu0 %3028 }
 0x97a   : > { %5523 = vrcp.f32 %v3029_v1 }
 0x97b   : > { %v3031_v48 = vpop.xlane.xlu1 %3030  ;;  %5525 = vrcp.f32 %v3025_v55 }
 0x97c   : > { %5527 = vrcp.f32 %v3031_v48 }
 0x97d   : > { %5529 = vrcp.f32 %v3027_v10 }
 0x984   : > { %v5524_v41 = vpop.eup %5523 }
 0x985   : > { %v5526_v14 = vpop.eup %5525 }
 0x986   : > { %v5528_v26 = vpop.eup %5527 }
 0x987   : > { %v5530_v24 = vpop.eup %5529 }
 0x9c3   : > { %v5089_v15 = vpop.f32.mrb[140].mxu0 }
 0x9c4   : > { %v3317_v5 = vmul.f32 %v5524_v41, %v5089_v15  ;;  %v3288_v32 = vpop.f32.mrb[141].mxu0 }
 0x9c5   : > { %v3315_v31 = vmul.f32 %v5526_v14, %v3288_v32  ;;  %v5090_v8 = vpop.f32.mrb[142].mxu0 }
 0x9c6   : > { %v3333_v63 = vadd.f32 %v3317_v5, %v7347_v22  ;;  %v3318_v17 = vmul.f32 %v5528_v26, %v5090_v8  ;;  %v3291_v62 = vpop.f32.mrb[143].mxu0  ;;  %v5610_v22 = vld [vmem:[%s7838_s7 + $0x78] sm:$0xff] }
 0x9c7   : > { %v3331_v9 = vadd.f32 %v3315_v31, %v7298_v18  ;;  %v3316_v39 = vmul.f32 %v5530_v24, %v3291_v62 }
 0x9c8   : > { %v3334_v47 = vadd.f32 %v3318_v17, %v7360_v6  ;;  %v3349_v25 = vadd.f32 %v5608_v40, %v3333_v63  ;;  %v5611_v6 = vld [vmem:[%s7838_s7 + $0x68] sm:$0xff] }
 0x9c9   : > { %v3347_v45 = vadd.f32 %v5609_v56, %v3331_v9  ;;  %v3332_v49 = vadd.f32 %v3316_v39, %v7301_v52 }
 0x9ca   : > { %v3350_v18 = vadd.f32 %v5610_v22, %v3334_v47  ;;  %v7451_v52 = vadd.f32 %v7310_v37, %v3349_v25 }
 0x9cb   : > { %v3348_v33 = vadd.f32 %v5611_v6, %v3332_v49  ;;  %v7443_v13 = vadd.f32 %v7310_v37, %v3347_v45 }
 0x9cc   : > { %v7456_v20 = vadd.f32 %v7310_v37, %v3350_v18  ;;  %v3413_v57 = vsel %vm436_vm1, %v7451_v52, 0.0 }
 0x9cd   : > { %v3407_v60 = vsel %vm436_vm1, %v7443_v13, 0.0  ;;  %v7448_v46 = vadd.f32 %v7310_v37, %v3348_v33 }
 0x9ce   : > { %3408 = vadd.xlane.f32.xlu0 %v3407_v60  ;;  %v3416_v12 = vsel %vm436_vm1, %v7456_v20, 0.0 }
 0x9cf   : > { %v3410_v3 = vsel %vm436_vm1, %v7448_v46, 0.0 }
 0x9d0   : > { %3411 = vadd.xlane.f32.xlu1 %v3410_v3 }
 0x9d2   : > { %3414 = vadd.xlane.f32.xlu0 %v3413_v57 }
 0x9d4   : > { %3417 = vadd.xlane.f32.xlu1 %v3416_v12 }
 0x9ed   : > { %v3373_v38 = vpop.xlane.xlu0 %3372 }
 0x9ee   : > { %v3419_v54 = vmul.f32 0.03125, %v3373_v38 }
 0x9ef   : > { %v3376_v59 = vpop.xlane.xlu1 %3375 }
 0x9f0   : > { %v7463_v35 = vsub.f32 %v7327_v50, %v3419_v54  ;;  %v3420_v30 = vmul.f32 0.03125, %v3376_v59 }
 0x9f1   : > { %v3379_v61 = vpop.xlane.xlu0 %3378 }
 0x9f2   : > { %v7466_v37 = vsub.f32 %v7332_v36, %v3420_v30  ;;  %v3421_v34 = vmul.f32 0.03125, %v3379_v61  ;;  %v3451_v27 = vmul.f32 %v7463_v35, %v7463_v35 }
 0x9f3   : > { %v3382_v53 = vpop.xlane.xlu1 %3381 }
 0x9f4   : > { %v7471_v7 = vsub.f32 %v7335_v0, %v3421_v34  ;;  %v3422_v51 = vmul.f32 0.03125, %v3382_v53  ;;  %v3467_v28 = vsel %vm436_vm1, %v3451_v27, 0.0  ;;  %v3452_v21 = vmul.f32 %v7466_v37, %v7466_v37 }
 0x9f5   : > { %3468 = vadd.xlane.f32.xlu0 %v3467_v28  ;;  %v3385_v55 = vpop.xlane.xlu0 %3384 }
 0x9f6   : > { %v7477_v10 = vsub.f32 %v7343_v23, %v3422_v51  ;;  %v3423_v1 = vmul.f32 0.03125, %v3385_v55  ;;  %v3470_v48 = vsel %vm436_vm1, %v3452_v21, 0.0  ;;  %v3453_v41 = vmul.f32 %v7471_v7, %v7471_v7 }
 0x9f7   : > { %v3388_v15 = vpop.xlane.xlu1 %3387  ;;  %3471 = vadd.xlane.f32.xlu1 %v3470_v48 }
 0x9f8   : > { %v7483_v14 = vsub.f32 %v7371_v44, %v3423_v1  ;;  %v3424_v5 = vmul.f32 0.03125, %v3388_v15  ;;  %v3473_v32 = vsel %vm436_vm1, %v3453_v41, 0.0  ;;  %v3454_v26 = vmul.f32 %v7477_v10, %v7477_v10  ;;  %v5233_v41 = vld [vmem:[%s5845_s21] sm:$0xff]   ;;  %v5234_v15 = vld [vmem:[%s5845_s21 + $0x8] sm:$0xff]  }
 0x9f9   : > { %3474 = vadd.xlane.f32.xlu0 %v3473_v32  ;;  %v3391_v31 = vpop.xlane.xlu0 %3390  ;;  %5091 = vmatprep.subr.bf16.mxu1 %v5233_v41 }
 0x9fa   : > { %v7489_v8 = vsub.f32 %v7376_v58, %v3424_v5  ;;  %v3425_v24 = vmul.f32 0.03125, %v3391_v31  ;;  %v3476_v63 = vsel %vm436_vm1, %v3454_v26, 0.0  ;;  %v3455_v17 = vmul.f32 %v7483_v14, %v7483_v14  ;;  %5092 = vmatpush3.bf16.msra.mxu1 %v5233_v41 }
 0x9fb   : > { %v3394_v62 = vpop.xlane.xlu1 %3393  ;;  %3477 = vadd.xlane.f32.xlu1 %v3476_v63  ;;  %5093 = vmatprep.subr.bf16.mxu1 %v5234_v15 }
 0x9fc   : > { %v7495_v9 = vsub.f32 %v7379_v42, %v3425_v24  ;;  %v3426_v39 = vmul.f32 0.03125, %v3394_v62  ;;  %v3479_v47 = vsel %vm436_vm1, %v3455_v17, 0.0  ;;  %v3456_v40 = vmul.f32 %v7489_v8, %v7489_v8 }
 0x9fd   : > { %3480 = vadd.xlane.f32.xlu0 %v3479_v47  ;;  %v3397_v25 = vpop.xlane.xlu0 %3396 }
 0x9fe   : > { %v7501_v56 = vsub.f32 %v7386_v29, %v3426_v39  ;;  %v3427_v45 = vmul.f32 0.03125, %v3397_v25  ;;  %v3482_v49 = vsel %vm436_vm1, %v3456_v40, 0.0  ;;  %v3457_v22 = vmul.f32 %v7495_v9, %v7495_v9  ;;  %5094 = vmatpush3.bf16.msra.mxu1 %v5234_v15 }
 0x9ff   : > { %v3400_v18 = vpop.xlane.xlu1 %3399  ;;  %3483 = vadd.xlane.f32.xlu1 %v3482_v49 }
 0xa00   : > { %v7507_v6 = vsub.f32 %v7407_v16, %v3427_v45  ;;  %v3428_v33 = vmul.f32 0.03125, %v3400_v18  ;;  %v3485_v60 = vsel %vm436_vm1, %v3457_v22, 0.0  ;;  %v3458_v3 = vmul.f32 %v7501_v56, %v7501_v56 }
 0xa01   : > { %3486 = vadd.xlane.f32.xlu0 %v3485_v60  ;;  %v3403_v57 = vpop.xlane.xlu0 %3402 }
 0xa02   : > { %v7513_v12 = vsub.f32 %v7412_v2, %v3428_v33  ;;  %v3429_v38 = vmul.f32 0.03125, %v3403_v57  ;;  %v3488_v54 = vsel %vm436_vm1, %v3458_v3, 0.0  ;;  %v3459_v59 = vmul.f32 %v7507_v6, %v7507_v6 }
 0xa03   : > { %v3406_v30 = vpop.xlane.xlu1 %3405  ;;  %3489 = vadd.xlane.f32.xlu1 %v3488_v54 }
 0xa04   : > { %v7519_v61 = vsub.f32 %v7415_v11, %v3429_v38  ;;  %v3430_v34 = vmul.f32 0.03125, %v3406_v30  ;;  %v3491_v27 = vsel %vm436_vm1, %v3459_v59, 0.0  ;;  %v3460_v53 = vmul.f32 %v7513_v12, %v7513_v12 }
 0xa05   : > { %3492 = vadd.xlane.f32.xlu0 %v3491_v27 }
 0xa06   : > { %v7525_v51 = vsub.f32 %v7420_v4, %v3430_v34  ;;  %v3494_v28 = vsel %vm436_vm1, %v3460_v53, 0.0  ;;  %v3461_v21 = vmul.f32 %v7519_v61, %v7519_v61 }
 0xa07   : > { %3495 = vadd.xlane.f32.xlu1 %v3494_v28 }
 0xa08   : > { %v3497_v55 = vsel %vm436_vm1, %v3461_v21, 0.0  ;;  %v3462_v1 = vmul.f32 %v7525_v51, %v7525_v51 }
 0xa09   : > { %3498 = vadd.xlane.f32.xlu0 %v3497_v55 }
 0xa0a   : > { %v3500_v48 = vsel %vm436_vm1, %v3462_v1, 0.0 }
 0xa0b   : > { %3501 = vadd.xlane.f32.xlu1 %v3500_v48 }
 0xa5b   : > { %v3409_v5 = vpop.xlane.xlu0 %3408 }
 0xa5c   : > { %v3431_v32 = vmul.f32 0.03125, %v3409_v5  ;;  %v3581_v5 = vsub.s32 4, %v7967_v19 }
 0xa5d   : > { %v3412_v26 = vpop.xlane.xlu1 %3411 }
 0xa5e   : > { %v7537_v31 = vsub.f32 %v7443_v13, %v3431_v32  ;;  %v3432_v24 = vmul.f32 0.03125, %v3412_v26 }
 0xa5f   : > { %v3415_v63 = vpop.xlane.xlu0 %3414 }
 0xa60   : > { %v7540_v17 = vsub.f32 %v7448_v46, %v3432_v24  ;;  %v3433_v62 = vmul.f32 0.03125, %v3415_v63  ;;  %v3463_v39 = vmul.f32 %v7537_v31, %v7537_v31 }
 0xa61   : > { %v3418_v47 = vpop.xlane.xlu1 %3417 }
 0xa62   : > { %v7545_v40 = vsub.f32 %v7451_v52, %v3433_v62  ;;  %v3434_v25 = vmul.f32 0.03125, %v3418_v47  ;;  %v3503_v45 = vsel %vm436_vm1, %v3463_v39, 0.0  ;;  %v3464_v49 = vmul.f32 %v7540_v17, %v7540_v17 }
 0xa63   : > { %3504 = vadd.xlane.f32.xlu0 %v3503_v45  ;;  %v7562_v47 = vrot.slane %v7307_v43, %v3581_v5 }
 0xa64   : > { %v7551_v22 = vsub.f32 %v7456_v20, %v3434_v25  ;;  %v3506_v18 = vsel %vm436_vm1, %v3464_v49, 0.0  ;;  %v3465_v33 = vmul.f32 %v7545_v40, %v7545_v40  ;;  %v3601_v25 = vsub.s32 5, %v7967_v19 }
 0xa65   : > { %3507 = vadd.xlane.f32.xlu1 %v3506_v18 }
 0xa66   : > { %v3509_v60 = vsel %vm436_vm1, %v3465_v33, 0.0  ;;  %v3466_v3 = vmul.f32 %v7551_v22, %v7551_v22 }
 0xa67   : > { %3510 = vadd.xlane.f32.xlu0 %v3509_v60 }
 0xa68   : > { %v3512_v57 = vsel %vm436_vm1, %v3466_v3, 0.0 }
 0xa69   : > { %3513 = vadd.xlane.f32.xlu1 %v3512_v57 }
 0xa82   : > { %v3469_v38 = vpop.xlane.xlu0 %3468 }
 0xa83   : > { %v3515_v54 = vmul.f32 0.03125, %v3469_v38 }
 0xa84   : > { %v3472_v59 = vpop.xlane.xlu1 %3471 }
 0xa85   : > { %v3531_v30 = vadd.f32 1e-05, %v3515_v54  ;;  %v3516_v34 = vmul.f32 0.03125, %v3472_v59 }
 0xa86   : > { %v3475_v27 = vpop.xlane.xlu0 %3474 }
 0xa87   : > { %5531 = vrsqrt.f32 %v3531_v30  ;;  %v3532_v53 = vadd.f32 1e-05, %v3516_v34  ;;  %v3517_v28 = vmul.f32 0.03125, %v3475_v27  ;;  %v7568_v30 = vrot.slane %v7307_v43, %v3601_v25 }
 0xa88   : > { %v3478_v21 = vpop.xlane.xlu1 %3477 }
 0xa89   : > { %5533 = vrsqrt.f32 %v3532_v53  ;;  %v3533_v55 = vadd.f32 1e-05, %v3517_v28  ;;  %v3518_v1 = vmul.f32 0.03125, %v3478_v21 }
 0xa8a   : > { %v3481_v48 = vpop.xlane.xlu0 %3480 }
 0xa8b   : > { %5535 = vrsqrt.f32 %v3533_v55  ;;  %v3534_v41 = vadd.f32 1e-05, %v3518_v1  ;;  %v3519_v15 = vmul.f32 0.03125, %v3481_v48 }
 0xa8c   : > { %v3484_v32 = vpop.xlane.xlu1 %3483 }
 0xa8d   : > { %5537 = vrsqrt.f32 %v3534_v41  ;;  %v3535_v26 = vadd.f32 1e-05, %v3519_v15  ;;  %v3520_v24 = vmul.f32 0.03125, %v3484_v32 }
 0xa8e   : > { %v3487_v63 = vpop.xlane.xlu0 %3486 }
 0xa8f   : > { %5539 = vrsqrt.f32 %v3535_v26  ;;  %v3536_v62 = vadd.f32 1e-05, %v3520_v24  ;;  %v3521_v39 = vmul.f32 0.03125, %v3487_v63 }
 0xa90   : > { %v3490_v45 = vpop.xlane.xlu1 %3489 }
 0xa91   : > { %v5532_v49 = vpop.eup %5531  ;;  %5541 = vrsqrt.f32 %v3536_v62  ;;  %v3537_v18 = vadd.f32 1e-05, %v3521_v39  ;;  %v3522_v33 = vmul.f32 0.03125, %v3490_v45 }
 0xa92   : > { %v3563_v60 = vmul.f32 %v5532_v49, %v7463_v35  ;;  %v3493_v3 = vpop.xlane.xlu0 %3492 }
 0xa93   : > { %v5534_v57 = vpop.eup %5533  ;;  %5543 = vrsqrt.f32 %v3537_v18  ;;  %v3538_v38 = vadd.f32 1e-05, %v3522_v33  ;;  %v3523_v54 = vmul.f32 0.03125, %v3493_v3 }
 0xa94   : > { %v3564_v59 = vmul.f32 %v5534_v57, %v7466_v37  ;;  %v3496_v34 = vpop.xlane.xlu1 %3495  ;;  %v3583_v27 = vmul.f32 %v7562_v47, %v3563_v60 }
 0xa95   : > { %v5536_v53 = vpop.eup %5535  ;;  %5545 = vrsqrt.f32 %v3538_v38  ;;  %v3539_v28 = vadd.f32 1e-05, %v3523_v54  ;;  %v3524_v21 = vmul.f32 0.03125, %v3496_v34 }
 0xa96   : > { %v3565_v55 = vmul.f32 %v5536_v53, %v7471_v7  ;;  %v3499_v35 = vpop.xlane.xlu0 %3498  ;;  %v3584_v1 = vmul.f32 %v7562_v47, %v3564_v59  ;;  %v3603_v26 = vadd.f32 %v7568_v30, %v3583_v27 }
 0xa97   : > { %v5538_v48 = vpop.eup %5537  ;;  %5547 = vrsqrt.f32 %v3539_v28  ;;  %v3540_v41 = vadd.f32 1e-05, %v3524_v21  ;;  %v3525_v15 = vmul.f32 0.03125, %v3499_v35 }
 0xa98   : > { %v3585_v37 = vmul.f32 %v7562_v47, %v3565_v55  ;;  %v3566_v5 = vmul.f32 %v5538_v48, %v7477_v10  ;;  %v3502_v32 = vpop.xlane.xlu1 %3501  ;;  %v3604_v24 = vadd.f32 %v7568_v30, %v3584_v1 }
 0xa99   : > { %v5540_v63 = vpop.eup %5539  ;;  %5549 = vrsqrt.f32 %v3540_v41  ;;  %v3541_v62 = vadd.f32 1e-05, %v3525_v15  ;;  %v3526_v7 = vmul.f32 0.03125, %v3502_v32 }
 0xa9a   : > { %v3586_v39 = vmul.f32 %v7562_v47, %v3566_v5  ;;  %v3567_v25 = vmul.f32 %v5540_v63, %v7483_v14  ;;  %v3619_v45 = vpack.c.bf16 %v3604_v24, %v3603_v26  ;;  %v3605_v33 = vadd.f32 %v7568_v30, %v3585_v37 }
 0xa9b   : > { %v5542_v49 = vpop.eup %5541  ;;  %5551 = vrsqrt.f32 %v3541_v62  ;;  %v3542_v18 = vadd.f32 1e-05, %v3526_v7 }
 0xa9c   : > { %v3606_v10 = vadd.f32 %v7568_v30, %v3586_v39  ;;  %v3568_v60 = vmul.f32 %v5542_v49, %v7489_v8  ;;  %5095 = vmatprep.mubr.msk.bf16.mxu1 %vm436_vm1, %v3619_v45  ;;  %v3587_v3 = vmul.f32 %v7562_v47, %v3567_v25 }
 0xa9d   : > { %v5544_v57 = vpop.eup %5543  ;;  %5553 = vrsqrt.f32 %v3542_v18 }
 0xa9e   : > { %v3569_v38 = vmul.f32 %v5544_v57, %v7495_v9  ;;  %v3620_v54 = vpack.c.bf16 %v3606_v10, %v3605_v33  ;;  %v3588_v14 = vmul.f32 %v7562_v47, %v3568_v60  ;;  %v3607_v27 = vadd.f32 %v7568_v30, %v3587_v3  ;;  %v5235_v57 = vld [vmem:[%s5850_s18] sm:$0xff]  }
 0xa9f   : > { %v5546_v59 = vpop.eup %5545  ;;  %5111 = vmatprep.subr.bf16.mxu0 %v5235_v57 }
 0xaa0   : > { %v3570_v34 = vmul.f32 %v5546_v59, %v7501_v56  ;;  %5096 = vmatmul.mubr.msk.bf16.vlgmr.msra.gmra.mrb[64].mxu1 %vm436_vm1, %v3620_v54  ;;  %v3608_v8 = vadd.f32 %v7568_v30, %v3588_v14  ;;  %v3589_v53 = vmul.f32 %v7562_v47, %v3569_v38  ;;  %5112 = vmatpush3.bf16.msra.mxu0 %v5235_v57 }
 0xaa1   : > { %v5548_v28 = vpop.eup %5547 }
 0xaa2   : > { %v3571_v21 = vmul.f32 %v5548_v28, %v7507_v6  ;;  %v3621_v55 = vpack.c.bf16 %v3608_v8, %v3607_v27  ;;  %v3590_v9 = vmul.f32 %v7562_v47, %v3570_v34  ;;  %v3609_v56 = vadd.f32 %v7568_v30, %v3589_v53  ;;  %v5236_v34 = vld [vmem:[%s5850_s18 + $0x8] sm:$0xff]   ;;  %v5237_v27 = vld [vmem:[%s5850_s18 + $0x10] sm:$0xff]  }
 0xaa3   : > { %v5550_v35 = vpop.eup %5549  ;;  %5113 = vmatprep.subr.bf16.mxu0 %v5236_v34 }
 0xaa4   : > { %v3572_v1 = vmul.f32 %v5550_v35, %v7513_v12  ;;  %5099 = vmatprep.mubr.msk.bf16.mxu1 %vm436_vm1, %v3621_v55  ;;  %v3610_v48 = vadd.f32 %v7568_v30, %v3590_v9  ;;  %v3591_v41 = vmul.f32 %v7562_v47, %v3571_v21  ;;  %5114 = vmatpush3.bf16.msra.mxu0 %v5236_v34  ;;  %v5238_v21 = vld [vmem:[%s5850_s18 + $0x18] sm:$0xff]  }
 0xaa5   : > { %v5552_v15 = vpop.eup %5551  ;;  %5115 = vmatprep.subr.bf16.mxu0 %v5237_v27 }
 0xaa6   : > { %v3573_v37 = vmul.f32 %v5552_v15, %v7519_v61  ;;  %v3622_v5 = vpack.c.bf16 %v3610_v48, %v3609_v56  ;;  %v3592_v6 = vmul.f32 %v7562_v47, %v3572_v1  ;;  %v3611_v12 = vadd.f32 %v7568_v30, %v3591_v41  ;;  %v5239_v41 = vld [vmem:[%s5850_s18 + $0x20] sm:$0xff]  }
 0xaa7   : > { %v5554_v32 = vpop.eup %5553 }
 0xaa8   : > { %v3574_v26 = vmul.f32 %v5554_v32, %v7525_v51  ;;  %5100 = vmatmul.mubr.msk.bf16.gmra.mrb[68].mxu1 %vm436_vm1, %v3622_v5  ;;  %v3612_v24 = vadd.f32 %v7568_v30, %v3592_v6  ;;  %v3593_v63 = vmul.f32 %v7562_v47, %v3573_v37  ;;  %5116 = vmatpush3.bf16.msra.mxu0 %v5237_v27 }
 0xaa9   : > { %5117 = vmatprep.subr.bf16.mxu0 %v5238_v21 }
 0xaaa   : > { %v3623_v62 = vpack.c.bf16 %v3612_v24, %v3611_v12  ;;  %v3594_v7 = vmul.f32 %v7562_v47, %v3574_v26  ;;  %v3613_v61 = vadd.f32 %v7568_v30, %v3593_v63  ;;  %v5241_v12 = vld [vmem:[%s5850_s18 + $0x30] sm:$0xff]   ;;  %v5242_v24 = vld [vmem:[%s5850_s18 + $0x38] sm:$0xff]  }
 0xaac   : > { %5103 = vmatprep.mubr.msk.bf16.mxu1 %vm436_vm1, %v3623_v62  ;;  %v3614_v39 = vadd.f32 %v7568_v30, %v3594_v7  ;;  %5118 = vmatpush3.bf16.msra.mxu0 %v5238_v21 }
 0xaad   : > { %5119 = vmatprep.subr.bf16.mxu0 %v5239_v41 }
 0xaae   : > { %v3624_v25 = vpack.c.bf16 %v3614_v39, %v3613_v61 }
 0xab0   : > { %5104 = vmatmul.mubr.msk.bf16.gmra.mrb[72].mxu1 %vm436_vm1, %v3624_v25  ;;  %5120 = vmatpush3.bf16.msra.mxu0 %v5239_v41 }
 0xaf0   : > { %v3505_v51 = vpop.xlane.xlu0 %3504 }
 0xaf1   : > { %v3527_v45 = vmul.f32 0.03125, %v3505_v51 }
 0xaf2   : > { %v3508_v49 = vpop.xlane.xlu1 %3507 }
 0xaf3   : > { %v3543_v18 = vadd.f32 1e-05, %v3527_v45  ;;  %v3528_v33 = vmul.f32 0.03125, %v3508_v49 }
 0xaf4   : > { %v3511_v10 = vpop.xlane.xlu0 %3510 }
 0xaf5   : > { %5555 = vrsqrt.f32 %v3543_v18  ;;  %v3544_v60 = vadd.f32 1e-05, %v3528_v33  ;;  %v3529_v3 = vmul.f32 0.03125, %v3511_v10 }
 0xaf6   : > { %v3514_v38 = vpop.xlane.xlu1 %3513 }
 0xaf7   : > { %5557 = vrsqrt.f32 %v3544_v60  ;;  %v3545_v54 = vadd.f32 1e-05, %v3529_v3  ;;  %v3530_v14 = vmul.f32 0.03125, %v3514_v38 }
 0xaf9   : > { %5559 = vrsqrt.f32 %v3545_v54  ;;  %v3546_v59 = vadd.f32 1e-05, %v3530_v14 }
 0xafb   : > { %5561 = vrsqrt.f32 %v3546_v59 }
 0xaff   : > { %v5556_v8 = vpop.eup %5555 }
 0xb00   : > { %v3575_v53 = vmul.f32 %v5556_v8, %v7537_v31 }
 0xb01   : > { %v5558_v28 = vpop.eup %5557 }
 0xb02   : > { %v3576_v55 = vmul.f32 %v5558_v28, %v7540_v17  ;;  %v3595_v9 = vmul.f32 %v7562_v47, %v3575_v53 }
 0xb03   : > { %v5560_v35 = vpop.eup %5559 }
 0xb04   : > { %v3577_v1 = vmul.f32 %v5560_v35, %v7545_v40  ;;  %v3596_v56 = vmul.f32 %v7562_v47, %v3576_v55  ;;  %v3615_v15 = vadd.f32 %v7568_v30, %v3595_v9  ;;  %v5240_v40 = vld [vmem:[%s5850_s18 + $0x28] sm:$0xff]  }
 0xb05   : > { %v5562_v48 = vpop.eup %5561  ;;  %5121 = vmatprep.subr.bf16.mxu0 %v5240_v40 }
 0xb06   : > { %v3578_v31 = vmul.f32 %v5562_v48, %v7551_v22  ;;  %v3616_v17 = vadd.f32 %v7568_v30, %v3596_v56  ;;  %v3597_v37 = vmul.f32 %v7562_v47, %v3577_v1  ;;  %5122 = vmatpush3.bf16.msra.mxu0 %v5240_v40 }
 0xb07   : > { %5123 = vmatprep.subr.bf16.mxu0 %v5241_v12 }
 0xb08   : > { %v3625_v5 = vpack.c.bf16 %v3616_v17, %v3615_v15  ;;  %v3598_v6 = vmul.f32 %v7562_v47, %v3578_v31  ;;  %v3617_v32 = vadd.f32 %v7568_v30, %v3597_v37  ;;  %v3633_v47 = vsub.s32 6, %v7967_v19 }
 0xb0a   : > { %5107 = vmatprep.mubr.msk.bf16.mxu1 %vm436_vm1, %v3625_v5  ;;  %v3618_v26 = vadd.f32 %v7568_v30, %v3598_v6  ;;  %5124 = vmatpush3.bf16.msra.mxu0 %v5241_v12  ;;  %v7634_v63 = vrot.slane %v7307_v43, %v3633_v47 }
 0xb0b   : > { %5125 = vmatprep.subr.bf16.mxu0 %v5242_v24 }
 0xb0c   : > { %v3626_v22 = vpack.c.bf16 %v3618_v26, %v3617_v32 }
 0xb0e   : > { %5108 = vmatmul.mubr.msk.bf16.gmra.mrb[76].mxu1 %vm436_vm1, %v3626_v22  ;;  %5126 = vmatpush3.bf16.msra.mxu0 %v5242_v24 }
 0xb73   : > { %v5097_v62 = vpop.f32.mrb[64].mxu1 }
 0xb74   : > { %v7637_v7 = vadd.f32 %v5097_v62, %v7634_v63  ;;  %v3705_v30 = vpop.f32.mrb[65].mxu1 }
 0xb75   : > { %v7640_v61 = vadd.f32 %v3705_v30, %v7634_v63  ;;  %v5098_v39 = vpop.f32.mrb[66].mxu1 }
 0xb76   : > { %v3786_v25 = vmul.f32 0.044715, %v7637_v7  ;;  %v7644_v51 = vadd.f32 %v5098_v39, %v7634_v63  ;;  %v3708_v45 = vpop.f32.mrb[67].mxu1 }
 0xb77   : > { %v3784_v49 = vmul.f32 0.044715, %v7640_v61  ;;  %v7648_v43 = vadd.f32 %v3708_v45, %v7634_v63 }
 0xb78   : > { %v3802_v18 = vmul.f32 %v3786_v25, %v7637_v7  ;;  %v3787_v33 = vmul.f32 0.044715, %v7644_v51 }
 0xb79   : > { %v3800_v10 = vmul.f32 %v3784_v49, %v7640_v61  ;;  %v3785_v60 = vmul.f32 0.044715, %v7648_v43 }
 0xb7a   : > { %v3818_v3 = vmul.f32 %v3802_v18, %v7637_v7  ;;  %v3803_v57 = vmul.f32 %v3787_v33, %v7644_v51 }
 0xb7b   : > { %v3816_v38 = vmul.f32 %v3800_v10, %v7640_v61  ;;  %v3801_v54 = vmul.f32 %v3785_v60, %v7648_v43  ;;  %v5101_v14 = vpop.f32.mrb[68].mxu1 }
 0xb7c   : > { %v3834_v59 = vadd.f32 %v3818_v3, %v7637_v7  ;;  %v3819_v34 = vmul.f32 %v3803_v57, %v7644_v51  ;;  %v7661_v27 = vadd.f32 %v5101_v14, %v7634_v63  ;;  %v3721_v8 = vpop.f32.mrb[69].mxu1 }
 0xb7d   : > { %v3817_v53 = vmul.f32 %v3801_v54, %v7648_v43  ;;  %v7665_v28 = vadd.f32 %v3721_v8, %v7634_v63  ;;  %v5102_v21 = vpop.f32.mrb[70].mxu1  ;;  %v3832_v55 = vadd.f32 %v3816_v38, %v7640_v61 }
 0xb7e   : > { %v3850_v9 = vmul.f32 0.7978846, %v3834_v59  ;;  %v3835_v35 = vadd.f32 %v3819_v34, %v7644_v51  ;;  %v3790_v1 = vmul.f32 0.044715, %v7661_v27  ;;  %v7671_v56 = vadd.f32 %v5102_v21, %v7634_v63  ;;  %v3724_v48 = vpop.f32.mrb[71].mxu1 }
 0xb7f   : > { %v3788_v41 = vmul.f32 0.044715, %v7665_v28  ;;  %v7675_v31 = vadd.f32 %v3724_v48, %v7634_v63  ;;  %v3833_v15 = vadd.f32 %v3817_v53, %v7648_v43  ;;  %v3848_v17 = vmul.f32 0.7978846, %v3832_v55 }
 0xb80   : > { %5563 = vtanh.f32 %v3850_v9  ;;  %v3851_v37 = vmul.f32 0.7978846, %v3835_v35  ;;  %v3806_v5 = vmul.f32 %v3790_v1, %v7661_v27  ;;  %v3791_v6 = vmul.f32 0.044715, %v7671_v56 }
 0xb81   : > { %v3804_v40 = vmul.f32 %v3788_v41, %v7665_v28  ;;  %v3789_v32 = vmul.f32 0.044715, %v7675_v31  ;;  %v3849_v26 = vmul.f32 0.7978846, %v3833_v15  ;;  %5565 = vtanh.f32 %v3848_v17 }
 0xb82   : > { %5567 = vtanh.f32 %v3851_v37  ;;  %v3822_v22 = vmul.f32 %v3806_v5, %v7661_v27  ;;  %v3807_v12 = vmul.f32 %v3791_v6, %v7671_v56  ;;  %v3770_v41 = vmul.f32 0.5, %v7637_v7 }
 0xb83   : > { %v3820_v24 = vmul.f32 %v3804_v40, %v7665_v28  ;;  %v3805_v47 = vmul.f32 %v3789_v32, %v7675_v31  ;;  %v5105_v62 = vpop.f32.mrb[72].mxu1  ;;  %5569 = vtanh.f32 %v3849_v26 }
 0xb84   : > { %v3823_v30 = vmul.f32 %v3807_v12, %v7671_v56  ;;  %v7688_v39 = vadd.f32 %v5105_v62, %v7634_v63  ;;  %v3737_v25 = vpop.f32.mrb[73].mxu1  ;;  %v3838_v10 = vadd.f32 %v3822_v22, %v7661_v27  ;;  %v3768_v22 = vmul.f32 0.5, %v7640_v61 }
 0xb85   : > { %v3821_v45 = vmul.f32 %v3805_v47, %v7675_v31  ;;  %v7692_v49 = vadd.f32 %v3737_v25, %v7634_v63  ;;  %v5106_v18 = vpop.f32.mrb[74].mxu1  ;;  %v3836_v33 = vadd.f32 %v3820_v24, %v7665_v28  ;;  %v3771_v24 = vmul.f32 0.5, %v7644_v51 }
 0xb86   : > { %v3794_v60 = vmul.f32 0.044715, %v7688_v39  ;;  %v7698_v3 = vadd.f32 %v5106_v18, %v7634_v63  ;;  %v3740_v57 = vpop.f32.mrb[75].mxu1  ;;  %v3839_v38 = vadd.f32 %v3823_v30, %v7671_v56  ;;  %v3854_v21 = vmul.f32 0.7978846, %v3838_v10 }
 0xb87   : > { %v3792_v54 = vmul.f32 0.044715, %v7692_v49  ;;  %v7703_v14 = vadd.f32 %v3740_v57, %v7634_v63  ;;  %v3837_v59 = vadd.f32 %v3821_v45, %v7675_v31  ;;  %v3852_v34 = vmul.f32 0.7978846, %v3836_v33 }
 0xb88   : > { %v3810_v8 = vmul.f32 %v3794_v60, %v7688_v39  ;;  %v3795_v53 = vmul.f32 0.044715, %v7698_v3  ;;  %v3855_v55 = vmul.f32 0.7978846, %v3839_v38  ;;  %v3769_v25 = vmul.f32 0.5, %v7648_v43 }
 0xb89   : > { %v3808_v9 = vmul.f32 %v3792_v54, %v7692_v49  ;;  %v3793_v35 = vmul.f32 0.044715, %v7703_v14  ;;  %v3853_v1 = vmul.f32 0.7978846, %v3837_v59  ;;  %5571 = vtanh.f32 %v3852_v34 }
 0xb8a   : > { %v5564_v48 = vpop.eup %5563  ;;  %v3826_v15 = vmul.f32 %v3810_v8, %v7688_v39  ;;  %v3811_v17 = vmul.f32 %v3795_v53, %v7698_v3  ;;  %5573 = vtanh.f32 %v3854_v21 }
 0xb8b   : > { %v5566_v37 = vpop.eup %5565  ;;  %v3824_v5 = vmul.f32 %v3808_v9, %v7692_v49  ;;  %v3809_v6 = vmul.f32 %v3793_v35, %v7703_v14  ;;  %v3882_v40 = vadd.f32 1.0, %v5564_v48  ;;  %5575 = vtanh.f32 %v3853_v1 }
 0xb8c   : > { %v5568_v32 = vpop.eup %5567  ;;  %v3827_v26 = vmul.f32 %v3811_v17, %v7698_v3  ;;  %v3880_v12 = vadd.f32 1.0, %v5566_v37  ;;  %5577 = vtanh.f32 %v3855_v55  ;;  %v3842_v33 = vadd.f32 %v3826_v15, %v7688_v39 }
 0xb8d   : > { %v5570_v7 = vpop.eup %5569  ;;  %v3825_v47 = vmul.f32 %v3809_v6, %v7703_v14  ;;  %v3883_v62 = vadd.f32 1.0, %v5568_v32  ;;  %v3840_v30 = vadd.f32 %v3824_v5, %v7692_v49  ;;  %v3898_v18 = vmul.f32 %v3882_v40, %v3770_v41 }
 0xb8e   : > { %v3881_v45 = vadd.f32 1.0, %v5570_v7  ;;  %v3843_v57 = vadd.f32 %v3827_v26, %v7698_v3  ;;  %v3896_v38 = vmul.f32 %v3880_v12, %v3768_v22  ;;  %v3858_v51 = vmul.f32 0.7978846, %v3842_v33 }
 0xb8f   : > { %v3899_v10 = vmul.f32 %v3883_v62, %v3771_v24  ;;  %v3841_v60 = vadd.f32 %v3825_v47, %v7703_v14  ;;  %v3856_v61 = vmul.f32 0.7978846, %v3840_v30  ;;  %v3772_v48 = vmul.f32 0.5, %v7665_v28 }
 0xb90   : > { %v3897_v54 = vmul.f32 %v3881_v45, %v3769_v25  ;;  %v3859_v8 = vmul.f32 0.7978846, %v3843_v57  ;;  %v3773_v41 = vmul.f32 0.5, %v7675_v31  ;;  %v3774_v17 = vmul.f32 0.5, %v7661_v27 }
 0xb91   : > { %v3913_v59 = vpack.c.bf16 %v3899_v10, %v3898_v18  ;;  %v3857_v34 = vmul.f32 0.7978846, %v3841_v60  ;;  %5579 = vtanh.f32 %v3856_v61  ;;  %v3775_v37 = vmul.f32 0.5, %v7671_v56 }
 0xb92   : > { %v3912_v53 = vpack.c.bf16 %v3897_v54, %v3896_v38  ;;  %5581 = vtanh.f32 %v3858_v51  ;;  %v3776_v30 = vmul.f32 0.5, %v7692_v49  ;;  %v3777_v27 = vmul.f32 0.5, %v7703_v14 }
 0xb93   : > { %v5572_v43 = vpop.eup %5571  ;;  %5583 = vtanh.f32 %v3857_v34  ;;  %v3778_v25 = vmul.f32 0.5, %v7688_v39  ;;  %v3779_v45 = vmul.f32 0.5, %v7698_v3 }
 0xb94   : > { %v5574_v21 = vpop.eup %5573  ;;  %5127 = vmatprep.mubr.bf16.mxu0 %v3912_v53  ;;  %v3884_v55 = vadd.f32 1.0, %v5572_v43  ;;  %5585 = vtanh.f32 %v3859_v8 }
 0xb95   : > { %v5576_v9 = vpop.eup %5575  ;;  %5128 = vmatmul.mubr.bf16.vlgmr.msra.gmra.mrb[144].mxu0 %v3913_v59  ;;  %v3886_v35 = vadd.f32 1.0, %v5574_v21 }
 0xb96   : > { %v5578_v1 = vpop.eup %5577  ;;  %v3885_v15 = vadd.f32 1.0, %v5576_v9  ;;  %v3900_v6 = vmul.f32 %v3884_v55, %v3772_v48 }
 0xb97   : > { %v3887_v5 = vadd.f32 1.0, %v5578_v1  ;;  %v3902_v32 = vmul.f32 %v3886_v35, %v3774_v17 }
 0xb98   : > { %v3901_v40 = vmul.f32 %v3885_v15, %v3773_v41 }
 0xb99   : > { %v3903_v26 = vmul.f32 %v3887_v5, %v3775_v37 }
 0xb9a   : > { %v3914_v22 = vpack.c.bf16 %v3901_v40, %v3900_v6 }
 0xb9b   : > { %v5580_v12 = vpop.eup %5579  ;;  %v3915_v7 = vpack.c.bf16 %v3903_v26, %v3902_v32 }
 0xb9c   : > { %v5582_v24 = vpop.eup %5581  ;;  %5131 = vmatprep.mubr.bf16.mxu0 %v3914_v22  ;;  %v3888_v47 = vadd.f32 1.0, %v5580_v12 }
 0xb9d   : > { %v5584_v62 = vpop.eup %5583  ;;  %5132 = vmatmul.mubr.bf16.gmra.mrb[148].mxu0 %v3915_v7  ;;  %v3890_v28 = vadd.f32 1.0, %v5582_v24 }
 0xb9e   : > { %v5586_v31 = vpop.eup %5585  ;;  %v3889_v56 = vadd.f32 1.0, %v5584_v62  ;;  %v3904_v33 = vmul.f32 %v3888_v47, %v3776_v30 }
 0xb9f   : > { %v3891_v18 = vadd.f32 1.0, %v5586_v31  ;;  %v3906_v60 = vmul.f32 %v3890_v28, %v3778_v25 }
 0xba0   : > { %v3905_v10 = vmul.f32 %v3889_v56, %v3777_v27 }
 0xba1   : > { %v3907_v61 = vmul.f32 %v3891_v18, %v3779_v45 }
 0xba2   : > { %v3916_v57 = vpack.c.bf16 %v3905_v10, %v3904_v33 }
 0xba3   : > { %v3917_v38 = vpack.c.bf16 %v3907_v61, %v3906_v60 }
 0xba4   : > { %5135 = vmatprep.mubr.bf16.mxu0 %v3916_v57 }
 0xba5   : > { %5136 = vmatmul.mubr.bf16.gmra.mrb[152].mxu0 %v3917_v38  ;;  %v3938_v38 = vsub.s32 7, %v7967_v19 }
 0xbe1   : > { %v5109_v54 = vpop.f32.mrb[76].mxu1 }
 0xbe2   : > { %v3762_v51 = vadd.f32 %v5109_v54, %v7634_v63  ;;  %v3753_v49 = vpop.f32.mrb[77].mxu1  ;;  %v5612_v54 = vld [vmem:[%s5830_s30] sm:$0xff] }
 0xbe3   : > { %v3754_v14 = vadd.f32 %v3753_v49, %v7634_v63  ;;  %v5110_v59 = vpop.f32.mrb[78].mxu1  ;;  %v3939_v49 = vrot.slane %v5612_v54, %v3938_v38 }
 0xbe4   : > { %v3798_v34 = vmul.f32 0.044715, %v3762_v51  ;;  %v3765_v39 = vadd.f32 %v5110_v59, %v7634_v63  ;;  %v3756_v3 = vpop.f32.mrb[79].mxu1  ;;  %v3782_v31 = vmul.f32 0.5, %v3762_v51 }
 0xbe5   : > { %v3796_v8 = vmul.f32 0.044715, %v3754_v14  ;;  %v3757_v53 = vadd.f32 %v3756_v3, %v7634_v63  ;;  %v3780_v56 = vmul.f32 0.5, %v3754_v14 }
 0xbe6   : > { %v3814_v43 = vmul.f32 %v3798_v34, %v3762_v51  ;;  %v3799_v21 = vmul.f32 0.044715, %v3765_v39  ;;  %v3783_v30 = vmul.f32 0.5, %v3765_v39 }
 0xbe7   : > { %v3812_v55 = vmul.f32 %v3796_v8, %v3754_v14  ;;  %v3797_v9 = vmul.f32 0.044715, %v3757_v53  ;;  %v3781_v25 = vmul.f32 0.5, %v3757_v53 }
 0xbe8   : > { %v3830_v35 = vmul.f32 %v3814_v43, %v3762_v51  ;;  %v3815_v1 = vmul.f32 %v3799_v21, %v3765_v39 }
 0xbe9   : > { %v3828_v48 = vmul.f32 %v3812_v55, %v3754_v14  ;;  %v3813_v41 = vmul.f32 %v3797_v9, %v3757_v53 }
 0xbea   : > { %v3831_v15 = vmul.f32 %v3815_v1, %v3765_v39  ;;  %v3846_v17 = vadd.f32 %v3830_v35, %v3762_v51 }
 0xbeb   : > { %v3829_v37 = vmul.f32 %v3813_v41, %v3757_v53  ;;  %v3844_v5 = vadd.f32 %v3828_v48, %v3754_v14 }
 0xbec   : > { %v3847_v6 = vadd.f32 %v3831_v15, %v3765_v39  ;;  %v3862_v40 = vmul.f32 0.7978846, %v3846_v17 }
 0xbed   : > { %v3845_v32 = vadd.f32 %v3829_v37, %v3757_v53  ;;  %v3860_v26 = vmul.f32 0.7978846, %v3844_v5 }
 0xbee   : > { %v3863_v22 = vmul.f32 0.7978846, %v3847_v6  ;;  %5587 = vtanh.f32 %v3862_v40 }
 0xbef   : > { %v3861_v12 = vmul.f32 0.7978846, %v3845_v32  ;;  %5589 = vtanh.f32 %v3860_v26 }
 0xbf0   : > { %5591 = vtanh.f32 %v3863_v22 }
 0xbf1   : > { %5593 = vtanh.f32 %v3861_v12 }
 0xbf8   : > { %v5588_v63 = vpop.eup %5587 }
 0xbf9   : > { %v5590_v7 = vpop.eup %5589  ;;  %v3894_v24 = vadd.f32 1.0, %v5588_v63 }
 0xbfa   : > { %v5592_v47 = vpop.eup %5591  ;;  %v3892_v62 = vadd.f32 1.0, %v5590_v7 }
 0xbfb   : > { %v5594_v28 = vpop.eup %5593  ;;  %v3895_v27 = vadd.f32 1.0, %v5592_v47  ;;  %v3910_v18 = vmul.f32 %v3894_v24, %v3782_v31 }
 0xbfc   : > { %v3893_v45 = vadd.f32 1.0, %v5594_v28  ;;  %v3908_v10 = vmul.f32 %v3892_v62, %v3780_v56 }
 0xbfd   : > { %v3911_v33 = vmul.f32 %v3895_v27, %v3783_v30 }
 0xbfe   : > { %v3909_v60 = vmul.f32 %v3893_v45, %v3781_v25 }
 0xbff   : > { %v3919_v61 = vpack.c.bf16 %v3911_v33, %v3910_v18 }
 0xc00   : > { %v3918_v57 = vpack.c.bf16 %v3909_v60, %v3908_v10 }
 0xc02   : > { %5139 = vmatprep.mubr.bf16.mxu0 %v3918_v57 }
 0xc03   : > { %5140 = vmatmul.mubr.bf16.gmra.mrb[156].mxu0 %v3919_v61 }
 0xc68   : > { %v5129_v59 = vpop.f32.mrb[144].mxu0 }
 0xc69   : > { %v4031_v34 = vadd.f32 %v5129_v59, %v3939_v49  ;;  %v4022_v51 = vpop.f32.mrb[145].mxu0 }
 0xc6a   : > { %v4023_v39 = vadd.f32 %v4022_v51, %v3939_v49  ;;  %v5130_v3 = vpop.f32.mrb[146].mxu0 }
 0xc6b   : > { %v4087_v14 = vadd.f32 %v4031_v34, %v7335_v0  ;;  %v4034_v8 = vadd.f32 %v5130_v3, %v3939_v49  ;;  %v4025_v53 = vpop.f32.mrb[147].mxu0 }
 0xc6c   : > { %v4085_v43 = vadd.f32 %v4023_v39, %v7327_v50  ;;  %v4026_v21 = vadd.f32 %v4025_v53, %v3939_v49 }
 0xc6d   : > { %4103 = vst.msk [vmem:[%s7838_s7 + $0x10] sm:$0xff] %vm436_vm1, %v4087_v14  ;;  %v4088_v19 = vadd.f32 %v4034_v8, %v7343_v23 }
 0xc6e   : > { %4101 = vst.msk [vmem:[%s7838_s7] sm:$0xff] %vm436_vm1, %v4085_v43  ;;  %v4086_v55 = vadd.f32 %v4026_v21, %v7332_v36 }
 0xc6f   : > { %4104 = vst.msk [vmem:[%s7838_s7 + $0x18] sm:$0xff] %vm436_vm1, %v4088_v19 }
 0xc70   : > { %4102 = vst.msk [vmem:[%s7838_s7 + $0x8] sm:$0xff] %vm436_vm1, %v4086_v55  ;;  %v5133_v50 = vpop.f32.mrb[148].mxu0 }
 0xc71   : > { %v4047_v0 = vadd.f32 %v5133_v50, %v3939_v49  ;;  %v4038_v23 = vpop.f32.mrb[149].mxu0 }
 0xc72   : > { %v4039_v9 = vadd.f32 %v4038_v23, %v3939_v49  ;;  %v5134_v35 = vpop.f32.mrb[150].mxu0 }
 0xc73   : > { %v4091_v1 = vadd.f32 %v4047_v0, %v7379_v42  ;;  %v4050_v48 = vadd.f32 %v5134_v35, %v3939_v49  ;;  %v4041_v41 = vpop.f32.mrb[151].mxu0 }
 0xc74   : > { %v4089_v36 = vadd.f32 %v4039_v9, %v7371_v44  ;;  %v4042_v15 = vadd.f32 %v4041_v41, %v3939_v49 }
 0xc75   : > { %4107 = vst.msk [vmem:[%s7838_s7 + $0x30] sm:$0xff] %vm436_vm1, %v4091_v1  ;;  %v4092_v17 = vadd.f32 %v4050_v48, %v7386_v29 }
 0xc76   : > { %4105 = vst.msk [vmem:[%s7838_s7 + $0x20] sm:$0xff] %vm436_vm1, %v4089_v36  ;;  %v4090_v37 = vadd.f32 %v4042_v15, %v7376_v58 }
 0xc77   : > { %4108 = vst.msk [vmem:[%s7838_s7 + $0x38] sm:$0xff] %vm436_vm1, %v4092_v17 }
 0xc78   : > { %4106 = vst.msk [vmem:[%s7838_s7 + $0x28] sm:$0xff] %vm436_vm1, %v4090_v37  ;;  %v5137_v44 = vpop.f32.mrb[152].mxu0 }
 0xc79   : > { %v4063_v42 = vadd.f32 %v5137_v44, %v3939_v49  ;;  %v4054_v29 = vpop.f32.mrb[153].mxu0 }
 0xc7a   : > { %v4055_v5 = vadd.f32 %v4054_v29, %v3939_v49  ;;  %v5138_v6 = vpop.f32.mrb[154].mxu0 }
 0xc7b   : > { %v4095_v40 = vadd.f32 %v4063_v42, %v7415_v11  ;;  %v4066_v32 = vadd.f32 %v5138_v6, %v3939_v49  ;;  %v4057_v26 = vpop.f32.mrb[155].mxu0 }
 0xc7c   : > { %v4093_v58 = vadd.f32 %v4055_v5, %v7407_v16  ;;  %v4058_v22 = vadd.f32 %v4057_v26, %v3939_v49 }
 0xc7d   : > { %4111 = vst.msk [vmem:[%s7838_s7 + $0x50] sm:$0xff] %vm436_vm1, %v4095_v40  ;;  %v4096_v12 = vadd.f32 %v4066_v32, %v7420_v4 }
 0xc7e   : > { %4109 = vst.msk [vmem:[%s7838_s7 + $0x40] sm:$0xff] %vm436_vm1, %v4093_v58  ;;  %v4094_v63 = vadd.f32 %v4058_v22, %v7412_v2 }
 0xc7f   : > { %4112 = vst.msk [vmem:[%s7838_s7 + $0x58] sm:$0xff] %vm436_vm1, %v4096_v12 }
 0xc80   : > { %4110 = vst.msk [vmem:[%s7838_s7 + $0x48] sm:$0xff] %vm436_vm1, %v4094_v63 }
 0xcd6   : > { %v5141_v16 = vpop.f32.mrb[156].mxu0 }
 0xcd7   : > { %v4079_v11 = vadd.f32 %v5141_v16, %v3939_v49  ;;  %v4070_v4 = vpop.f32.mrb[157].mxu0 }
 0xcd8   : > { %v4071_v7 = vadd.f32 %v4070_v4, %v3939_v49  ;;  %v5142_v24 = vpop.f32.mrb[158].mxu0 }
 0xcd9   : > { %v4099_v47 = vadd.f32 %v4079_v11, %v7451_v52  ;;  %v4082_v62 = vadd.f32 %v5142_v24, %v3939_v49  ;;  %v4073_v28 = vpop.f32.mrb[159].mxu0 }
 0xcda   : > { %v4097_v2 = vadd.f32 %v4071_v7, %v7443_v13  ;;  %v4074_v31 = vadd.f32 %v4073_v28, %v3939_v49 }
 0xcdb   : > { %4115 = vst.msk [vmem:[%s7838_s7 + $0x70] sm:$0xff] %vm436_vm1, %v4099_v47  ;;  %v4100_v30 = vadd.f32 %v4082_v62, %v7456_v20 }
 0xcdc   : > { %4113 = vst.msk [vmem:[%s7838_s7 + $0x60] sm:$0xff] %vm436_vm1, %v4097_v2  ;;  %v4098_v27 = vadd.f32 %v4074_v31, %v7448_v46 }
 0xcdd   : > { %4116 = vst.msk [vmem:[%s7838_s7 + $0x78] sm:$0xff] %vm436_vm1, %v4100_v30 }
 0xcde   : > { %4114 = vst.msk [vmem:[%s7838_s7 + $0x68] sm:$0xff] %vm436_vm1, %v4098_v27 }
 0xcdf PF: > { %p17_p8 = scmp.ge.s32.totalorder %s5755_s29, 4   ;;  %s7970_s24 = smov %s5669_s25 }
 0xce0   : > { %s7971_s25 = smov %s5673_s26  ;;  %s7972_s26 = smov %s5765_s9 }
 0xce1   : > { %s7973_s27 = smov %s5755_s29  ;;  %19 = sbr.rel (!%p17_p8) target bundleno = 3 (0x3), region = 109 }
 0xce8   :  { %4128 = vsyncpa [#allocation3], 1 }
 0xce9   :  { %4130 = vsyncpa [#allocation3 + $0x1], 1 }

</bundles_post_ra>
